<compile_context>
chip_gen: v7x
topology: tpu7x:2x2x1
jax: 0.10.0
libtpu: 0.0.40
codegen_flags: <defaults>
</compile_context>

<pallas_src>
import jax
import jax.numpy as jnp
from jax.experimental import pallas as pl
from jax.experimental.pallas import tpu as pltpu


def _mish_fast(z):
    """Mish via one EUP exp + one approximate EUP reciprocal.

    Mish(z) = z * tanh(softplus(z)) = z * (u^2 + 2u) / (u^2 + 2u + 2), u = exp(z).
    z is clamped before exp so u*u stays finite in f32 (exp(40)^2 ~ 5.5e34);
    for z > 40 the ratio saturates at 1, so mish(z) == z, matching the exact
    formula.  approx reciprocal adds ~1e-3-1e-4 relative error.
    """
    u = jnp.exp(jnp.minimum(z, 40.0))
    num = u * (u + 2.0)
    return z * num * pl.reciprocal(num + 2.0, approx=True)


def _mish_exact(z):
    """Exact Mish (numerically-stable softplus + tanh) for strict parity checks."""
    sp = jnp.maximum(z, 0.0) + jnp.log(1.0 + jnp.exp(-jnp.abs(z)))
    return z * jnp.tanh(sp)


def _make_kernel(exact_activation, mxu_precision):
    act = _mish_exact if exact_activation else _mish_fast

    def dot_bias(h, w_ref, b_ref):
        # MXU matmul with f32 accumulation; bias add + activation stay f32 on
        # the VPU/EUP (v5e has no bf16 VPU/EUP path).
        y = jnp.dot(h.astype(w_ref.dtype), w_ref[...],
                    preferred_element_type=jnp.float32,
                    precision=mxu_precision)
        return y + b_ref[...]

    def kernel(x_ref, w1_ref, b1_ref, w2_ref, b2_ref, w3_ref, b3_ref,
               w4_ref, b4_ref, o_ref):
        h = act(dot_bias(x_ref[...], w1_ref, b1_ref))   # Dropout -> identity (eval)
        h = act(dot_bias(h, w2_ref, b2_ref))
        h = act(dot_bias(h, w3_ref, b3_ref))
        o_ref[...] = dot_bias(h, w4_ref, b4_ref).astype(o_ref.dtype)

    return kernel


def spline_net_forward(x, params, *, tile_b=None, compute_dtype=jnp.bfloat16,
                       out_dtype=jnp.float32, exact_activation=False,
                       pad_out_lanes=False):
    """Fused Spline_net MLP forward.

    x: (B, input_size).  params: dict of pre-transposed (in, out) weights and
    (1, out) biases named w1..w4 / b1..b4.

    tile_b: batch rows per grid step (sweepable).  Default: whole batch when
      B < 256; otherwise split into >= 2 sublane-aligned tiles of at most 4096
      rows (keeps both v7x TensorCores busy while amortizing ~0.35us/step).
    compute_dtype: MXU operand dtype (default bf16 -- halves weight DMA bytes
      and avoids the multi-pass f32 MXU path).  For half the x DMA bytes too,
      pass x already in bf16; the wrapper never re-casts x (no extra HBM pass).
    out_dtype: output dtype (bf16 halves writeback bytes if the consumer is ok
      with it; default f32 for parity with PyTorch).
    exact_activation: use exact tanh(softplus) Mish instead of the single-exp +
      approx-reciprocal fast path (for strict correctness checks).
    pad_out_lanes: zero-pad the last layer to a 128-lane output (unmasked vst).
      Off by default: with emb_size=8 the padding inflates output HBM writeback
      16x, which dominates on a mem-bound kernel.

    NOTE: when tile_b does not divide B, the last grid step reads past the end
    of x (unspecified values) and Pallas masks the corresponding output rows.
    This is safe only because rows are fully independent in this MLP.
    """
    B, D_in = x.shape
    E = params["w4"].shape[1]

    # ---- batch tiling ------------------------------------------------------
    if tile_b is None:
        if B < 256:
            tile_b = B                                   # single step; overhead-bound anyway
        else:
            # >= 2 parallel steps so both v7x TensorCores get work; tiles capped
            # at 4096 rows to amortize per-step overhead (VMEM stays tiny).
            n_steps = max(2, pl.cdiv(B, 4096))
            tile_b = min(B, ((pl.cdiv(B, n_steps) + 7) // 8) * 8)
    else:
        tile_b = max(1, min(int(tile_b), B))
        if tile_b < B:
            tile_b = max(8, (tile_b // 8) * 8)           # sublane-aligned tiles
    grid_b = pl.cdiv(B, tile_b)

    # ---- optional lane-dense output (off by default, see docstring) --------
    w4, b4 = params["w4"], params["b4"]
    E_out = E
    if pad_out_lanes and E % 128 != 0:
        E_out = ((E + 127) // 128) * 128
        w4 = jnp.pad(w4, ((0, 0), (0, E_out - E)))
        b4 = jnp.pad(b4, ((0, 0), (0, E_out - E)))

    # ---- dtypes: weights in compute_dtype for the MXU; biases stay f32 ------
    # (x is NOT cast here -- the in-kernel astype at matmul time avoids an
    #  extra wrapper-side HBM pass over x.)
    w1 = params["w1"].astype(compute_dtype)
    w2 = params["w2"].astype(compute_dtype)
    w3 = params["w3"].astype(compute_dtype)
    w4 = w4.astype(compute_dtype)
    b1 = params["b1"].astype(jnp.float32)
    b2 = params["b2"].astype(jnp.float32)
    b3 = params["b3"].astype(jnp.float32)
    b4 = b4.astype(jnp.float32)

    # f32 mode uses HIGHEST precision so it is faithful to PyTorch's f32 matmul
    # (TPU default precision would otherwise silently use 1-pass bf16).
    mxu_precision = (jax.lax.Precision.HIGHEST
                     if jnp.dtype(compute_dtype) == jnp.dtype(jnp.float32)
                     else None)
    kernel = _make_kernel(exact_activation, mxu_precision)

    # ---- specs ---------------------------------------------------------------
    x_spec = pl.BlockSpec((tile_b, D_in), lambda i: (i, 0))
    out_spec = pl.BlockSpec((tile_b, E_out), lambda i: (i, 0))

    def resident(a, mode):
        # Constant block index: fetched once, resident in VMEM for every step.
        if mode is None:
            return pl.BlockSpec(a.shape, lambda i: (0, 0))
        return pl.BlockSpec(a.shape, lambda i: (0, 0), pipeline_mode=mode)

    def run(weight_mode):
        in_specs = [x_spec,
                    resident(w1, weight_mode), resident(b1, weight_mode),
                    resident(w2, weight_mode), resident(b2, weight_mode),
                    resident(w3, weight_mode), resident(b3, weight_mode),
                    resident(w4, weight_mode), resident(b4, weight_mode)]
        return pl.pallas_call(
            kernel,
            out_shape=jax.ShapeDtypeStruct((B, E_out), out_dtype),
            grid_spec=pltpu.PrefetchScalarGridSpec(
                num_scalar_prefetch=0,
                grid=(grid_b,),
                in_specs=in_specs,
                out_specs=out_spec),
            compiler_params=pltpu.CompilerParams(
                dimension_semantics=("parallel",)),
        )(x, w1, b1, w2, b2, w3, b3, w4, b4)

    try:
        # Weight/bias blocks never change index -> a second pipeline buffer is
        # pure waste; single-buffer them.  Fall back if this jax build rejects
        # Buffered(1) in pipeline_mode.
        out = run(pl.Buffered(1))
    except Exception:  # pragma: no cover - conservative fallback only
        out = run(None)

    if E_out != E:
        # Only reached with pad_out_lanes=True; this slice is an extra
        # output-sized HBM pass, which is why padding is off by default.
        out = out[:, :E]
    return out


def init_params(key, input_size, hidden_size, emb_size, n_hidden_layers=3):
    """Deterministic PyTorch-Linear-style init (uniform +/- 1/sqrt(fan_in)).

    Weights are stored pre-transposed as (in, out)."""
    dims = [input_size] + [hidden_size] * n_hidden_layers + [emb_size]
    params = {}
    for li in range(len(dims) - 1):
        fan_in, fan_out = dims[li], dims[li + 1]
        key, kw, kb = jax.random.split(key, 3)
        bound = 1.0 / jnp.sqrt(jnp.float32(fan_in))
        w = jax.random.uniform(kw, (fan_in, fan_out), jnp.float32, -bound, bound)
        b = jax.random.uniform(kb, (1, fan_out), jnp.float32, -bound, bound)
        params[f"w{li + 1}"] = w
        params[f"b{li + 1}"] = b
    return params


def spline_net_reference(x, params):
    """Pure-JAX reference, faithful to PyTorch f32 math (HIGHEST matmul precision)."""
    h = x
    for li in range(1, 4):
        h = jnp.dot(h, params[f"w{li}"], precision="highest") + params[f"b{li}"]
        h = h * jnp.tanh(jax.nn.softplus(h))   # exact Mish
    return jnp.dot(h, params["w4"], precision="highest") + params["b4"]


if __name__ == "__main__":
    key = jax.random.PRNGKey(0)

    # Module hyperparameters (small, consistent with the constructor):
    input_size, emb_size, hidden_size, context_size = 16, 8, 32, 0
    batch = 64

    key, kx, kp = jax.random.split(key, 3)
    x = jax.random.normal(kx, (batch, input_size), jnp.float32)
    params = init_params(kp, input_size + context_size, hidden_size, emb_size)

    ref = spline_net_reference(x, params)

    # Strict check: f32 MXU operands + exact Mish -> tight tolerance.
    out_f32 = jax.block_until_ready(
        spline_net_forward(x, params, compute_dtype=jnp.float32,
                           exact_activation=True))
    assert out_f32.shape == (batch, emb_size)
    assert jnp.allclose(out_f32, ref, atol=1e-4, rtol=1e-4), \
        float(jnp.max(jnp.abs(out_f32 - ref)))

    # Default fast path: bf16 MXU operands + single-exp approx-reciprocal Mish.
    # Tolerance documents bf16 rounding compounding over 4 layers plus the
    # ~1e-3 relative error of the approximate EUP reciprocal.
    out_fast = jax.block_until_ready(spline_net_forward(x, params))
    assert out_fast.shape == (batch, emb_size)
    assert jnp.allclose(out_fast, ref, atol=3e-2, rtol=3e-2), \
        float(jnp.max(jnp.abs(out_fast - ref)))

    print("KERNEL_OK")
</pallas_src>

<mosaic_0001>
module attributes {stable_mosaic.version = 11 : i64} {
  func.func @kernel(%arg0: i32, %arg1: memref<64x16xf32, #tpu.memory_space<vmem>>, %arg2: memref<16x32xf32, #tpu.memory_space<vmem>>, %arg3: memref<1x32xf32, #tpu.memory_space<vmem>>, %arg4: memref<32x32xf32, #tpu.memory_space<vmem>>, %arg5: memref<1x32xf32, #tpu.memory_space<vmem>>, %arg6: memref<32x32xf32, #tpu.memory_space<vmem>>, %arg7: memref<1x32xf32, #tpu.memory_space<vmem>>, %arg8: memref<32x8xf32, #tpu.memory_space<vmem>>, %arg9: memref<1x8xf32, #tpu.memory_space<vmem>>, %arg10: memref<64x8xf32, #tpu.memory_space<vmem>>) attributes {dimension_semantics = [#tpu.dimension_semantics<parallel>], iteration_bounds = array<i64: 1>, scalar_prefetch = 0 : i64, scratch_operands = 0 : i64, tpu.core_type = #tpu.core_type<tc>, window_params = [{transform_indices = @transform_0, window_bounds = array<i64: 64, 16>}, {pipeline_mode = #tpu.pipeline_mode<synchronous>, transform_indices = @transform_1, window_bounds = array<i64: 16, 32>}, {pipeline_mode = #tpu.pipeline_mode<synchronous>, transform_indices = @transform_2, window_bounds = array<i64: 1, 32>}, {pipeline_mode = #tpu.pipeline_mode<synchronous>, transform_indices = @transform_3, window_bounds = array<i64: 32, 32>}, {pipeline_mode = #tpu.pipeline_mode<synchronous>, transform_indices = @transform_4, window_bounds = array<i64: 1, 32>}, {pipeline_mode = #tpu.pipeline_mode<synchronous>, transform_indices = @transform_5, window_bounds = array<i64: 32, 32>}, {pipeline_mode = #tpu.pipeline_mode<synchronous>, transform_indices = @transform_6, window_bounds = array<i64: 1, 32>}, {pipeline_mode = #tpu.pipeline_mode<synchronous>, transform_indices = @transform_7, window_bounds = array<i64: 32, 8>}, {pipeline_mode = #tpu.pipeline_mode<synchronous>, transform_indices = @transform_8, window_bounds = array<i64: 1, 8>}, {transform_indices = @transform_9, window_bounds = array<i64: 64, 8>}]} {
    %c0 = arith.constant 0 : index
    %c0_0 = arith.constant 0 : index
    %0 = vector.load %arg1[%c0, %c0_0] : memref<64x16xf32, #tpu.memory_space<vmem>>, vector<64x16xf32>
    %c0_1 = arith.constant 0 : index
    %c0_2 = arith.constant 0 : index
    %1 = vector.load %arg2[%c0_1, %c0_2] : memref<16x32xf32, #tpu.memory_space<vmem>>, vector<16x32xf32>
    %cst = arith.constant dense<0.000000e+00> : vector<64x32xf32>
    %2 = tpu.matmul %0, %1, %cst {dimension_numbers = #tpu.dot_dimension_numbers<[1], [0], [0], [1], [0, 0, 1, 1], [], []>, precision = #tpu.contract_precision<fp32>} : vector<64x16xf32>, vector<16x32xf32>, vector<64x32xf32> -> vector<64x32xf32>
    %c0_3 = arith.constant 0 : index
    %c0_4 = arith.constant 0 : index
    %3 = vector.load %arg3[%c0_3, %c0_4] : memref<1x32xf32, #tpu.memory_space<vmem>>, vector<1x32xf32>
    %4 = vector.broadcast %3 : vector<1x32xf32> to vector<64x32xf32>
    %5 = arith.addf %2, %4 : vector<64x32xf32>
    %cst_5 = arith.constant 0.000000e+00 : f32
    %6 = vector.broadcast %cst_5 : f32 to vector<64x32xf32>
    %7 = arith.maximumf %5, %6 : vector<64x32xf32>
    %8 = math.absf %5 : vector<64x32xf32>
    %cst_6 = arith.constant 0.000000e+00 : f32
    %9 = vector.broadcast %cst_6 : f32 to vector<64x32xf32>
    %10 = arith.subf %9, %8 : vector<64x32xf32>
    %11 = math.exp %10 : vector<64x32xf32>
    %cst_7 = arith.constant 1.000000e+00 : f32
    %12 = vector.broadcast %cst_7 : f32 to vector<64x32xf32>
    %13 = arith.addf %12, %11 : vector<64x32xf32>
    %14 = math.log %13 : vector<64x32xf32>
    %15 = arith.addf %7, %14 : vector<64x32xf32>
    %16 = math.tanh %15 : vector<64x32xf32>
    %17 = arith.mulf %5, %16 : vector<64x32xf32>
    %c0_8 = arith.constant 0 : index
    %c0_9 = arith.constant 0 : index
    %18 = vector.load %arg4[%c0_8, %c0_9] : memref<32x32xf32, #tpu.memory_space<vmem>>, vector<32x32xf32>
    %cst_10 = arith.constant dense<0.000000e+00> : vector<64x32xf32>
    %19 = tpu.matmul %17, %18, %cst_10 {dimension_numbers = #tpu.dot_dimension_numbers<[1], [0], [0], [1], [0, 0, 1, 1], [], []>, precision = #tpu.contract_precision<fp32>} : vector<64x32xf32>, vector<32x32xf32>, vector<64x32xf32> -> vector<64x32xf32>
    %c0_11 = arith.constant 0 : index
    %c0_12 = arith.constant 0 : index
    %20 = vector.load %arg5[%c0_11, %c0_12] : memref<1x32xf32, #tpu.memory_space<vmem>>, vector<1x32xf32>
    %21 = vector.broadcast %20 : vector<1x32xf32> to vector<64x32xf32>
    %22 = arith.addf %19, %21 : vector<64x32xf32>
    %cst_13 = arith.constant 0.000000e+00 : f32
    %23 = vector.broadcast %cst_13 : f32 to vector<64x32xf32>
    %24 = arith.maximumf %22, %23 : vector<64x32xf32>
    %25 = math.absf %22 : vector<64x32xf32>
    %cst_14 = arith.constant 0.000000e+00 : f32
    %26 = vector.broadcast %cst_14 : f32 to vector<64x32xf32>
    %27 = arith.subf %26, %25 : vector<64x32xf32>
    %28 = math.exp %27 : vector<64x32xf32>
    %cst_15 = arith.constant 1.000000e+00 : f32
    %29 = vector.broadcast %cst_15 : f32 to vector<64x32xf32>
    %30 = arith.addf %29, %28 : vector<64x32xf32>
    %31 = math.log %30 : vector<64x32xf32>
    %32 = arith.addf %24, %31 : vector<64x32xf32>
    %33 = math.tanh %32 : vector<64x32xf32>
    %34 = arith.mulf %22, %33 : vector<64x32xf32>
    %c0_16 = arith.constant 0 : index
    %c0_17 = arith.constant 0 : index
    %35 = vector.load %arg6[%c0_16, %c0_17] : memref<32x32xf32, #tpu.memory_space<vmem>>, vector<32x32xf32>
    %cst_18 = arith.constant dense<0.000000e+00> : vector<64x32xf32>
    %36 = tpu.matmul %34, %35, %cst_18 {dimension_numbers = #tpu.dot_dimension_numbers<[1], [0], [0], [1], [0, 0, 1, 1], [], []>, precision = #tpu.contract_precision<fp32>} : vector<64x32xf32>, vector<32x32xf32>, vector<64x32xf32> -> vector<64x32xf32>
    %c0_19 = arith.constant 0 : index
    %c0_20 = arith.constant 0 : index
    %37 = vector.load %arg7[%c0_19, %c0_20] : memref<1x32xf32, #tpu.memory_space<vmem>>, vector<1x32xf32>
    %38 = vector.broadcast %37 : vector<1x32xf32> to vector<64x32xf32>
    %39 = arith.addf %36, %38 : vector<64x32xf32>
    %cst_21 = arith.constant 0.000000e+00 : f32
    %40 = vector.broadcast %cst_21 : f32 to vector<64x32xf32>
    %41 = arith.maximumf %39, %40 : vector<64x32xf32>
    %42 = math.absf %39 : vector<64x32xf32>
    %cst_22 = arith.constant 0.000000e+00 : f32
    %43 = vector.broadcast %cst_22 : f32 to vector<64x32xf32>
    %44 = arith.subf %43, %42 : vector<64x32xf32>
    %45 = math.exp %44 : vector<64x32xf32>
    %cst_23 = arith.constant 1.000000e+00 : f32
    %46 = vector.broadcast %cst_23 : f32 to vector<64x32xf32>
    %47 = arith.addf %46, %45 : vector<64x32xf32>
    %48 = math.log %47 : vector<64x32xf32>
    %49 = arith.addf %41, %48 : vector<64x32xf32>
    %50 = math.tanh %49 : vector<64x32xf32>
    %51 = arith.mulf %39, %50 : vector<64x32xf32>
    %c0_24 = arith.constant 0 : index
    %c0_25 = arith.constant 0 : index
    %52 = vector.load %arg8[%c0_24, %c0_25] : memref<32x8xf32, #tpu.memory_space<vmem>>, vector<32x8xf32>
    %cst_26 = arith.constant dense<0.000000e+00> : vector<64x8xf32>
    %53 = tpu.matmul %51, %52, %cst_26 {dimension_numbers = #tpu.dot_dimension_numbers<[1], [0], [0], [1], [0, 0, 1, 1], [], []>, precision = #tpu.contract_precision<fp32>} : vector<64x32xf32>, vector<32x8xf32>, vector<64x8xf32> -> vector<64x8xf32>
    %c0_27 = arith.constant 0 : index
    %c0_28 = arith.constant 0 : index
    %54 = vector.load %arg9[%c0_27, %c0_28] : memref<1x8xf32, #tpu.memory_space<vmem>>, vector<1x8xf32>
    %55 = vector.broadcast %54 : vector<1x8xf32> to vector<64x8xf32>
    %56 = arith.addf %53, %55 : vector<64x8xf32>
    %c0_29 = arith.constant 0 : index
    %c0_30 = arith.constant 0 : index
    %57 = vector.load %arg10[%c0_29, %c0_30] : memref<64x8xf32, #tpu.memory_space<vmem>>, vector<64x8xf32>
    tpu.vector_store %arg10[%c0_29, %c0_30], %56 {strides = array<i32>} : memref<64x8xf32, #tpu.memory_space<vmem>>, vector<64x8xf32>,
    return
  }
  func.func @transform_0(%arg0: i32) -> (i32, i32) {
    %c0_i32 = arith.constant 0 : i32
    %c0_i32_0 = arith.constant 0 : i32
    return %arg0, %c0_i32 : i32, i32
  }
  func.func @transform_1(%arg0: i32) -> (i32, i32) {
    %c0_i32 = arith.constant 0 : i32
    %c0_i32_0 = arith.constant 0 : i32
    %c0_i32_1 = arith.constant 0 : i32
    return %c0_i32, %c0_i32_0 : i32, i32
  }
  func.func @transform_2(%arg0: i32) -> (i32, i32) {
    %c0_i32 = arith.constant 0 : i32
    %c0_i32_0 = arith.constant 0 : i32
    %c0_i32_1 = arith.constant 0 : i32
    return %c0_i32, %c0_i32_0 : i32, i32
  }
  func.func @transform_3(%arg0: i32) -> (i32, i32) {
    %c0_i32 = arith.constant 0 : i32
    %c0_i32_0 = arith.constant 0 : i32
    %c0_i32_1 = arith.constant 0 : i32
    return %c0_i32, %c0_i32_0 : i32, i32
  }
  func.func @transform_4(%arg0: i32) -> (i32, i32) {
    %c0_i32 = arith.constant 0 : i32
    %c0_i32_0 = arith.constant 0 : i32
    %c0_i32_1 = arith.constant 0 : i32
    return %c0_i32, %c0_i32_0 : i32, i32
  }
  func.func @transform_5(%arg0: i32) -> (i32, i32) {
    %c0_i32 = arith.constant 0 : i32
    %c0_i32_0 = arith.constant 0 : i32
    %c0_i32_1 = arith.constant 0 : i32
    return %c0_i32, %c0_i32_0 : i32, i32
  }
  func.func @transform_6(%arg0: i32) -> (i32, i32) {
    %c0_i32 = arith.constant 0 : i32
    %c0_i32_0 = arith.constant 0 : i32
    %c0_i32_1 = arith.constant 0 : i32
    return %c0_i32, %c0_i32_0 : i32, i32
  }
  func.func @transform_7(%arg0: i32) -> (i32, i32) {
    %c0_i32 = arith.constant 0 : i32
    %c0_i32_0 = arith.constant 0 : i32
    %c0_i32_1 = arith.constant 0 : i32
    return %c0_i32, %c0_i32_0 : i32, i32
  }
  func.func @transform_8(%arg0: i32) -> (i32, i32) {
    %c0_i32 = arith.constant 0 : i32
    %c0_i32_0 = arith.constant 0 : i32
    %c0_i32_1 = arith.constant 0 : i32
    return %c0_i32, %c0_i32_0 : i32, i32
  }
  func.func @transform_9(%arg0: i32) -> (i32, i32) {
    %c0_i32 = arith.constant 0 : i32
    %c0_i32_0 = arith.constant 0 : i32
    return %arg0, %c0_i32 : i32, i32
  }
}

module attributes {stable_mosaic.version = 11 : i64} {
  func.func @kernel(%arg0: i32, %arg1: memref<64x16xf32, #tpu.memory_space<vmem>>, %arg2: memref<16x32xf32, #tpu.memory_space<vmem>>, %arg3: memref<1x32xf32, #tpu.memory_space<vmem>>, %arg4: memref<32x32xf32, #tpu.memory_space<vmem>>, %arg5: memref<1x32xf32, #tpu.memory_space<vmem>>, %arg6: memref<32x32xf32, #tpu.memory_space<vmem>>, %arg7: memref<1x32xf32, #tpu.memory_space<vmem>>, %arg8: memref<32x8xf32, #tpu.memory_space<vmem>>, %arg9: memref<1x8xf32, #tpu.memory_space<vmem>>, %arg10: memref<64x8xf32, #tpu.memory_space<vmem>>) attributes {dimension_semantics = [#tpu.dimension_semantics<parallel>], iteration_bounds = array<i64: 1>, scalar_prefetch = 0 : i64, scratch_operands = 0 : i64, tpu.core_type = #tpu.core_type<tc>, window_params = [{transform_indices = @transform_0, window_bounds = array<i64: 64, 16>}, {pipeline_mode = #tpu.pipeline_mode<synchronous>, transform_indices = @transform_1, window_bounds = array<i64: 16, 32>}, {pipeline_mode = #tpu.pipeline_mode<synchronous>, transform_indices = @transform_2, window_bounds = array<i64: 1, 32>}, {pipeline_mode = #tpu.pipeline_mode<synchronous>, transform_indices = @transform_3, window_bounds = array<i64: 32, 32>}, {pipeline_mode = #tpu.pipeline_mode<synchronous>, transform_indices = @transform_4, window_bounds = array<i64: 1, 32>}, {pipeline_mode = #tpu.pipeline_mode<synchronous>, transform_indices = @transform_5, window_bounds = array<i64: 32, 32>}, {pipeline_mode = #tpu.pipeline_mode<synchronous>, transform_indices = @transform_6, window_bounds = array<i64: 1, 32>}, {pipeline_mode = #tpu.pipeline_mode<synchronous>, transform_indices = @transform_7, window_bounds = array<i64: 32, 8>}, {pipeline_mode = #tpu.pipeline_mode<synchronous>, transform_indices = @transform_8, window_bounds = array<i64: 1, 8>}, {transform_indices = @transform_9, window_bounds = array<i64: 64, 8>}]} {
    %c0 = arith.constant 0 : index
    %c0_0 = arith.constant 0 : index
    %0 = vector.load %arg1[%c0, %c0_0] : memref<64x16xf32, #tpu.memory_space<vmem>>, vector<64x16xf32>
    %c0_1 = arith.constant 0 : index
    %c0_2 = arith.constant 0 : index
    %1 = vector.load %arg2[%c0_1, %c0_2] : memref<16x32xf32, #tpu.memory_space<vmem>>, vector<16x32xf32>
    %cst = arith.constant dense<0.000000e+00> : vector<64x32xf32>
    %2 = tpu.matmul %0, %1, %cst {dimension_numbers = #tpu.dot_dimension_numbers<[1], [0], [0], [1], [0, 0, 1, 1], [], []>, precision = #tpu.contract_precision<fp32>} : vector<64x16xf32>, vector<16x32xf32>, vector<64x32xf32> -> vector<64x32xf32>
    %c0_3 = arith.constant 0 : index
    %c0_4 = arith.constant 0 : index
    %3 = vector.load %arg3[%c0_3, %c0_4] : memref<1x32xf32, #tpu.memory_space<vmem>>, vector<1x32xf32>
    %4 = vector.broadcast %3 : vector<1x32xf32> to vector<64x32xf32>
    %5 = arith.addf %2, %4 : vector<64x32xf32>
    %cst_5 = arith.constant 0.000000e+00 : f32
    %6 = vector.broadcast %cst_5 : f32 to vector<64x32xf32>
    %7 = arith.maximumf %5, %6 : vector<64x32xf32>
    %8 = math.absf %5 : vector<64x32xf32>
    %cst_6 = arith.constant 0.000000e+00 : f32
    %9 = vector.broadcast %cst_6 : f32 to vector<64x32xf32>
    %10 = arith.subf %9, %8 : vector<64x32xf32>
    %11 = math.exp %10 : vector<64x32xf32>
    %cst_7 = arith.constant 1.000000e+00 : f32
    %12 = vector.broadcast %cst_7 : f32 to vector<64x32xf32>
    %13 = arith.addf %12, %11 : vector<64x32xf32>
    %14 = math.log %13 : vector<64x32xf32>
    %15 = arith.addf %7, %14 : vector<64x32xf32>
    %16 = math.tanh %15 : vector<64x32xf32>
    %17 = arith.mulf %5, %16 : vector<64x32xf32>
    %c0_8 = arith.constant 0 : index
    %c0_9 = arith.constant 0 : index
    %18 = vector.load %arg4[%c0_8, %c0_9] : memref<32x32xf32, #tpu.memory_space<vmem>>, vector<32x32xf32>
    %cst_10 = arith.constant dense<0.000000e+00> : vector<64x32xf32>
    %19 = tpu.matmul %17, %18, %cst_10 {dimension_numbers = #tpu.dot_dimension_numbers<[1], [0], [0], [1], [0, 0, 1, 1], [], []>, precision = #tpu.contract_precision<fp32>} : vector<64x32xf32>, vector<32x32xf32>, vector<64x32xf32> -> vector<64x32xf32>
    %c0_11 = arith.constant 0 : index
    %c0_12 = arith.constant 0 : index
    %20 = vector.load %arg5[%c0_11, %c0_12] : memref<1x32xf32, #tpu.memory_space<vmem>>, vector<1x32xf32>
    %21 = vector.broadcast %20 : vector<1x32xf32> to vector<64x32xf32>
    %22 = arith.addf %19, %21 : vector<64x32xf32>
    %cst_13 = arith.constant 0.000000e+00 : f32
    %23 = vector.broadcast %cst_13 : f32 to vector<64x32xf32>
    %24 = arith.maximumf %22, %23 : vector<64x32xf32>
    %25 = math.absf %22 : vector<64x32xf32>
    %cst_14 = arith.constant 0.000000e+00 : f32
    %26 = vector.broadcast %cst_14 : f32 to vector<64x32xf32>
    %27 = arith.subf %26, %25 : vector<64x32xf32>
    %28 = math.exp %27 : vector<64x32xf32>
    %cst_15 = arith.constant 1.000000e+00 : f32
    %29 = vector.broadcast %cst_15 : f32 to vector<64x32xf32>
    %30 = arith.addf %29, %28 : vector<64x32xf32>
    %31 = math.log %30 : vector<64x32xf32>
    %32 = arith.addf %24, %31 : vector<64x32xf32>
    %33 = math.tanh %32 : vector<64x32xf32>
    %34 = arith.mulf %22, %33 : vector<64x32xf32>
    %c0_16 = arith.constant 0 : index
    %c0_17 = arith.constant 0 : index
    %35 = vector.load %arg6[%c0_16, %c0_17] : memref<32x32xf32, #tpu.memory_space<vmem>>, vector<32x32xf32>
    %cst_18 = arith.constant dense<0.000000e+00> : vector<64x32xf32>
    %36 = tpu.matmul %34, %35, %cst_18 {dimension_numbers = #tpu.dot_dimension_numbers<[1], [0], [0], [1], [0, 0, 1, 1], [], []>, precision = #tpu.contract_precision<fp32>} : vector<64x32xf32>, vector<32x32xf32>, vector<64x32xf32> -> vector<64x32xf32>
    %c0_19 = arith.constant 0 : index
    %c0_20 = arith.constant 0 : index
    %37 = vector.load %arg7[%c0_19, %c0_20] : memref<1x32xf32, #tpu.memory_space<vmem>>, vector<1x32xf32>
    %38 = vector.broadcast %37 : vector<1x32xf32> to vector<64x32xf32>
    %39 = arith.addf %36, %38 : vector<64x32xf32>
    %cst_21 = arith.constant 0.000000e+00 : f32
    %40 = vector.broadcast %cst_21 : f32 to vector<64x32xf32>
    %41 = arith.maximumf %39, %40 : vector<64x32xf32>
    %42 = math.absf %39 : vector<64x32xf32>
    %cst_22 = arith.constant 0.000000e+00 : f32
    %43 = vector.broadcast %cst_22 : f32 to vector<64x32xf32>
    %44 = arith.subf %43, %42 : vector<64x32xf32>
    %45 = math.exp %44 : vector<64x32xf32>
    %cst_23 = arith.constant 1.000000e+00 : f32
    %46 = vector.broadcast %cst_23 : f32 to vector<64x32xf32>
    %47 = arith.addf %46, %45 : vector<64x32xf32>
    %48 = math.log %47 : vector<64x32xf32>
    %49 = arith.addf %41, %48 : vector<64x32xf32>
    %50 = math.tanh %49 : vector<64x32xf32>
    %51 = arith.mulf %39, %50 : vector<64x32xf32>
    %c0_24 = arith.constant 0 : index
    %c0_25 = arith.constant 0 : index
    %52 = vector.load %arg8[%c0_24, %c0_25] : memref<32x8xf32, #tpu.memory_space<vmem>>, vector<32x8xf32>
    %cst_26 = arith.constant dense<0.000000e+00> : vector<64x8xf32>
    %53 = tpu.matmul %51, %52, %cst_26 {dimension_numbers = #tpu.dot_dimension_numbers<[1], [0], [0], [1], [0, 0, 1, 1], [], []>, precision = #tpu.contract_precision<fp32>} : vector<64x32xf32>, vector<32x8xf32>, vector<64x8xf32> -> vector<64x8xf32>
    %c0_27 = arith.constant 0 : index
    %c0_28 = arith.constant 0 : index
    %54 = vector.load %arg9[%c0_27, %c0_28] : memref<1x8xf32, #tpu.memory_space<vmem>>, vector<1x8xf32>
    %55 = vector.broadcast %54 : vector<1x8xf32> to vector<64x8xf32>
    %56 = arith.addf %53, %55 : vector<64x8xf32>
    %c0_29 = arith.constant 0 : index
    %c0_30 = arith.constant 0 : index
    %57 = vector.load %arg10[%c0_29, %c0_30] : memref<64x8xf32, #tpu.memory_space<vmem>>, vector<64x8xf32>
    tpu.vector_store %arg10[%c0_29, %c0_30], %56 {strides = array<i32>} : memref<64x8xf32, #tpu.memory_space<vmem>>, vector<64x8xf32>,
    return
  }
  func.func @transform_0(%arg0: i32) -> (i32, i32) {
    %c0_i32 = arith.constant 0 : i32
    %c0_i32_0 = arith.constant 0 : i32
    return %arg0, %c0_i32 : i32, i32
  }
  func.func @transform_1(%arg0: i32) -> (i32, i32) {
    %c0_i32 = arith.constant 0 : i32
    %c0_i32_0 = arith.constant 0 : i32
    %c0_i32_1 = arith.constant 0 : i32
    return %c0_i32, %c0_i32_0 : i32, i32
  }
  func.func @transform_2(%arg0: i32) -> (i32, i32) {
    %c0_i32 = arith.constant 0 : i32
    %c0_i32_0 = arith.constant 0 : i32
    %c0_i32_1 = arith.constant 0 : i32
    return %c0_i32, %c0_i32_0 : i32, i32
  }
  func.func @transform_3(%arg0: i32) -> (i32, i32) {
    %c0_i32 = arith.constant 0 : i32
    %c0_i32_0 = arith.constant 0 : i32
    %c0_i32_1 = arith.constant 0 : i32
    return %c0_i32, %c0_i32_0 : i32, i32
  }
  func.func @transform_4(%arg0: i32) -> (i32, i32) {
    %c0_i32 = arith.constant 0 : i32
    %c0_i32_0 = arith.constant 0 : i32
    %c0_i32_1 = arith.constant 0 : i32
    return %c0_i32, %c0_i32_0 : i32, i32
  }
  func.func @transform_5(%arg0: i32) -> (i32, i32) {
    %c0_i32 = arith.constant 0 : i32
    %c0_i32_0 = arith.constant 0 : i32
    %c0_i32_1 = arith.constant 0 : i32
    return %c0_i32, %c0_i32_0 : i32, i32
  }
  func.func @transform_6(%arg0: i32) -> (i32, i32) {
    %c0_i32 = arith.constant 0 : i32
    %c0_i32_0 = arith.constant 0 : i32
    %c0_i32_1 = arith.constant 0 : i32
    return %c0_i32, %c0_i32_0 : i32, i32
  }
  func.func @transform_7(%arg0: i32) -> (i32, i32) {
    %c0_i32 = arith.constant 0 : i32
    %c0_i32_0 = arith.constant 0 : i32
    %c0_i32_1 = arith.constant 0 : i32
    return %c0_i32, %c0_i32_0 : i32, i32
  }
  func.func @transform_8(%arg0: i32) -> (i32, i32) {
    %c0_i32 = arith.constant 0 : i32
    %c0_i32_0 = arith.constant 0 : i32
    %c0_i32_1 = arith.constant 0 : i32
    return %c0_i32, %c0_i32_0 : i32, i32
  }
  func.func @transform_9(%arg0: i32) -> (i32, i32) {
    %c0_i32 = arith.constant 0 : i32
    %c0_i32_0 = arith.constant 0 : i32
    return %arg0, %c0_i32 : i32, i32
  }
}

</mosaic_0001>

<bundles_post_ra>
// kernel: tpu_custom_call.1
= control target key start
LH: loop header
LB: loop body
LE: loop exit
PB: predicated region body
PF: predicated region fallthrough
CT: control target
= control target key end

     0   :  { %vm49_vm0 = vcmask 130048   ;;  %vm933_vm1 = vcmask 261120   ;;  %vm3562_vm2 = vcmask 64512   ;;  %s5647_s1 = inlined_call_operand.vmem [shape: f32[16,32], index: 1, kind: input, shape index: {}]   ;;  %s5648_s0 = inlined_call_operand.vmem [shape: f32[64,16], index: 0, kind: input, shape index: {}]   ;;  %s5649_s3 = inlined_call_operand.vmem [shape: f32[32,32], index: 3, kind: input, shape index: {}]   ;;  %s5650_s2 = inlined_call_operand.vmem [shape: f32[1,32], index: 2, kind: input, shape index: {}]   ;;  %s5651_s5 = inlined_call_operand.vmem [shape: f32[32,32], index: 5, kind: input, shape index: {}]   ;;  %s5652_s4 = inlined_call_operand.vmem [shape: f32[1,32], index: 4, kind: input, shape index: {}]   ;;  %s5653_s7 = inlined_call_operand.vmem [shape: f32[32,8], index: 7, kind: input, shape index: {}]   ;;  %s5654_s6 = inlined_call_operand.vmem [shape: f32[1,32], index: 6, kind: input, shape index: {}]   ;;  %s5655_s8 = inlined_call_operand.vmem [shape: f32[1,8], index: 8, kind: input, shape index: {}]   ;;  %s5656_s9 = inlined_call_operand.vmem [shape: f32[64,8], index: 9, kind: output, shape index: {}]  }
   0x1   :  { %v40_v0 = vld [vmem:[%s5647_s1] sm:$0xff]  ;;  %v41_v1 = vld [vmem:[%s5647_s1 + $0x8] sm:$0xff]  ;;  %v34_v7 = vld [vmem:[%s5648_s0 + $0x10] sm:$0xff] }
   0x2   :  { %v32_v2 = vld [vmem:[%s5648_s0] sm:$0xff]  ;;  %v75_v3 = vand.u32 4294901760, %v40_v0  ;;  %v78_v4 = vand.u32 4294901760, %v41_v1  ;;  %v33_v6 = vld [vmem:[%s5648_s0 + $0x8] sm:$0xff]  ;;  %v35_v8 = vld [vmem:[%s5648_s0 + $0x18] sm:$0xff]  ;;  %v57_v11 = vsel %vm49_vm0, %v34_v7, 0 }
   0x3   :  { %v51_v5 = vsel %vm49_vm0, %v32_v2, 0  ;;  %v54_v10 = vsel %vm49_vm0, %v33_v6, 0  ;;  %v60_v12 = vsel %vm49_vm0, %v35_v8, 0  ;;  %v36_v13 = vld [vmem:[%s5648_s0 + $0x20] sm:$0xff]  ;;  %v37_v18 = vld [vmem:[%s5648_s0 + $0x28] sm:$0xff]  ;;  %v4906_v20 = vand.u32 4294901760, %v57_v11 }
   0x4   :  { %v4884_v9 = vand.u32 4294901760, %v51_v5  ;;  %v4892_v14 = vpack.c.bf16 %v78_v4, %v75_v3  ;;  %v4894_v15 = vand.u32 4294901760, %v54_v10  ;;  %v4896_v16 = vsub.f32 %v40_v0, %v75_v3  ;;  %v38_v39 = vld [vmem:[%s5648_s0 + $0x30] sm:$0xff]  ;;  %v39_v48 = vld [vmem:[%s5648_s0 + $0x38] sm:$0xff]  ;;  %v922_v8 = vld [vmem:[%s5649_s3] sm:$0xff] }
   0x5   :  { %v4898_v17 = vsub.f32 %v41_v1, %v78_v4  ;;  %v4908_v21 = vand.u32 4294901760, %v60_v12  ;;  %v63_v22 = vsel %vm49_vm0, %v36_v13, 0  ;;  %v4922_v28 = vsub.f32 %v57_v11, %v4906_v20  ;;  %v924_v13 = vld [vmem:[%s5649_s3 + $0x10] sm:$0xff] }
   0x6   :  { %v4904_v19 = vsub.f32 %v51_v5, %v4884_v9  ;;  %4312 = vmatprep.subr.bf16.mxu0 %v4892_v14  ;;  %v4913_v23 = vsub.f32 %v54_v10, %v4894_v15  ;;  %v224_v24 = vand.u32 4294901760, %v4896_v16  ;;  %v4917_v26 = vand.u32 4294901760, %v63_v22 }
   0x7   :  { %v231_v25 = vand.u32 4294901760, %v4898_v17  ;;  %4314 = vmatpush3.bf16.msra.mxu0 %v4892_v14  ;;  %v4925_v29 = vsub.f32 %v60_v12, %v4908_v21  ;;  %v66_v30 = vsel %vm49_vm0, %v37_v18, 0  ;;  %v163_v36 = vand.u32 4294901760, %v4922_v28 }
   0x8   :  { %v143_v27 = vand.u32 4294901760, %v4904_v19  ;;  %v153_v31 = vand.u32 4294901760, %v4913_v23  ;;  %v225_v32 = vsub.f32 %v4896_v16, %v224_v24  ;;  %v4936_v34 = vsub.f32 %v63_v22, %v4917_v26 }
   0x9   :  { %v232_v33 = vsub.f32 %v4898_v17, %v231_v25  ;;  %v173_v37 = vand.u32 4294901760, %v4925_v29  ;;  %v4943_v38 = vand.u32 4294901760, %v66_v30  ;;  %v164_v45 = vsub.f32 %v4922_v28, %v163_v36 }
   0xa   :  { %v144_v35 = vsub.f32 %v4904_v19, %v143_v27  ;;  %v154_v40 = vsub.f32 %v4913_v23, %v153_v31  ;;  %v226_v41 = vand.u32 4294901760, %v225_v32  ;;  %v183_v43 = vand.u32 4294901760, %v4936_v34 }
   0xb   :  { %v233_v42 = vand.u32 4294901760, %v232_v33  ;;  %v174_v46 = vsub.f32 %v4925_v29, %v173_v37  ;;  %v4959_v47 = vsub.f32 %v66_v30, %v4943_v38  ;;  %v69_v52 = vsel %vm49_vm0, %v38_v39, 0 }
   0xc   :  { %v145_v44 = vand.u32 4294901760, %v144_v35  ;;  %v155_v49 = vand.u32 4294901760, %v154_v40  ;;  %v184_v51 = vsub.f32 %v4936_v34, %v183_v43  ;;  %v165_v53 = vand.u32 4294901760, %v164_v45  ;;  %v3575_v40 = vld [vmem:[%s5650_s2] ss:$0 sm:$0xff] }
   0xd   :  { %v4315_v50 = vpack.c.bf16 %v233_v42, %v226_v41  ;;  %v193_v54 = vand.u32 4294901760, %v4959_v47  ;;  %v4969_v55 = vand.u32 4294901760, %v69_v52  ;;  %v175_v56 = vand.u32 4294901760, %v174_v46 }
   0xe   :  { %3859 = vmatprep.mubr.f32.mxu0 %v145_v44  ;;  %v72_v57 = vsel %vm49_vm0, %v39_v48, 0  ;;  %v4319_v58 = vpack.c.bf16 %v4898_v17, %v4896_v16  ;;  %v185_v59 = vand.u32 4294901760, %v184_v51  ;;  %v4327_v7 = vpack.c.bf16 %v231_v25, %v224_v24 }
   0xf   :  { %3860 = vmatmul.mubr.f32.vlgmr.msra.gmra.mrb[0].mxu0 %v155_v49  ;;  %4316 = vmatprep.subr.bf16.mxu0 %v4315_v50  ;;  %v194_v60 = vsub.f32 %v4959_v47, %v193_v54  ;;  %v202_v61 = vsub.f32 %v69_v52, %v4969_v55  ;;  %v211_v62 = vand.u32 4294901760, %v72_v57  ;;  %v959_v10 = vand.u32 4294901760, %v922_v8 }
  0x10   :  { %4318 = vmatpush3.bf16.msra.mxu0 %v4315_v50  ;;  %3862 = vmatprep.mubr.f32.mxu0 %v165_v53 }
  0x11   :  { %4320 = vmatprep.subr.bf16.mxu0 %v4319_v58  ;;  %v203_v63 = vand.u32 4294901760, %v202_v61  ;;  %v212_v0 = vsub.f32 %v72_v57, %v211_v62  ;;  %v195_v1 = vand.u32 4294901760, %v194_v60  ;;  %v1109_v18 = vsub.f32 %v922_v8, %v959_v10 }
  0x13   :  { %3863 = vmatmul.mubr.f32.gmra.mrb[2].mxu0 %v175_v56  ;;  %v204_v2 = vsub.f32 %v202_v61, %v203_v63  ;;  %v213_v3 = vand.u32 4294901760, %v212_v0 }
  0x14   :  { %3865 = vmatprep.mubr.f32.mxu0 %v185_v59 }
  0x15   :  { %v205_v4 = vand.u32 4294901760, %v204_v2  ;;  %v214_v5 = vsub.f32 %v212_v0, %v213_v3 }
  0x17   :  { %3866 = vmatmul.mubr.f32.gmra.mrb[4].mxu0 %v195_v1  ;;  %v215_v6 = vand.u32 4294901760, %v214_v5 }
  0x18   :  { %3868 = vmatprep.mubr.f32.mxu0 %v205_v4 }
  0x1b   :  { %3869 = vmatmul.mubr.f32.gmra.mrb[6].mxu0 %v215_v6 }
  0x1c   :  { %3875 = vmatprep.mubr.f32.mxu0 %v4884_v9 }
  0x1f   :  { %3876 = vmatmul.mubr.f32.vlgmr.msra.gmra.mrb[0].mxu0 %v4894_v15 }
  0x20   :  { %4322 = vmatpush3.bf16.msra.mxu0 %v4319_v58  ;;  %3878 = vmatprep.mubr.f32.mxu0 %v4906_v20 }
  0x21   :  { %4324 = vmatprep.subr.bf16.mxu0 %v4892_v14 }
  0x23   :  { %3879 = vmatmul.mubr.f32.gmra.mrb[2].mxu0 %v4908_v21 }
  0x24   :  { %3881 = vmatprep.mubr.f32.mxu0 %v4917_v26 }
  0x27   :  { %3882 = vmatmul.mubr.f32.gmra.mrb[4].mxu0 %v4943_v38 }
  0x28   :  { %3884 = vmatprep.mubr.f32.mxu0 %v4969_v55 }
  0x2b   :  { %3885 = vmatmul.mubr.f32.gmra.mrb[6].mxu0 %v211_v62 }
  0x2c   :  { %3891 = vmatprep.mubr.f32.mxu0 %v4904_v19 }
  0x2f   :  { %3892 = vmatmul.mubr.f32.vlgmr.msra.gmra.mrb[0].mxu0 %v4913_v23 }
  0x30   :  { %4326 = vmatpush3.bf16.msra.mxu0 %v4892_v14  ;;  %3894 = vmatprep.mubr.f32.mxu0 %v4922_v28 }
  0x31   :  { %4328 = vmatprep.subr.bf16.mxu0 %v4327_v7 }
  0x33   :  { %3895 = vmatmul.mubr.f32.gmra.mrb[2].mxu0 %v4925_v29 }
  0x34   :  { %3897 = vmatprep.mubr.f32.mxu0 %v4936_v34 }
  0x37   :  { %3898 = vmatmul.mubr.f32.gmra.mrb[4].mxu0 %v4959_v47 }
  0x38   :  { %3900 = vmatprep.mubr.f32.mxu0 %v202_v61 }
  0x3b   :  { %3901 = vmatmul.mubr.f32.gmra.mrb[6].mxu0 %v212_v0 }
  0x3c   :  { %3907 = vmatprep.mubr.f32.mxu0 %v143_v27 }
  0x3f   :  { %3908 = vmatmul.mubr.f32.vlgmr.msra.gmra.mrb[0].mxu0 %v153_v31 }
  0x40   :  { %4330 = vmatpush3.bf16.msra.mxu0 %v4327_v7  ;;  %3910 = vmatprep.mubr.f32.mxu0 %v163_v36 }
  0x41   :  { %4332 = vmatprep.subr.bf16.mxu0 %v4892_v14 }
  0x43   :  { %3911 = vmatmul.mubr.f32.gmra.mrb[2].mxu0 %v173_v37 }
  0x44   :  { %3913 = vmatprep.mubr.f32.mxu0 %v183_v43 }
  0x47   :  { %3914 = vmatmul.mubr.f32.gmra.mrb[4].mxu0 %v193_v54 }
  0x48   :  { %3916 = vmatprep.mubr.f32.mxu0 %v203_v63 }
  0x4b   :  { %3917 = vmatmul.mubr.f32.gmra.mrb[6].mxu0 %v213_v3 }
  0x4c   :  { %3923 = vmatprep.mubr.f32.mxu0 %v4884_v9 }
  0x4f   :  { %3924 = vmatmul.mubr.f32.vlgmr.msra.gmra.mrb[0].mxu0 %v4894_v15 }
  0x50   :  { %4334 = vmatpush3.bf16.msra.mxu0 %v4892_v14  ;;  %3926 = vmatprep.mubr.f32.mxu0 %v4906_v20  ;;  %v925_v14 = vld [vmem:[%s5649_s3 + $0x18] sm:$0xff] }
  0x51   :  { %v968_v16 = vand.u32 4294901760, %v925_v14 }
  0x53   :  { %3927 = vmatmul.mubr.f32.gmra.mrb[2].mxu0 %v4908_v21  ;;  %v1130_v25 = vsub.f32 %v925_v14, %v968_v16 }
  0x54   :  { %3929 = vmatprep.mubr.f32.mxu0 %v4917_v26 }
  0x55   :  { %v1131_v29 = vand.u32 4294901760, %v1130_v25 }
  0x57   :  { %3930 = vmatmul.mubr.f32.gmra.mrb[4].mxu0 %v4943_v38  ;;  %v1132_v32 = vsub.f32 %v1130_v25, %v1131_v29 }
  0x58   :  { %3932 = vmatprep.mubr.f32.mxu0 %v4969_v55 }
  0x59   :  { %v1133_v34 = vand.u32 4294901760, %v1132_v32 }
  0x5b   :  { %3933 = vmatmul.mubr.f32.gmra.mrb[6].mxu0 %v211_v62 }
  0x5c   :  { %3939 = vmatprep.mubr.f32.mxu0 %v4884_v9  ;;  %v923_v9 = vld [vmem:[%s5649_s3 + $0x8] sm:$0xff] }
  0x5d   :  { %v962_v11 = vand.u32 4294901760, %v923_v9 }
  0x5f   :  { %3940 = vmatmul.mubr.f32.vlgmr.msra.gmra.mrb[0].mxu0 %v4894_v15  ;;  %v5027_v12 = vpack.c.bf16 %v962_v11, %v959_v10  ;;  %v965_v15 = vand.u32 4294901760, %v924_v13  ;;  %v1116_v19 = vsub.f32 %v923_v9, %v962_v11 }
  0x60   :  { %3942 = vmatprep.mubr.f32.mxu0 %v4906_v20  ;;  %v1110_v20 = vand.u32 4294901760, %v1109_v18 }
  0x61   :  { %4336 = vmatprep.subr.bf16.mxu1 %v5027_v12  ;;  %v5037_v17 = vpack.c.bf16 %v968_v16, %v965_v15  ;;  %v1123_v24 = vsub.f32 %v924_v13, %v965_v15  ;;  %v5046_v36 = vpack.c.bf16 %v1116_v19, %v1109_v18 }
  0x62   :  { %4338 = vmatpush3.bf16.msra.mxu1 %v5027_v12  ;;  %v1111_v22 = vsub.f32 %v1109_v18, %v1110_v20 }
  0x63   :  { %3943 = vmatmul.mubr.f32.gmra.mrb[2].mxu0 %v4908_v21  ;;  %4340 = vmatprep.subr.bf16.mxu1 %v5037_v17  ;;  %v1117_v21 = vand.u32 4294901760, %v1116_v19  ;;  %v1124_v28 = vand.u32 4294901760, %v1123_v24  ;;  %v5048_v37 = vpack.c.bf16 %v1130_v25, %v1123_v24 }
  0x64   :  { %3945 = vmatprep.mubr.f32.mxu0 %v4917_v26  ;;  %v1112_v26 = vand.u32 4294901760, %v1111_v22 }
  0x65   :  { %v1118_v23 = vsub.f32 %v1116_v19, %v1117_v21  ;;  %v1125_v31 = vsub.f32 %v1123_v24, %v1124_v28  ;;  %v5052_v39 = vpack.c.bf16 %v1131_v29, %v1124_v28 }
  0x66   :  { %4342 = vmatpush3.bf16.msra.mxu1 %v5037_v17 }
  0x67   :  { %3946 = vmatmul.mubr.f32.gmra.mrb[4].mxu0 %v4943_v38  ;;  %v1119_v27 = vand.u32 4294901760, %v1118_v23  ;;  %v1126_v33 = vand.u32 4294901760, %v1125_v31  ;;  %v5050_v38 = vpack.c.bf16 %v1117_v21, %v1110_v20 }
  0x68   :  { %3948 = vmatprep.mubr.f32.mxu0 %v4969_v55 }
  0x69   :  { %v5041_v30 = vpack.c.bf16 %v1119_v27, %v1112_v26  ;;  %v5044_v35 = vpack.c.bf16 %v1133_v34, %v1126_v33 }
  0x6b   :  { %3949 = vmatmul.mubr.f32.gmra.mrb[6].mxu0 %v211_v62  ;;  %4344 = vmatprep.subr.bf16.mxu1 %v5041_v30 }
 0x132   :  { %v3941_v41 = vpop.f32.mrb[0].mxu0 }
 0x133   :  { %v5057_v42 = vadd.f32 %v3941_v41, %v3575_v40  ;;  %v788_v43 = vpop.f32.mrb[1].mxu0 }
 0x134   :  { %v5059_v44 = vadd.f32 %v3575_v40, %v788_v43 }
 0x135   :  { %v843_v45 = vand.u32 2147483647, %v5057_v42  ;;  %v835_v41 = vmax.f32 %v5057_v42, 0.0 }
 0x136   :  { %v842_v46 = vand.u32 2147483647, %v5059_v44  ;;  %v3944_v47 = vpop.f32.mrb[2].mxu0 }
 0x137   :  { %v851_v48 = vsub.f32 0.0, %v843_v45  ;;  %v5063_v49 = vadd.f32 %v3944_v47, %v3575_v40  ;;  %v800_v50 = vpop.f32.mrb[3].mxu0 }
 0x138   :  { %v850_v51 = vsub.f32 0.0, %v842_v46  ;;  %v5065_v52 = vadd.f32 %v3575_v40, %v800_v50  ;;  %v834_v46 = vmax.f32 %v5059_v44, 0.0 }
 0x139   :  { %v860_v53 = vmul.f32 1.442695, %v851_v48  ;;  %v845_v54 = vand.u32 2147483647, %v5063_v49 }
 0x13a   :  { %v858_v55 = vmul.f32 1.442695, %v850_v51  ;;  %v844_v56 = vand.u32 2147483647, %v5065_v52  ;;  %v3947_v57 = vpop.f32.mrb[4].mxu0 }
 0x13b   :  { %4671 = vpow2.f32 %v860_v53  ;;  %v853_v58 = vsub.f32 0.0, %v845_v54  ;;  %v5069_v59 = vadd.f32 %v3947_v57, %v3575_v40  ;;  %v812_v60 = vpop.f32.mrb[5].mxu0  ;;  %v836_v57 = vmax.f32 %v5065_v52, 0.0 }
 0x13c   :  { %4673 = vpow2.f32 %v858_v55  ;;  %v852_v61 = vsub.f32 0.0, %v844_v56  ;;  %v5071_v62 = vadd.f32 %v3575_v40, %v812_v60  ;;  %v837_v55 = vmax.f32 %v5063_v49, 0.0 }
 0x13d   :  { %v864_v63 = vmul.f32 1.442695, %v853_v58  ;;  %v847_v0 = vand.u32 2147483647, %v5069_v59 }
 0x13e   :  { %v862_v1 = vmul.f32 1.442695, %v852_v61  ;;  %v846_v2 = vand.u32 2147483647, %v5071_v62  ;;  %v3950_v3 = vpop.f32.mrb[6].mxu0 }
 0x13f   :  { %4675 = vpow2.f32 %v864_v63  ;;  %v855_v4 = vsub.f32 0.0, %v847_v0  ;;  %v5075_v5 = vadd.f32 %v3950_v3, %v3575_v40  ;;  %v824_v6 = vpop.f32.mrb[7].mxu0  ;;  %v838_v3 = vmax.f32 %v5071_v62, 0.0 }
 0x140   :  { %4677 = vpow2.f32 %v862_v1  ;;  %v854_v7 = vsub.f32 0.0, %v846_v2  ;;  %v5077_v8 = vadd.f32 %v3575_v40, %v824_v6  ;;  %v839_v1 = vmax.f32 %v5069_v59, 0.0 }
 0x141   :  { %v868_v9 = vmul.f32 1.442695, %v855_v4  ;;  %v849_v10 = vand.u32 2147483647, %v5075_v5 }
 0x142   :  { %v866_v11 = vmul.f32 1.442695, %v854_v7  ;;  %v848_v13 = vand.u32 2147483647, %v5077_v8 }
 0x143   :  { %4679 = vpow2.f32 %v868_v9  ;;  %v857_v14 = vsub.f32 0.0, %v849_v10  ;;  %v841_v10 = vmax.f32 %v5075_v5, 0.0 }
 0x144   :  { %4681 = vpow2.f32 %v866_v11  ;;  %v856_v15 = vsub.f32 0.0, %v848_v13 }
 0x145   :  { %v4672_v16 = vpop.eup %4671  ;;  %v872_v18 = vmul.f32 1.442695, %v857_v14 }
 0x146   :  { %v4674_v19 = vpop.eup %4673  ;;  %v875_v20 = vadd.f32 1.0, %v4672_v16  ;;  %v870_v21 = vmul.f32 1.442695, %v856_v15 }
 0x147   :  { %v874_v22 = vadd.f32 1.0, %v4674_v19  ;;  %4683 = vpow2.f32 %v872_v18 }
 0x148   :  { %4685 = vlog2.f32 %v875_v20 }
 0x149   :  { %v4676_v23 = vpop.eup %4675  ;;  %4687 = vlog2.f32 %v874_v22 }
 0x14a   :  { %v4678_v24 = vpop.eup %4677  ;;  %v877_v25 = vadd.f32 1.0, %v4676_v23  ;;  %4689 = vpow2.f32 %v870_v21  ;;  %v840_v21 = vmax.f32 %v5077_v8, 0.0 }
 0x14b   :  { %v876_v26 = vadd.f32 1.0, %v4678_v24 }
 0x14c   :  { %4691 = vlog2.f32 %v877_v25 }
 0x14d   :  { %v4680_v27 = vpop.eup %4679  ;;  %4693 = vlog2.f32 %v876_v26 }
 0x14e   :  { %v4682_v28 = vpop.eup %4681  ;;  %v879_v29 = vadd.f32 1.0, %v4680_v27 }
 0x14f   :  { %v878_v31 = vadd.f32 1.0, %v4682_v28 }
 0x150   :  { %4695 = vlog2.f32 %v879_v29 }
 0x151   :  { %v4684_v32 = vpop.eup %4683  ;;  %4697 = vlog2.f32 %v878_v31 }
 0x152   :  { %v4686_v33 = vpop.eup %4685  ;;  %v881_v34 = vadd.f32 1.0, %v4684_v32 }
 0x153   :  { %v4688_v40 = vpop.eup %4687  ;;  %v885_v43 = vmul.f32 0.6931472, %v4686_v33 }
 0x154   :  { %v4690_v45 = vpop.eup %4689  ;;  %v883_v47 = vmul.f32 0.6931472, %v4688_v40  ;;  %4699 = vlog2.f32 %v881_v34 }
 0x155   :  { %v899_v48 = vadd.f32 %v885_v43, %v835_v41  ;;  %v880_v50 = vadd.f32 1.0, %v4690_v45 }
 0x156   :  { %v4692_v51 = vpop.eup %4691  ;;  %v898_v53 = vadd.f32 %v883_v47, %v834_v46 }
 0x157   :  { %v4694_v54 = vpop.eup %4693  ;;  %4701 = vtanh.f32 %v899_v48  ;;  %v889_v56 = vmul.f32 0.6931472, %v4692_v51 }
 0x158   :  { %4703 = vtanh.f32 %v898_v53  ;;  %v887_v58 = vmul.f32 0.6931472, %v4694_v54 }
 0x159   :  { %v901_v60 = vadd.f32 %v889_v56, %v837_v55  ;;  %4705 = vlog2.f32 %v880_v50 }
 0x15a   :  { %v4696_v61 = vpop.eup %4695  ;;  %v900_v63 = vadd.f32 %v887_v58, %v836_v57 }
 0x15b   :  { %v4698_v0 = vpop.eup %4697  ;;  %4707 = vtanh.f32 %v901_v60  ;;  %v893_v2 = vmul.f32 0.6931472, %v4696_v61 }
 0x15c   :  { %4709 = vtanh.f32 %v900_v63  ;;  %v891_v4 = vmul.f32 0.6931472, %v4698_v0 }
 0x15d   :  { %v903_v6 = vadd.f32 %v893_v2, %v839_v1 }
 0x15e   :  { %v4700_v7 = vpop.eup %4699  ;;  %v902_v9 = vadd.f32 %v891_v4, %v838_v3 }
 0x15f   :  { %4711 = vtanh.f32 %v903_v6  ;;  %v897_v11 = vmul.f32 0.6931472, %v4700_v7 }
 0x160   :  { %4713 = vtanh.f32 %v902_v9 }
 0x161   :  { %v4702_v13 = vpop.eup %4701  ;;  %v905_v14 = vadd.f32 %v897_v11, %v841_v10 }
 0x162   :  { %v4704_v15 = vpop.eup %4703  ;;  %v915_v16 = vmul.f32 %v4702_v13, %v5057_v42 }
 0x163   :  { %v4706_v18 = vpop.eup %4705  ;;  %v914_v19 = vmul.f32 %v4704_v15, %v5059_v44  ;;  %4715 = vtanh.f32 %v905_v14 }
 0x164   :  { %v938_v20 = vsel %vm933_vm1, %v915_v16, 0  ;;  %v895_v22 = vmul.f32 0.6931472, %v4706_v18 }
 0x165   :  { %v4708_v23 = vpop.eup %4707  ;;  %v5092_v24 = vand.u32 4294901760, %v938_v20  ;;  %v935_v25 = vsel %vm933_vm1, %v914_v19, 0 }
 0x166   :  { %v4710_v26 = vpop.eup %4709  ;;  %v917_v27 = vmul.f32 %v4708_v23, %v5063_v49  ;;  %v904_v28 = vadd.f32 %v895_v22, %v840_v21  ;;  %v5096_v29 = vand.u32 4294901760, %v935_v25 }
 0x167   :  { %v5099_v42 = vsub.f32 %v938_v20, %v5092_v24  ;;  %v916_v44 = vmul.f32 %v4710_v26, %v5065_v52 }
 0x168   :  { %v944_v31 = vsel %vm933_vm1, %v917_v27, 0  ;;  %4717 = vtanh.f32 %v904_v28  ;;  %v5104_v32 = vsub.f32 %v935_v25, %v5096_v29 }
 0x169   :  { %v4712_v33 = vpop.eup %4711  ;;  %v5106_v34 = vand.u32 4294901760, %v944_v31  ;;  %v941_v40 = vsel %vm933_vm1, %v916_v44, 0  ;;  %v1039_v49 = vand.u32 4294901760, %v5099_v42 }
 0x16a   :  { %v4714_v41 = vpop.eup %4713  ;;  %v5110_v43 = vand.u32 4294901760, %v941_v40  ;;  %v919_v45 = vmul.f32 %v4712_v33, %v5069_v59  ;;  %v1029_v52 = vand.u32 4294901760, %v5104_v32 }
 0x16b   :  { %v5115_v46 = vsub.f32 %v944_v31, %v5106_v34  ;;  %v918_v47 = vmul.f32 %v4714_v41, %v5071_v62  ;;  %v1040_v48 = vsub.f32 %v5099_v42, %v1039_v49 }
 0x16c   :  { %v5122_v50 = vsub.f32 %v941_v40, %v5110_v43  ;;  %v950_v51 = vsel %vm933_vm1, %v919_v45, 0  ;;  %v1030_v59 = vsub.f32 %v5104_v32, %v1029_v52 }
 0x16d   :  { %v4716_v53 = vpop.eup %4715  ;;  %v5128_v54 = vand.u32 4294901760, %v950_v51  ;;  %v947_v55 = vsel %vm933_vm1, %v918_v47, 0  ;;  %v1059_v62 = vand.u32 4294901760, %v5115_v46  ;;  %v1041_v63 = vand.u32 4294901760, %v1040_v48 }
 0x16e   :  { %v5132_v56 = vand.u32 4294901760, %v947_v55  ;;  %v921_v57 = vmul.f32 %v4716_v53, %v5075_v5  ;;  %v1031_v58 = vand.u32 4294901760, %v1030_v59  ;;  %v1049_v60 = vand.u32 4294901760, %v5122_v50 }
 0x16f   :  { %v5137_v61 = vsub.f32 %v950_v51, %v5128_v54  ;;  %v1060_v0 = vsub.f32 %v5115_v46, %v1059_v62 }
 0x170   :  { %v5143_v1 = vsub.f32 %v947_v55, %v5132_v56  ;;  %v956_v2 = vsel %vm933_vm1, %v921_v57, 0  ;;  %3959 = vmatprep.mubr.f32.mxu1 %v1031_v58  ;;  %v1050_v5 = vsub.f32 %v5122_v50, %v1049_v60 }
 0x171   :  { %v5149_v3 = vand.u32 4294901760, %v956_v2  ;;  %3960 = vmatmul.mubr.f32.vlgmr.msra.gmra.mrb[0].mxu1 %v1041_v63  ;;  %v1079_v4 = vand.u32 4294901760, %v5137_v61  ;;  %v1061_v13 = vand.u32 4294901760, %v1060_v0 }
 0x172   :  { %v4718_v6 = vpop.eup %4717  ;;  %4346 = vmatpush3.bf16.msra.mxu1 %v5041_v30  ;;  %v1051_v7 = vand.u32 4294901760, %v1050_v5  ;;  %v1069_v9 = vand.u32 4294901760, %v5143_v1 }
 0x173   :  { %v1098_v10 = vsub.f32 %v956_v2, %v5149_v3  ;;  %v920_v11 = vmul.f32 %v4718_v6, %v5077_v8  ;;  %v1080_v14 = vsub.f32 %v5137_v61, %v1079_v4  ;;  %4348 = vmatprep.subr.bf16.mxu1 %v5044_v35 }
 0x174   :  { %3962 = vmatprep.mubr.f32.mxu1 %v1051_v7  ;;  %v1070_v15 = vsub.f32 %v5143_v1, %v1069_v9 }
 0x175   :  { %v953_v16 = vsel %vm933_vm1, %v920_v11, 0  ;;  %3963 = vmatmul.mubr.f32.gmra.mrb[2].mxu1 %v1061_v13  ;;  %v1081_v19 = vand.u32 4294901760, %v1080_v14  ;;  %v1099_v20 = vand.u32 4294901760, %v1098_v10 }
 0x176   :  { %v5160_v18 = vand.u32 4294901760, %v953_v16  ;;  %v1071_v30 = vand.u32 4294901760, %v1070_v15  ;;  %4350 = vmatpush3.bf16.msra.mxu1 %v5044_v35 }
 0x177   :  { %4352 = vmatprep.subr.bf16.mxu1 %v5046_v36  ;;  %v1100_v22 = vsub.f32 %v1098_v10, %v1099_v20 }
 0x178   :  { %v1088_v8 = vsub.f32 %v953_v16, %v5160_v18  ;;  %3965 = vmatprep.mubr.f32.mxu1 %v1071_v30 }
 0x179   :  { %3966 = vmatmul.mubr.f32.gmra.mrb[4].mxu1 %v1081_v19  ;;  %v1101_v26 = vand.u32 4294901760, %v1100_v22 }
 0x17a   :  { %v1089_v21 = vand.u32 4294901760, %v1088_v8 }
 0x17c   :  { %v1090_v23 = vsub.f32 %v1088_v8, %v1089_v21 }
 0x17e   :  { %v1091_v25 = vand.u32 4294901760, %v1090_v23 }
 0x180   :  { %3968 = vmatprep.mubr.f32.mxu1 %v1091_v25 }
 0x181   :  { %3969 = vmatmul.mubr.f32.gmra.mrb[6].mxu1 %v1101_v26 }
 0x182   :  { %3979 = vmatprep.mubr.f32.mxu1 %v5096_v29 }
 0x185   :  { %3980 = vmatmul.mubr.f32.vlgmr.msra.gmra.mrb[0].mxu1 %v5092_v24 }
 0x186   :  { %3982 = vmatprep.mubr.f32.mxu1 %v5110_v43  ;;  %4354 = vmatpush3.bf16.msra.mxu1 %v5046_v36 }
 0x187   :  { %4356 = vmatprep.subr.bf16.mxu1 %v5048_v37 }
 0x189   :  { %3983 = vmatmul.mubr.f32.gmra.mrb[2].mxu1 %v5106_v34 }
 0x18a   :  { %3985 = vmatprep.mubr.f32.mxu1 %v5132_v56  ;;  %4358 = vmatpush3.bf16.msra.mxu1 %v5048_v37 }
 0x18b   :  { %4360 = vmatprep.subr.bf16.mxu1 %v5027_v12 }
 0x18d   :  { %3986 = vmatmul.mubr.f32.gmra.mrb[4].mxu1 %v5128_v54 }
 0x18e   :  { %3988 = vmatprep.mubr.f32.mxu1 %v5160_v18 }
 0x191   :  { %3989 = vmatmul.mubr.f32.gmra.mrb[6].mxu1 %v5149_v3 }
 0x192   :  { %3999 = vmatprep.mubr.f32.mxu1 %v5104_v32 }
 0x195   :  { %4000 = vmatmul.mubr.f32.vlgmr.msra.gmra.mrb[0].mxu1 %v5099_v42 }
 0x196   :  { %4002 = vmatprep.mubr.f32.mxu1 %v5122_v50  ;;  %4362 = vmatpush3.bf16.msra.mxu1 %v5027_v12 }
 0x197   :  { %4364 = vmatprep.subr.bf16.mxu1 %v5037_v17 }
 0x199   :  { %4003 = vmatmul.mubr.f32.gmra.mrb[2].mxu1 %v5115_v46 }
 0x19a   :  { %4005 = vmatprep.mubr.f32.mxu1 %v5143_v1  ;;  %4366 = vmatpush3.bf16.msra.mxu1 %v5037_v17 }
 0x19b   :  { %4368 = vmatprep.subr.bf16.mxu1 %v5050_v38 }
 0x19d   :  { %4006 = vmatmul.mubr.f32.gmra.mrb[4].mxu1 %v5137_v61 }
 0x19e   :  { %4008 = vmatprep.mubr.f32.mxu1 %v1088_v8 }
 0x1a1   :  { %4009 = vmatmul.mubr.f32.gmra.mrb[6].mxu1 %v1098_v10 }
 0x1a2   :  { %4019 = vmatprep.mubr.f32.mxu1 %v1029_v52 }
 0x1a5   :  { %4020 = vmatmul.mubr.f32.vlgmr.msra.gmra.mrb[0].mxu1 %v1039_v49 }
 0x1a6   :  { %4022 = vmatprep.mubr.f32.mxu1 %v1049_v60  ;;  %4370 = vmatpush3.bf16.msra.mxu1 %v5050_v38  ;;  %v1834_v38 = vld [vmem:[%s5651_s5 + $0x10] sm:$0xff] }
 0x1a7   :  { %4372 = vmatprep.subr.bf16.mxu1 %v5052_v39 }
 0x1a9   :  { %4023 = vmatmul.mubr.f32.gmra.mrb[2].mxu1 %v1059_v62  ;;  %v3576_v62 = vld [vmem:[%s5652_s4] ss:$0 sm:$0xff] }
 0x1aa   :  { %4025 = vmatprep.mubr.f32.mxu1 %v1069_v9  ;;  %4374 = vmatpush3.bf16.msra.mxu1 %v5052_v39  ;;  %v1835_v39 = vld [vmem:[%s5651_s5 + $0x18] sm:$0xff] }
 0x1ab   :  { %4376 = vmatprep.subr.bf16.mxu1 %v5027_v12  ;;  %v1877_v27 = vand.u32 4294901760, %v1835_v39 }
 0x1ad   :  { %4026 = vmatmul.mubr.f32.gmra.mrb[4].mxu1 %v1079_v4  ;;  %v2039_v40 = vsub.f32 %v1835_v39, %v1877_v27 }
 0x1ae   :  { %4028 = vmatprep.mubr.f32.mxu1 %v1089_v21 }
 0x1af   :  { %v2040_v45 = vand.u32 4294901760, %v2039_v40 }
 0x1b1   :  { %4029 = vmatmul.mubr.f32.gmra.mrb[6].mxu1 %v1099_v20  ;;  %v2041_v47 = vsub.f32 %v2039_v40, %v2040_v45 }
 0x1b2   :  { %4039 = vmatprep.mubr.f32.mxu1 %v5096_v29 }
 0x1b3   :  { %v2042_v50 = vand.u32 4294901760, %v2041_v47 }
 0x1b5   :  { %4040 = vmatmul.mubr.f32.vlgmr.msra.gmra.mrb[0].mxu1 %v5092_v24 }
 0x1b6   :  { %4042 = vmatprep.mubr.f32.mxu1 %v5110_v43  ;;  %4378 = vmatpush3.bf16.msra.mxu1 %v5027_v12  ;;  %v1832_v12 = vld [vmem:[%s5651_s5] sm:$0xff] }
 0x1b7   :  { %4380 = vmatprep.subr.bf16.mxu1 %v5037_v17  ;;  %v1868_v35 = vand.u32 4294901760, %v1832_v12 }
 0x1b9   :  { %4043 = vmatmul.mubr.f32.gmra.mrb[2].mxu1 %v5106_v34 }
 0x1ba   :  { %4045 = vmatprep.mubr.f32.mxu1 %v5132_v56  ;;  %4382 = vmatpush3.bf16.msra.mxu1 %v5037_v17  ;;  %v1833_v17 = vld [vmem:[%s5651_s5 + $0x8] sm:$0xff] }
 0x1bb   :  { %v1871_v36 = vand.u32 4294901760, %v1833_v17 }
 0x1bd   :  { %4046 = vmatmul.mubr.f32.gmra.mrb[4].mxu1 %v5128_v54  ;;  %v5224_v37 = vpack.c.bf16 %v1871_v36, %v1868_v35  ;;  %v2025_v42 = vsub.f32 %v1833_v17, %v1871_v36 }
 0x1be   :  { %4048 = vmatprep.mubr.f32.mxu1 %v5160_v18 }
 0x1bf   :  { %4384 = vmatprep.subr.bf16.mxu0 %v5224_v37  ;;  %v2026_v31 = vand.u32 4294901760, %v2025_v42 }
 0x1c0   :  { %4386 = vmatpush3.bf16.msra.mxu0 %v5224_v37 }
 0x1c1   :  { %4049 = vmatmul.mubr.f32.gmra.mrb[6].mxu1 %v5149_v3  ;;  %v2027_v33 = vsub.f32 %v2025_v42, %v2026_v31 }
 0x1c2   :  { %4059 = vmatprep.mubr.f32.mxu1 %v5096_v29  ;;  %v2018_v29 = vsub.f32 %v1832_v12, %v1868_v35 }
 0x1c3   :  { %v2028_v41 = vand.u32 4294901760, %v2027_v33 }
 0x1c4   :  { %v2019_v44 = vand.u32 4294901760, %v2018_v29  ;;  %v5243_v59 = vpack.c.bf16 %v2025_v42, %v2018_v29 }
 0x1c5   :  { %4060 = vmatmul.mubr.f32.vlgmr.msra.gmra.mrb[0].mxu1 %v5092_v24  ;;  %v1874_v24 = vand.u32 4294901760, %v1834_v38 }
 0x1c6   :  { %4062 = vmatprep.mubr.f32.mxu1 %v5110_v43  ;;  %v2020_v32 = vsub.f32 %v2018_v29, %v2019_v44 }
 0x1c7   :  { %v5234_v28 = vpack.c.bf16 %v1877_v27, %v1874_v24 }
 0x1c8   :  { %v2021_v49 = vand.u32 4294901760, %v2020_v32 }
 0x1c9   :  { %4063 = vmatmul.mubr.f32.gmra.mrb[2].mxu1 %v5106_v34  ;;  %4388 = vmatprep.subr.bf16.mxu0 %v5234_v28  ;;  %v2032_v34 = vsub.f32 %v1834_v38, %v1874_v24 }
 0x1ca   :  { %4065 = vmatprep.mubr.f32.mxu1 %v5132_v56  ;;  %4390 = vmatpush3.bf16.msra.mxu0 %v5234_v28  ;;  %v5238_v52 = vpack.c.bf16 %v2028_v41, %v2021_v49 }
 0x1cb   :  { %v2033_v43 = vand.u32 4294901760, %v2032_v34  ;;  %v5245_v53 = vpack.c.bf16 %v2039_v40, %v2032_v34 }
 0x1cc   :  { %4392 = vmatprep.subr.bf16.mxu0 %v5238_v52 }
 0x1cd   :  { %4066 = vmatmul.mubr.f32.gmra.mrb[4].mxu1 %v5128_v54  ;;  %v2034_v46 = vsub.f32 %v2032_v34, %v2033_v43  ;;  %v5247_v54 = vpack.c.bf16 %v2026_v31, %v2019_v44  ;;  %v5249_v55 = vpack.c.bf16 %v2040_v45, %v2033_v43 }
 0x1ce   :  { %4068 = vmatprep.mubr.f32.mxu1 %v5160_v18 }
 0x1cf   :  { %v2035_v48 = vand.u32 4294901760, %v2034_v46 }
 0x1d1   :  { %4069 = vmatmul.mubr.f32.gmra.mrb[6].mxu1 %v5149_v3  ;;  %v5241_v51 = vpack.c.bf16 %v2042_v50, %v2035_v48 }
 0x298   :  { %v4061_v56 = vpop.f32.mrb[0].mxu1 }
 0x299   :  { %v5254_v57 = vadd.f32 %v4061_v56, %v3576_v62  ;;  %v1698_v58 = vpop.f32.mrb[1].mxu1 }
 0x29a   :  { %v5256_v60 = vadd.f32 %v3576_v62, %v1698_v58 }
 0x29b   :  { %v1753_v61 = vand.u32 2147483647, %v5254_v57  ;;  %v1745_v56 = vmax.f32 %v5254_v57, 0.0 }
 0x29c   :  { %v1752_v63 = vand.u32 2147483647, %v5256_v60  ;;  %v4064_v0 = vpop.f32.mrb[2].mxu1 }
 0x29d   :  { %v1761_v1 = vsub.f32 0.0, %v1753_v61  ;;  %v5260_v2 = vadd.f32 %v4064_v0, %v3576_v62  ;;  %v1710_v5 = vpop.f32.mrb[3].mxu1 }
 0x29e   :  { %v1760_v3 = vsub.f32 0.0, %v1752_v63  ;;  %v5262_v4 = vadd.f32 %v3576_v62, %v1710_v5  ;;  %v1744_v63 = vmax.f32 %v5256_v60, 0.0 }
 0x29f   :  { %v1770_v6 = vmul.f32 1.442695, %v1761_v1  ;;  %v1755_v7 = vand.u32 2147483647, %v5260_v2 }
 0x2a0   :  { %v1768_v9 = vmul.f32 1.442695, %v1760_v3  ;;  %v1754_v10 = vand.u32 2147483647, %v5262_v4  ;;  %v4067_v11 = vpop.f32.mrb[4].mxu1 }
 0x2a1   :  { %4719 = vpow2.f32 %v1770_v6  ;;  %v1763_v13 = vsub.f32 0.0, %v1755_v7  ;;  %v5266_v14 = vadd.f32 %v4067_v11, %v3576_v62  ;;  %v1722_v15 = vpop.f32.mrb[5].mxu1  ;;  %v1746_v11 = vmax.f32 %v5262_v4, 0.0 }
 0x2a2   :  { %4721 = vpow2.f32 %v1768_v9  ;;  %v1762_v16 = vsub.f32 0.0, %v1754_v10  ;;  %v5268_v18 = vadd.f32 %v3576_v62, %v1722_v15  ;;  %v1747_v9 = vmax.f32 %v5260_v2, 0.0 }
 0x2a3   :  { %v1774_v30 = vmul.f32 1.442695, %v1763_v13  ;;  %v1757_v19 = vand.u32 2147483647, %v5266_v14 }
 0x2a4   :  { %v1772_v20 = vmul.f32 1.442695, %v1762_v16  ;;  %v1756_v8 = vand.u32 2147483647, %v5268_v18  ;;  %v4070_v21 = vpop.f32.mrb[6].mxu1 }
 0x2a5   :  { %4723 = vpow2.f32 %v1774_v30  ;;  %v1765_v22 = vsub.f32 0.0, %v1757_v19  ;;  %v5272_v23 = vadd.f32 %v4070_v21, %v3576_v62  ;;  %v1734_v25 = vpop.f32.mrb[7].mxu1  ;;  %v1748_v21 = vmax.f32 %v5268_v18, 0.0 }
 0x2a6   :  { %4725 = vpow2.f32 %v1772_v20  ;;  %v1764_v26 = vsub.f32 0.0, %v1756_v8  ;;  %v5274_v12 = vadd.f32 %v3576_v62, %v1734_v25  ;;  %v1749_v20 = vmax.f32 %v5266_v14, 0.0 }
 0x2a7   :  { %v1778_v17 = vmul.f32 1.442695, %v1765_v22  ;;  %v1759_v35 = vand.u32 2147483647, %v5272_v23 }
 0x2a8   :  { %v1776_v36 = vmul.f32 1.442695, %v1764_v26  ;;  %v1758_v38 = vand.u32 2147483647, %v5274_v12 }
 0x2a9   :  { %4727 = vpow2.f32 %v1778_v17  ;;  %v1767_v39 = vsub.f32 0.0, %v1759_v35  ;;  %v1751_v35 = vmax.f32 %v5272_v23, 0.0 }
 0x2aa   :  { %4729 = vpow2.f32 %v1776_v36  ;;  %v1766_v24 = vsub.f32 0.0, %v1758_v38 }
 0x2ab   :  { %v4720_v27 = vpop.eup %4719  ;;  %v1782_v29 = vmul.f32 1.442695, %v1767_v39 }
 0x2ac   :  { %v4722_v42 = vpop.eup %4721  ;;  %v1785_v44 = vadd.f32 1.0, %v4720_v27  ;;  %v1780_v31 = vmul.f32 1.442695, %v1766_v24 }
 0x2ad   :  { %v1784_v32 = vadd.f32 1.0, %v4722_v42  ;;  %4731 = vpow2.f32 %v1782_v29 }
 0x2ae   :  { %4733 = vlog2.f32 %v1785_v44 }
 0x2af   :  { %v4724_v33 = vpop.eup %4723  ;;  %4735 = vlog2.f32 %v1784_v32 }
 0x2b0   :  { %v4726_v34 = vpop.eup %4725  ;;  %v1787_v40 = vadd.f32 1.0, %v4724_v33  ;;  %4737 = vpow2.f32 %v1780_v31  ;;  %v1750_v31 = vmax.f32 %v5274_v12, 0.0 }
 0x2b1   :  { %v1786_v49 = vadd.f32 1.0, %v4726_v34 }
 0x2b2   :  { %4739 = vlog2.f32 %v1787_v40 }
 0x2b3   :  { %v4728_v41 = vpop.eup %4727  ;;  %4741 = vlog2.f32 %v1786_v49 }
 0x2b4   :  { %v4730_v43 = vpop.eup %4729  ;;  %v1789_v45 = vadd.f32 1.0, %v4728_v41 }
 0x2b5   :  { %v1788_v46 = vadd.f32 1.0, %v4730_v43 }
 0x2b6   :  { %4743 = vlog2.f32 %v1789_v45 }
 0x2b7   :  { %v4732_v47 = vpop.eup %4731  ;;  %4745 = vlog2.f32 %v1788_v46 }
 0x2b8   :  { %v4734_v48 = vpop.eup %4733  ;;  %v1791_v50 = vadd.f32 1.0, %v4732_v47 }
 0x2b9   :  { %v4736_v62 = vpop.eup %4735  ;;  %v1795_v58 = vmul.f32 0.6931472, %v4734_v48 }
 0x2ba   :  { %v4738_v61 = vpop.eup %4737  ;;  %v1793_v0 = vmul.f32 0.6931472, %v4736_v62  ;;  %4747 = vlog2.f32 %v1791_v50 }
 0x2bb   :  { %v1809_v1 = vadd.f32 %v1795_v58, %v1745_v56  ;;  %v1790_v5 = vadd.f32 1.0, %v4738_v61 }
 0x2bc   :  { %v4740_v3 = vpop.eup %4739  ;;  %v1808_v6 = vadd.f32 %v1793_v0, %v1744_v63 }
 0x2bd   :  { %v4742_v7 = vpop.eup %4741  ;;  %4749 = vtanh.f32 %v1809_v1  ;;  %v1799_v10 = vmul.f32 0.6931472, %v4740_v3 }
 0x2be   :  { %4751 = vtanh.f32 %v1808_v6  ;;  %v1797_v13 = vmul.f32 0.6931472, %v4742_v7 }
 0x2bf   :  { %v1811_v15 = vadd.f32 %v1799_v10, %v1747_v9  ;;  %4753 = vlog2.f32 %v1790_v5 }
 0x2c0   :  { %v4744_v16 = vpop.eup %4743  ;;  %v1810_v30 = vadd.f32 %v1797_v13, %v1746_v11 }
 0x2c1   :  { %v4746_v19 = vpop.eup %4745  ;;  %4755 = vtanh.f32 %v1811_v15  ;;  %v1803_v8 = vmul.f32 0.6931472, %v4744_v16 }
 0x2c2   :  { %4757 = vtanh.f32 %v1810_v30  ;;  %v1801_v22 = vmul.f32 0.6931472, %v4746_v19 }
 0x2c3   :  { %v1813_v25 = vadd.f32 %v1803_v8, %v1749_v20 }
 0x2c4   :  { %v4748_v26 = vpop.eup %4747  ;;  %v1812_v17 = vadd.f32 %v1801_v22, %v1748_v21 }
 0x2c5   :  { %4759 = vtanh.f32 %v1813_v25  ;;  %v1807_v36 = vmul.f32 0.6931472, %v4748_v26 }
 0x2c6   :  { %4761 = vtanh.f32 %v1812_v17 }
 0x2c7   :  { %v4750_v38 = vpop.eup %4749  ;;  %v1815_v39 = vadd.f32 %v1807_v36, %v1751_v35 }
 0x2c8   :  { %v4752_v24 = vpop.eup %4751  ;;  %v1825_v27 = vmul.f32 %v4750_v38, %v5254_v57 }
 0x2c9   :  { %v4754_v29 = vpop.eup %4753  ;;  %v1824_v42 = vmul.f32 %v4752_v24, %v5256_v60  ;;  %4763 = vtanh.f32 %v1815_v39 }
 0x2ca   :  { %v1847_v44 = vsel %vm933_vm1, %v1825_v27, 0  ;;  %v1805_v32 = vmul.f32 0.6931472, %v4754_v29 }
 0x2cb   :  { %v4756_v33 = vpop.eup %4755  ;;  %v5289_v34 = vand.u32 4294901760, %v1847_v44  ;;  %v1844_v40 = vsel %vm933_vm1, %v1824_v42, 0 }
 0x2cc   :  { %v4758_v49 = vpop.eup %4757  ;;  %v5292_v41 = vand.u32 4294901760, %v1844_v40  ;;  %v1827_v43 = vmul.f32 %v4756_v33, %v5260_v2  ;;  %v1814_v57 = vadd.f32 %v1805_v32, %v1750_v31 }
 0x2cd   :  { %v5296_v45 = vsub.f32 %v1847_v44, %v5289_v34  ;;  %v1826_v60 = vmul.f32 %v4758_v49, %v5262_v4 }
 0x2ce   :  { %v5300_v46 = vsub.f32 %v1844_v40, %v5292_v41  ;;  %v1853_v47 = vsel %vm933_vm1, %v1827_v43, 0  ;;  %4765 = vtanh.f32 %v1814_v57 }
 0x2cf   :  { %v4760_v48 = vpop.eup %4759  ;;  %v1948_v50 = vand.u32 4294901760, %v5296_v45  ;;  %v5304_v62 = vand.u32 4294901760, %v1853_v47  ;;  %v1850_v56 = vsel %vm933_vm1, %v1826_v60, 0 }
 0x2d0   :  { %v4762_v2 = vpop.eup %4761  ;;  %v5307_v58 = vand.u32 4294901760, %v1850_v56  ;;  %v1829_v61 = vmul.f32 %v4760_v48, %v5266_v14  ;;  %v1938_v4 = vand.u32 4294901760, %v5300_v46 }
 0x2d1   :  { %v5312_v63 = vsub.f32 %v1853_v47, %v5304_v62  ;;  %v1828_v0 = vmul.f32 %v4762_v2, %v5268_v18  ;;  %v1949_v1 = vsub.f32 %v5296_v45, %v1948_v50 }
 0x2d2   :  { %v5319_v5 = vsub.f32 %v1850_v56, %v5307_v58  ;;  %v1859_v3 = vsel %vm933_vm1, %v1829_v61, 0  ;;  %v1939_v14 = vsub.f32 %v5300_v46, %v1938_v4 }
 0x2d3   :  { %v4764_v6 = vpop.eup %4763  ;;  %v5325_v7 = vand.u32 4294901760, %v1859_v3  ;;  %v1856_v9 = vsel %vm933_vm1, %v1828_v0, 0  ;;  %v1968_v18 = vand.u32 4294901760, %v5312_v63  ;;  %v1950_v30 = vand.u32 4294901760, %v1949_v1 }
 0x2d4   :  { %v5329_v10 = vand.u32 4294901760, %v1856_v9  ;;  %v1831_v11 = vmul.f32 %v4764_v6, %v5272_v23  ;;  %v1940_v13 = vand.u32 4294901760, %v1939_v14  ;;  %v1958_v15 = vand.u32 4294901760, %v5319_v5 }
 0x2d5   :  { %v5334_v16 = vsub.f32 %v1859_v3, %v5325_v7  ;;  %v1969_v19 = vsub.f32 %v5312_v63, %v1968_v18 }
 0x2d6   :  { %v5340_v20 = vsub.f32 %v1856_v9, %v5329_v10  ;;  %v1865_v8 = vsel %vm933_vm1, %v1831_v11, 0  ;;  %4079 = vmatprep.mubr.f32.mxu0 %v1940_v13  ;;  %v1959_v23 = vsub.f32 %v5319_v5, %v1958_v15 }
 0x2d7   :  { %v5346_v21 = vand.u32 4294901760, %v1865_v8  ;;  %4080 = vmatmul.mubr.f32.vlgmr.msra.gmra.mrb[8].mxu0 %v1950_v30  ;;  %v1988_v22 = vand.u32 4294901760, %v5334_v16  ;;  %v1970_v38 = vand.u32 4294901760, %v1969_v19 }
 0x2d8   :  { %v4766_v25 = vpop.eup %4765  ;;  %4394 = vmatpush3.bf16.msra.mxu0 %v5238_v52  ;;  %v1960_v26 = vand.u32 4294901760, %v1959_v23  ;;  %v1978_v17 = vand.u32 4294901760, %v5340_v20 }
 0x2d9   :  { %v2007_v35 = vsub.f32 %v1865_v8, %v5346_v21  ;;  %v1830_v36 = vmul.f32 %v4766_v25, %v5274_v12  ;;  %v1989_v39 = vsub.f32 %v5334_v16, %v1988_v22  ;;  %4396 = vmatprep.subr.bf16.mxu0 %v5241_v51 }
 0x2da   :  { %4082 = vmatprep.mubr.f32.mxu0 %v1960_v26  ;;  %v1979_v24 = vsub.f32 %v5340_v20, %v1978_v17 }
 0x2db   :  { %v1862_v27 = vsel %vm933_vm1, %v1830_v36, 0  ;;  %4083 = vmatmul.mubr.f32.gmra.mrb[10].mxu0 %v1970_v38  ;;  %v1990_v42 = vand.u32 4294901760, %v1989_v39  ;;  %v2008_v44 = vand.u32 4294901760, %v2007_v35 }
 0x2dc   :  { %v5357_v29 = vand.u32 4294901760, %v1862_v27  ;;  %v1980_v52 = vand.u32 4294901760, %v1979_v24  ;;  %4398 = vmatpush3.bf16.msra.mxu0 %v5241_v51 }
 0x2dd   :  { %4400 = vmatprep.subr.bf16.mxu0 %v5243_v59  ;;  %v2009_v32 = vsub.f32 %v2007_v35, %v2008_v44 }
 0x2de   :  { %v1997_v12 = vsub.f32 %v1862_v27, %v5357_v29  ;;  %4085 = vmatprep.mubr.f32.mxu0 %v1980_v52 }
 0x2df   :  { %4086 = vmatmul.mubr.f32.gmra.mrb[12].mxu0 %v1990_v42  ;;  %v2010_v49 = vand.u32 4294901760, %v2009_v32 }
 0x2e0   :  { %v1998_v31 = vand.u32 4294901760, %v1997_v12 }
 0x2e2   :  { %v1999_v33 = vsub.f32 %v1997_v12, %v1998_v31 }
 0x2e4   :  { %v2000_v40 = vand.u32 4294901760, %v1999_v33 }
 0x2e6   :  { %4088 = vmatprep.mubr.f32.mxu0 %v2000_v40 }
 0x2e7   :  { %4089 = vmatmul.mubr.f32.gmra.mrb[14].mxu0 %v2010_v49 }
 0x2e8   :  { %4099 = vmatprep.mubr.f32.mxu0 %v5292_v41 }
 0x2eb   :  { %4100 = vmatmul.mubr.f32.vlgmr.msra.gmra.mrb[8].mxu0 %v5289_v34 }
 0x2ec   :  { %4102 = vmatprep.mubr.f32.mxu0 %v5307_v58  ;;  %4402 = vmatpush3.bf16.msra.mxu0 %v5243_v59 }
 0x2ed   :  { %4404 = vmatprep.subr.bf16.mxu0 %v5245_v53 }
 0x2ef   :  { %4103 = vmatmul.mubr.f32.gmra.mrb[10].mxu0 %v5304_v62 }
 0x2f0   :  { %4105 = vmatprep.mubr.f32.mxu0 %v5329_v10  ;;  %4406 = vmatpush3.bf16.msra.mxu0 %v5245_v53 }
 0x2f1   :  { %4408 = vmatprep.subr.bf16.mxu0 %v5224_v37 }
 0x2f3   :  { %4106 = vmatmul.mubr.f32.gmra.mrb[12].mxu0 %v5325_v7 }
 0x2f4   :  { %4108 = vmatprep.mubr.f32.mxu0 %v5357_v29 }
 0x2f7   :  { %4109 = vmatmul.mubr.f32.gmra.mrb[14].mxu0 %v5346_v21 }
 0x2f8   :  { %4119 = vmatprep.mubr.f32.mxu0 %v5300_v46 }
 0x2fb   :  { %4120 = vmatmul.mubr.f32.vlgmr.msra.gmra.mrb[8].mxu0 %v5296_v45 }
 0x2fc   :  { %4122 = vmatprep.mubr.f32.mxu0 %v5319_v5  ;;  %4410 = vmatpush3.bf16.msra.mxu0 %v5224_v37 }
 0x2fd   :  { %4412 = vmatprep.subr.bf16.mxu0 %v5234_v28 }
 0x2ff   :  { %4123 = vmatmul.mubr.f32.gmra.mrb[10].mxu0 %v5312_v63 }
 0x300   :  { %4125 = vmatprep.mubr.f32.mxu0 %v5340_v20  ;;  %4414 = vmatpush3.bf16.msra.mxu0 %v5234_v28 }
 0x301   :  { %4416 = vmatprep.subr.bf16.mxu0 %v5247_v54 }
 0x303   :  { %4126 = vmatmul.mubr.f32.gmra.mrb[12].mxu0 %v5334_v16 }
 0x304   :  { %4128 = vmatprep.mubr.f32.mxu0 %v1997_v12 }
 0x307   :  { %4129 = vmatmul.mubr.f32.gmra.mrb[14].mxu0 %v2007_v35 }
 0x308   :  { %4139 = vmatprep.mubr.f32.mxu0 %v1938_v4 }
 0x30b   :  { %4140 = vmatmul.mubr.f32.vlgmr.msra.gmra.mrb[8].mxu0 %v1948_v50 }
 0x30c   :  { %4142 = vmatprep.mubr.f32.mxu0 %v1958_v15  ;;  %4418 = vmatpush3.bf16.msra.mxu0 %v5247_v54  ;;  %v2743_v54 = vld [vmem:[%s5653_s7 + $0x10] sm:$0xff] }
 0x30d   :  { %4420 = vmatprep.subr.bf16.mxu0 %v5249_v55 }
 0x30f   :  { %4143 = vmatmul.mubr.f32.gmra.mrb[10].mxu0 %v1968_v18  ;;  %v3577_v18 = vld [vmem:[%s5654_s6] ss:$0 sm:$0xff] }
 0x310   :  { %4145 = vmatprep.mubr.f32.mxu0 %v1978_v17  ;;  %4422 = vmatpush3.bf16.msra.mxu0 %v5249_v55  ;;  %v2744_v55 = vld [vmem:[%s5653_s7 + $0x18] sm:$0xff] }
 0x311   :  { %4424 = vmatprep.subr.bf16.mxu0 %v5224_v37 }
 0x313   :  { %4146 = vmatmul.mubr.f32.gmra.mrb[12].mxu0 %v1988_v22 }
 0x314   :  { %4148 = vmatprep.mubr.f32.mxu0 %v1998_v31 }
 0x317   :  { %4149 = vmatmul.mubr.f32.gmra.mrb[14].mxu0 %v2008_v44 }
 0x318   :  { %4159 = vmatprep.mubr.f32.mxu0 %v5292_v41 }
 0x31b   :  { %4160 = vmatmul.mubr.f32.vlgmr.msra.gmra.mrb[8].mxu0 %v5289_v34 }
 0x31c   :  { %4162 = vmatprep.mubr.f32.mxu0 %v5307_v58  ;;  %4426 = vmatpush3.bf16.msra.mxu0 %v5224_v37  ;;  %v2741_v37 = vld [vmem:[%s5653_s7] sm:$0xff] }
 0x31d   :  { %4428 = vmatprep.subr.bf16.mxu0 %v5234_v28  ;;  %v2777_v51 = vand.u32 4294901760, %v2741_v37 }
 0x31f   :  { %4163 = vmatmul.mubr.f32.gmra.mrb[10].mxu0 %v5304_v62  ;;  %v2927_v57 = vsub.f32 %v2741_v37, %v2777_v51 }
 0x320   :  { %4165 = vmatprep.mubr.f32.mxu0 %v5329_v10  ;;  %4430 = vmatpush3.bf16.msra.mxu0 %v5234_v28  ;;  %v2742_v28 = vld [vmem:[%s5653_s7 + $0x8] sm:$0xff] }
 0x321   :  { %v2780_v59 = vand.u32 4294901760, %v2742_v28  ;;  %v2928_v60 = vand.u32 4294901760, %v2927_v57 }
 0x323   :  { %4166 = vmatmul.mubr.f32.gmra.mrb[12].mxu0 %v5325_v7  ;;  %v5421_v53 = vpack.c.bf16 %v2780_v59, %v2777_v51  ;;  %v2934_v45 = vsub.f32 %v2742_v28, %v2780_v59  ;;  %v2929_v47 = vsub.f32 %v2927_v57, %v2928_v60 }
 0x324   :  { %4168 = vmatprep.mubr.f32.mxu0 %v5357_v29 }
 0x325   :  { %4432 = vmatprep.subr.bf16.mxu1 %v5421_v53  ;;  %v2935_v46 = vand.u32 4294901760, %v2934_v45  ;;  %v2930_v56 = vand.u32 4294901760, %v2929_v47  ;;  %v5440_v14 = vpack.c.bf16 %v2934_v45, %v2927_v57 }
 0x326   :  { %4434 = vmatpush3.bf16.msra.mxu1 %v5421_v53 }
 0x327   :  { %4169 = vmatmul.mubr.f32.gmra.mrb[14].mxu0 %v5346_v21  ;;  %v2936_v48 = vsub.f32 %v2934_v45, %v2935_v46 }
 0x328   :  { %4179 = vmatprep.mubr.f32.mxu0 %v5292_v41  ;;  %v2786_v41 = vand.u32 4294901760, %v2744_v55 }
 0x329   :  { %v2937_v2 = vand.u32 4294901760, %v2936_v48 }
 0x32b   :  { %4180 = vmatmul.mubr.f32.vlgmr.msra.gmra.mrb[8].mxu0 %v5289_v34  ;;  %v2783_v34 = vand.u32 4294901760, %v2743_v54  ;;  %v5435_v4 = vpack.c.bf16 %v2937_v2, %v2930_v56 }
 0x32c   :  { %4182 = vmatprep.mubr.f32.mxu0 %v5307_v58 }
 0x32d   :  { %v5431_v43 = vpack.c.bf16 %v2786_v41, %v2783_v34  ;;  %v2941_v50 = vsub.f32 %v2743_v54, %v2783_v34 }
 0x32f   :  { %4183 = vmatmul.mubr.f32.gmra.mrb[10].mxu0 %v5304_v62  ;;  %4436 = vmatprep.subr.bf16.mxu1 %v5431_v43  ;;  %v2948_v62 = vsub.f32 %v2744_v55, %v2786_v41  ;;  %v2942_v58 = vand.u32 4294901760, %v2941_v50 }
 0x330   :  { %4185 = vmatprep.mubr.f32.mxu0 %v5329_v10  ;;  %4438 = vmatpush3.bf16.msra.mxu1 %v5431_v43 }
 0x331   :  { %v2949_v61 = vand.u32 4294901760, %v2948_v62  ;;  %v2943_v63 = vsub.f32 %v2941_v50, %v2942_v58  ;;  %4440 = vmatprep.subr.bf16.mxu1 %v5435_v4  ;;  %v5442_v6 = vpack.c.bf16 %v2948_v62, %v2941_v50 }
 0x333   :  { %4186 = vmatmul.mubr.f32.gmra.mrb[12].mxu0 %v5325_v7  ;;  %v2950_v0 = vsub.f32 %v2948_v62, %v2949_v61  ;;  %v2944_v1 = vand.u32 4294901760, %v2943_v63  ;;  %v5444_v7 = vpack.c.bf16 %v2935_v46, %v2928_v60  ;;  %v5446_v9 = vpack.c.bf16 %v2949_v61, %v2942_v58 }
 0x334   :  { %4188 = vmatprep.mubr.f32.mxu0 %v5357_v29 }
 0x335   :  { %v2951_v5 = vand.u32 4294901760, %v2950_v0 }
 0x337   :  { %4189 = vmatmul.mubr.f32.gmra.mrb[14].mxu0 %v5346_v21  ;;  %v5438_v3 = vpack.c.bf16 %v2951_v5, %v2944_v1 }
 0x3fe   :  { %v4181_v10 = vpop.f32.mrb[8].mxu0 }
 0x3ff   :  { %v5451_v11 = vadd.f32 %v4181_v10, %v3577_v18  ;;  %v2607_v13 = vpop.f32.mrb[9].mxu0 }
 0x400   :  { %v5453_v15 = vadd.f32 %v3577_v18, %v2607_v13 }
 0x401   :  { %v2662_v16 = vand.u32 2147483647, %v5451_v11  ;;  %v2654_v10 = vmax.f32 %v5451_v11, 0.0 }
 0x402   :  { %v2661_v30 = vand.u32 2147483647, %v5453_v15  ;;  %v4184_v19 = vpop.f32.mrb[10].mxu0 }
 0x403   :  { %v2670_v20 = vsub.f32 0.0, %v2662_v16  ;;  %v5457_v8 = vadd.f32 %v4184_v19, %v3577_v18  ;;  %v2619_v23 = vpop.f32.mrb[11].mxu0 }
 0x404   :  { %v2669_v21 = vsub.f32 0.0, %v2661_v30  ;;  %v5459_v22 = vadd.f32 %v3577_v18, %v2619_v23  ;;  %v2653_v30 = vmax.f32 %v5453_v15, 0.0 }
 0x405   :  { %v2679_v25 = vmul.f32 1.442695, %v2670_v20  ;;  %v2664_v26 = vand.u32 2147483647, %v5457_v8 }
 0x406   :  { %v2677_v17 = vmul.f32 1.442695, %v2669_v21  ;;  %v2663_v35 = vand.u32 2147483647, %v5459_v22  ;;  %v4187_v36 = vpop.f32.mrb[12].mxu0 }
 0x407   :  { %4767 = vpow2.f32 %v2679_v25  ;;  %v2672_v38 = vsub.f32 0.0, %v2664_v26  ;;  %v5463_v39 = vadd.f32 %v4187_v36, %v3577_v18  ;;  %v2631_v24 = vpop.f32.mrb[13].mxu0  ;;  %v2655_v36 = vmax.f32 %v5459_v22, 0.0 }
 0x408   :  { %4769 = vpow2.f32 %v2677_v17  ;;  %v2671_v27 = vsub.f32 0.0, %v2663_v35  ;;  %v5465_v29 = vadd.f32 %v3577_v18, %v2631_v24  ;;  %v2656_v17 = vmax.f32 %v5457_v8, 0.0 }
 0x409   :  { %v2683_v52 = vmul.f32 1.442695, %v2672_v38  ;;  %v2666_v42 = vand.u32 2147483647, %v5463_v39 }
 0x40a   :  { %v2681_v44 = vmul.f32 1.442695, %v2671_v27  ;;  %v2665_v12 = vand.u32 2147483647, %v5465_v29  ;;  %v4190_v31 = vpop.f32.mrb[14].mxu0 }
 0x40b   :  { %4771 = vpow2.f32 %v2683_v52  ;;  %v2674_v32 = vsub.f32 0.0, %v2666_v42  ;;  %v5469_v33 = vadd.f32 %v4190_v31, %v3577_v18  ;;  %v2643_v40 = vpop.f32.mrb[15].mxu0  ;;  %v2657_v31 = vmax.f32 %v5465_v29, 0.0 }
 0x40c   :  { %4773 = vpow2.f32 %v2681_v44  ;;  %v2673_v49 = vsub.f32 0.0, %v2665_v12  ;;  %v5471_v37 = vadd.f32 %v3577_v18, %v2643_v40  ;;  %v2658_v44 = vmax.f32 %v5463_v39, 0.0 }
 0x40d   :  { %v2687_v28 = vmul.f32 1.442695, %v2674_v32  ;;  %v2668_v51 = vand.u32 2147483647, %v5469_v33 }
 0x40e   :  { %v2685_v59 = vmul.f32 1.442695, %v2673_v49  ;;  %v2667_v54 = vand.u32 2147483647, %v5471_v37 }
 0x40f   :  { %4775 = vpow2.f32 %v2687_v28  ;;  %v2676_v55 = vsub.f32 0.0, %v2668_v51  ;;  %v2660_v51 = vmax.f32 %v5469_v33, 0.0 }
 0x410   :  { %4777 = vpow2.f32 %v2685_v59  ;;  %v2675_v34 = vsub.f32 0.0, %v2667_v54 }
 0x411   :  { %v4768_v41 = vpop.eup %4767  ;;  %v2691_v57 = vmul.f32 1.442695, %v2676_v55 }
 0x412   :  { %v4770_v45 = vpop.eup %4769  ;;  %v2694_v60 = vadd.f32 1.0, %v4768_v41  ;;  %v2689_v46 = vmul.f32 1.442695, %v2675_v34 }
 0x413   :  { %v2693_v47 = vadd.f32 1.0, %v4770_v45  ;;  %4779 = vpow2.f32 %v2691_v57 }
 0x414   :  { %4781 = vlog2.f32 %v2694_v60 }
 0x415   :  { %v4772_v48 = vpop.eup %4771  ;;  %4783 = vlog2.f32 %v2693_v47 }
 0x416   :  { %v4774_v50 = vpop.eup %4773  ;;  %v2696_v62 = vadd.f32 1.0, %v4772_v48  ;;  %4785 = vpow2.f32 %v2689_v46  ;;  %v2659_v46 = vmax.f32 %v5471_v37, 0.0 }
 0x417   :  { %v2695_v56 = vadd.f32 1.0, %v4774_v50 }
 0x418   :  { %4787 = vlog2.f32 %v2696_v62 }
 0x419   :  { %v4776_v2 = vpop.eup %4775  ;;  %4789 = vlog2.f32 %v2695_v56 }
 0x41a   :  { %v4778_v58 = vpop.eup %4777  ;;  %v2698_v61 = vadd.f32 1.0, %v4776_v2 }
 0x41b   :  { %v2697_v63 = vadd.f32 1.0, %v4778_v58 }
 0x41c   :  { %4791 = vlog2.f32 %v2698_v61 }
 0x41d   :  { %v4780_v0 = vpop.eup %4779  ;;  %4793 = vlog2.f32 %v2697_v63 }
 0x41e   :  { %v4782_v1 = vpop.eup %4781  ;;  %v2700_v5 = vadd.f32 1.0, %v4780_v0 }
 0x41f   :  { %v4784_v18 = vpop.eup %4783  ;;  %v2704_v13 = vmul.f32 0.6931472, %v4782_v1 }
 0x420   :  { %v4786_v16 = vpop.eup %4785  ;;  %v2702_v19 = vmul.f32 0.6931472, %v4784_v18  ;;  %4795 = vlog2.f32 %v2700_v5 }
 0x421   :  { %v2718_v20 = vadd.f32 %v2704_v13, %v2654_v10  ;;  %v2699_v23 = vadd.f32 1.0, %v4786_v16 }
 0x422   :  { %v4788_v21 = vpop.eup %4787  ;;  %v2717_v25 = vadd.f32 %v2702_v19, %v2653_v30 }
 0x423   :  { %v4790_v26 = vpop.eup %4789  ;;  %4797 = vtanh.f32 %v2718_v20  ;;  %v2708_v35 = vmul.f32 0.6931472, %v4788_v21 }
 0x424   :  { %4799 = vtanh.f32 %v2717_v25  ;;  %v2706_v38 = vmul.f32 0.6931472, %v4790_v26 }
 0x425   :  { %v2720_v24 = vadd.f32 %v2708_v35, %v2656_v17  ;;  %4801 = vlog2.f32 %v2699_v23 }
 0x426   :  { %v4792_v27 = vpop.eup %4791  ;;  %v2719_v52 = vadd.f32 %v2706_v38, %v2655_v36 }
 0x427   :  { %v4794_v42 = vpop.eup %4793  ;;  %4803 = vtanh.f32 %v2720_v24  ;;  %v2712_v12 = vmul.f32 0.6931472, %v4792_v27 }
 0x428   :  { %4805 = vtanh.f32 %v2719_v52  ;;  %v2710_v32 = vmul.f32 0.6931472, %v4794_v42 }
 0x429   :  { %v2722_v40 = vadd.f32 %v2712_v12, %v2658_v44 }
 0x42a   :  { %v4796_v49 = vpop.eup %4795  ;;  %v2721_v28 = vadd.f32 %v2710_v32, %v2657_v31 }
 0x42b   :  { %4807 = vtanh.f32 %v2722_v40  ;;  %v2716_v59 = vmul.f32 0.6931472, %v4796_v49 }
 0x42c   :  { %4809 = vtanh.f32 %v2721_v28 }
 0x42d   :  { %v4798_v54 = vpop.eup %4797  ;;  %v2724_v55 = vadd.f32 %v2716_v59, %v2660_v51 }
 0x42e   :  { %v4800_v34 = vpop.eup %4799  ;;  %v2734_v41 = vmul.f32 %v4798_v54, %v5451_v11 }
 0x42f   :  { %v4802_v57 = vpop.eup %4801  ;;  %v2733_v45 = vmul.f32 %v4800_v34, %v5453_v15  ;;  %4811 = vtanh.f32 %v2724_v55 }
 0x430   :  { %v2756_v60 = vsel %vm933_vm1, %v2734_v41, 0  ;;  %v2714_v47 = vmul.f32 0.6931472, %v4802_v57 }
 0x431   :  { %v4804_v48 = vpop.eup %4803  ;;  %v5486_v50 = vand.u32 4294901760, %v2756_v60  ;;  %v2753_v62 = vsel %vm933_vm1, %v2733_v45, 0 }
 0x432   :  { %v4806_v56 = vpop.eup %4805  ;;  %v5489_v2 = vand.u32 4294901760, %v2753_v62  ;;  %v2736_v58 = vmul.f32 %v4804_v48, %v5457_v8  ;;  %v2723_v11 = vadd.f32 %v2714_v47, %v2659_v46 }
 0x433   :  { %v5493_v61 = vsub.f32 %v2756_v60, %v5486_v50  ;;  %v2735_v15 = vmul.f32 %v4806_v56, %v5459_v22 }
 0x434   :  { %v5497_v63 = vsub.f32 %v2753_v62, %v5489_v2  ;;  %v2762_v0 = vsel %vm933_vm1, %v2736_v58, 0  ;;  %4813 = vtanh.f32 %v2723_v11 }
 0x435   :  { %v4808_v1 = vpop.eup %4807  ;;  %v2857_v5 = vand.u32 4294901760, %v5493_v61  ;;  %v5501_v18 = vand.u32 4294901760, %v2762_v0  ;;  %v2759_v10 = vsel %vm933_vm1, %v2735_v15, 0 }
 0x436   :  { %v4810_v8 = vpop.eup %4809  ;;  %v5504_v13 = vand.u32 4294901760, %v2759_v10  ;;  %v2738_v16 = vmul.f32 %v4808_v1, %v5463_v39  ;;  %v2847_v22 = vand.u32 4294901760, %v5497_v63 }
 0x437   :  { %v5509_v30 = vsub.f32 %v2762_v0, %v5501_v18  ;;  %v2737_v19 = vmul.f32 %v4810_v8, %v5465_v29  ;;  %v2858_v20 = vsub.f32 %v5493_v61, %v2857_v5 }
 0x438   :  { %v5516_v23 = vsub.f32 %v2759_v10, %v5504_v13  ;;  %v2768_v21 = vsel %vm933_vm1, %v2738_v16, 0  ;;  %v2848_v39 = vsub.f32 %v5497_v63, %v2847_v22 }
 0x439   :  { %v4812_v25 = vpop.eup %4811  ;;  %v5522_v26 = vand.u32 4294901760, %v2768_v21  ;;  %v2765_v17 = vsel %vm933_vm1, %v2737_v19, 0  ;;  %v2877_v29 = vand.u32 4294901760, %v5509_v30  ;;  %v2859_v52 = vand.u32 4294901760, %v2858_v20 }
 0x43a   :  { %v5526_v35 = vand.u32 4294901760, %v2765_v17  ;;  %v2740_v36 = vmul.f32 %v4812_v25, %v5469_v33  ;;  %v2849_v38 = vand.u32 4294901760, %v2848_v39  ;;  %v2867_v24 = vand.u32 4294901760, %v5516_v23 }
 0x43b   :  { %v5531_v27 = vsub.f32 %v2768_v21, %v5522_v26  ;;  %v2878_v42 = vsub.f32 %v5509_v30, %v2877_v29 }
 0x43c   :  { %v5537_v44 = vsub.f32 %v2765_v17, %v5526_v35  ;;  %v2774_v12 = vsel %vm933_vm1, %v2740_v36, 0  ;;  %4199 = vmatprep.mubr.f32.mxu1 %v2849_v38  ;;  %v2868_v33 = vsub.f32 %v5516_v23, %v2867_v24 }
 0x43d   :  { %v5543_v31 = vand.u32 4294901760, %v2774_v12  ;;  %4200 = vmatmul.mubr.f32.vlgmr.msra.gmra.mrb[8].mxu1 %v2859_v52  ;;  %v2897_v32 = vand.u32 4294901760, %v5531_v27  ;;  %v2879_v54 = vand.u32 4294901760, %v2878_v42 }
 0x43e   :  { %v4814_v40 = vpop.eup %4813  ;;  %4442 = vmatpush3.bf16.msra.mxu1 %v5435_v4  ;;  %v2869_v49 = vand.u32 4294901760, %v2868_v33  ;;  %v2887_v28 = vand.u32 4294901760, %v5537_v44 }
 0x43f   :  { %v2916_v51 = vsub.f32 %v2774_v12, %v5543_v31  ;;  %v2739_v59 = vmul.f32 %v4814_v40, %v5471_v37  ;;  %v2898_v55 = vsub.f32 %v5531_v27, %v2897_v32  ;;  %4444 = vmatprep.subr.bf16.mxu1 %v5438_v3 }
 0x440   :  { %4202 = vmatprep.mubr.f32.mxu1 %v2869_v49  ;;  %v2888_v34 = vsub.f32 %v5537_v44, %v2887_v28 }
 0x441   :  { %v2771_v41 = vsel %vm933_vm1, %v2739_v59, 0  ;;  %4203 = vmatmul.mubr.f32.gmra.mrb[10].mxu1 %v2879_v54  ;;  %v2899_v45 = vand.u32 4294901760, %v2898_v55  ;;  %v2917_v60 = vand.u32 4294901760, %v2916_v51 }
 0x442   :  { %v5554_v57 = vand.u32 4294901760, %v2771_v41  ;;  %v2889_v4 = vand.u32 4294901760, %v2888_v34  ;;  %4446 = vmatpush3.bf16.msra.mxu1 %v5438_v3 }
 0x443   :  { %4448 = vmatprep.subr.bf16.mxu1 %v5440_v14  ;;  %v2918_v47 = vsub.f32 %v2916_v51, %v2917_v60 }
 0x444   :  { %v2906_v37 = vsub.f32 %v2771_v41, %v5554_v57  ;;  %4205 = vmatprep.mubr.f32.mxu1 %v2889_v4 }
 0x445   :  { %4206 = vmatmul.mubr.f32.gmra.mrb[12].mxu1 %v2899_v45  ;;  %v2919_v56 = vand.u32 4294901760, %v2918_v47 }
 0x446   :  { %v2907_v46 = vand.u32 4294901760, %v2906_v37 }
 0x448   :  { %v2908_v48 = vsub.f32 %v2906_v37, %v2907_v46 }
 0x44a   :  { %v2909_v62 = vand.u32 4294901760, %v2908_v48 }
 0x44c   :  { %4208 = vmatprep.mubr.f32.mxu1 %v2909_v62 }
 0x44d   :  { %4209 = vmatmul.mubr.f32.gmra.mrb[14].mxu1 %v2919_v56 }
 0x44e   :  { %4219 = vmatprep.mubr.f32.mxu1 %v5489_v2 }
 0x451   :  { %4220 = vmatmul.mubr.f32.vlgmr.msra.gmra.mrb[8].mxu1 %v5486_v50 }
 0x452   :  { %4222 = vmatprep.mubr.f32.mxu1 %v5504_v13  ;;  %4450 = vmatpush3.bf16.msra.mxu1 %v5440_v14 }
 0x453   :  { %4452 = vmatprep.subr.bf16.mxu1 %v5442_v6 }
 0x455   :  { %4223 = vmatmul.mubr.f32.gmra.mrb[10].mxu1 %v5501_v18 }
 0x456   :  { %4225 = vmatprep.mubr.f32.mxu1 %v5526_v35  ;;  %4454 = vmatpush3.bf16.msra.mxu1 %v5442_v6 }
 0x457   :  { %4456 = vmatprep.subr.bf16.mxu1 %v5421_v53 }
 0x459   :  { %4226 = vmatmul.mubr.f32.gmra.mrb[12].mxu1 %v5522_v26 }
 0x45a   :  { %4228 = vmatprep.mubr.f32.mxu1 %v5554_v57 }
 0x45d   :  { %4229 = vmatmul.mubr.f32.gmra.mrb[14].mxu1 %v5543_v31 }
 0x45e   :  { %4239 = vmatprep.mubr.f32.mxu1 %v5497_v63 }
 0x461   :  { %4240 = vmatmul.mubr.f32.vlgmr.msra.gmra.mrb[8].mxu1 %v5493_v61 }
 0x462   :  { %4242 = vmatprep.mubr.f32.mxu1 %v5516_v23  ;;  %4458 = vmatpush3.bf16.msra.mxu1 %v5421_v53 }
 0x463   :  { %4460 = vmatprep.subr.bf16.mxu1 %v5431_v43 }
 0x465   :  { %4243 = vmatmul.mubr.f32.gmra.mrb[10].mxu1 %v5509_v30 }
 0x466   :  { %4245 = vmatprep.mubr.f32.mxu1 %v5537_v44  ;;  %4462 = vmatpush3.bf16.msra.mxu1 %v5431_v43 }
 0x467   :  { %4464 = vmatprep.subr.bf16.mxu1 %v5444_v7 }
 0x469   :  { %4246 = vmatmul.mubr.f32.gmra.mrb[12].mxu1 %v5531_v27 }
 0x46a   :  { %4248 = vmatprep.mubr.f32.mxu1 %v2906_v37 }
 0x46d   :  { %4249 = vmatmul.mubr.f32.gmra.mrb[14].mxu1 %v2916_v51 }
 0x46e   :  { %4259 = vmatprep.mubr.f32.mxu1 %v2847_v22 }
 0x471   :  { %4260 = vmatmul.mubr.f32.vlgmr.msra.gmra.mrb[8].mxu1 %v2857_v5 }
 0x472   :  { %4262 = vmatprep.mubr.f32.mxu1 %v2867_v24  ;;  %4466 = vmatpush3.bf16.msra.mxu1 %v5444_v7 }
 0x473   :  { %4468 = vmatprep.subr.bf16.mxu1 %v5446_v9 }
 0x475   :  { %4263 = vmatmul.mubr.f32.gmra.mrb[10].mxu1 %v2877_v29 }
 0x476   :  { %4265 = vmatprep.mubr.f32.mxu1 %v2887_v28  ;;  %4470 = vmatpush3.bf16.msra.mxu1 %v5446_v9 }
 0x477   :  { %4472 = vmatprep.subr.bf16.mxu1 %v5421_v53 }
 0x479   :  { %4266 = vmatmul.mubr.f32.gmra.mrb[12].mxu1 %v2897_v32 }
 0x47a   :  { %4268 = vmatprep.mubr.f32.mxu1 %v2907_v46 }
 0x47d   :  { %4269 = vmatmul.mubr.f32.gmra.mrb[14].mxu1 %v2917_v60 }
 0x47e   :  { %4279 = vmatprep.mubr.f32.mxu1 %v5489_v2 }
 0x481   :  { %4280 = vmatmul.mubr.f32.vlgmr.msra.gmra.mrb[8].mxu1 %v5486_v50 }
 0x482   :  { %4282 = vmatprep.mubr.f32.mxu1 %v5504_v13  ;;  %4474 = vmatpush3.bf16.msra.mxu1 %v5421_v53  ;;  %v3578_v53 = vld [vmem:[%s5655_s8] ss:$0 sm:$0xff] }
 0x483   :  { %4476 = vmatprep.subr.bf16.mxu1 %v5431_v43 }
 0x485   :  { %4283 = vmatmul.mubr.f32.gmra.mrb[10].mxu1 %v5501_v18 }
 0x486   :  { %4285 = vmatprep.mubr.f32.mxu1 %v5526_v35  ;;  %4478 = vmatpush3.bf16.msra.mxu1 %v5431_v43 }
 0x489   :  { %4286 = vmatmul.mubr.f32.gmra.mrb[12].mxu1 %v5522_v26 }
 0x48a   :  { %4288 = vmatprep.mubr.f32.mxu1 %v5554_v57 }
 0x48d   :  { %4289 = vmatmul.mubr.f32.gmra.mrb[14].mxu1 %v5543_v31 }
 0x48e   :  { %4299 = vmatprep.mubr.f32.mxu1 %v5489_v2 }
 0x491   :  { %4300 = vmatmul.mubr.f32.vlgmr.msra.gmra.mrb[8].mxu1 %v5486_v50 }
 0x492   :  { %4302 = vmatprep.mubr.f32.mxu1 %v5504_v13 }
 0x495   :  { %4303 = vmatmul.mubr.f32.gmra.mrb[10].mxu1 %v5501_v18 }
 0x496   :  { %4305 = vmatprep.mubr.f32.mxu1 %v5526_v35 }
 0x499   :  { %4306 = vmatmul.mubr.f32.gmra.mrb[12].mxu1 %v5522_v26 }
 0x49a   :  { %4308 = vmatprep.mubr.f32.mxu1 %v5554_v57 }
 0x49d   :  { %4309 = vmatmul.mubr.f32.gmra.mrb[14].mxu1 %v5543_v31 }
 0x564   :  { %v4301_v43 = vpop.f32.mrb[8].mxu1 }
 0x565   :  { %v4503_v3 = vadd.f32 %v4301_v43, %v3578_v53  ;;  %v3516_v14 = vpop.f32.mrb[9].mxu1 }
 0x566   :  { %v4504_v6 = vadd.f32 %v3578_v53, %v3516_v14 }
 0x567   :  { %3564 = vst.msk [vmem:[%s5656_s9 + $0x8] sm:$0xff] %vm3562_vm2, %v4503_v3 }
 0x568   :  { %3563 = vst.msk [vmem:[%s5656_s9] sm:$0xff] %vm3562_vm2, %v4504_v6  ;;  %v4304_v7 = vpop.f32.mrb[10].mxu1 }
 0x569   :  { %v4505_v9 = vadd.f32 %v4304_v7, %v3578_v53  ;;  %v3528_v50 = vpop.f32.mrb[11].mxu1 }
 0x56a   :  { %v4506_v2 = vadd.f32 %v3578_v53, %v3528_v50 }
 0x56b   :  { %3566 = vst.msk [vmem:[%s5656_s9 + $0x18] sm:$0xff] %vm3562_vm2, %v4505_v9 }
 0x56c   :  { %3565 = vst.msk [vmem:[%s5656_s9 + $0x10] sm:$0xff] %vm3562_vm2, %v4506_v2  ;;  %v4307_v58 = vpop.f32.mrb[12].mxu1 }
 0x56d   :  { %v4507_v11 = vadd.f32 %v4307_v58, %v3578_v53  ;;  %v3540_v61 = vpop.f32.mrb[13].mxu1 }
 0x56e   :  { %v4508_v15 = vadd.f32 %v3578_v53, %v3540_v61 }
 0x56f   :  { %3568 = vst.msk [vmem:[%s5656_s9 + $0x28] sm:$0xff] %vm3562_vm2, %v4507_v11 }
 0x570   :  { %3567 = vst.msk [vmem:[%s5656_s9 + $0x20] sm:$0xff] %vm3562_vm2, %v4508_v15  ;;  %v4310_v63 = vpop.f32.mrb[14].mxu1 }
 0x571   :  { %v4509_v0 = vadd.f32 %v4310_v63, %v3578_v53  ;;  %v3552_v1 = vpop.f32.mrb[15].mxu1 }
 0x572   :  { %v4510_v5 = vadd.f32 %v3578_v53, %v3552_v1 }
 0x573   :  { %3570 = vst.msk [vmem:[%s5656_s9 + $0x38] sm:$0xff] %vm3562_vm2, %v4509_v0 }
 0x574   :  { %3569 = vst.msk [vmem:[%s5656_s9 + $0x30] sm:$0xff] %vm3562_vm2, %v4510_v5 }

// kernel: tpu_custom_call.1
= control target key start
LH: loop header
LB: loop body
LE: loop exit
PB: predicated region body
PF: predicated region fallthrough
CT: control target
= control target key end

     0   :  { %vm49_vm0 = vcmask 130048   ;;  %vm933_vm1 = vcmask 261120   ;;  %vm3562_vm2 = vcmask 64512   ;;  %s5647_s1 = inlined_call_operand.vmem [shape: f32[16,32], index: 1, kind: input, shape index: {}]   ;;  %s5648_s0 = inlined_call_operand.vmem [shape: f32[64,16], index: 0, kind: input, shape index: {}]   ;;  %s5649_s3 = inlined_call_operand.vmem [shape: f32[32,32], index: 3, kind: input, shape index: {}]   ;;  %s5650_s2 = inlined_call_operand.vmem [shape: f32[1,32], index: 2, kind: input, shape index: {}]   ;;  %s5651_s5 = inlined_call_operand.vmem [shape: f32[32,32], index: 5, kind: input, shape index: {}]   ;;  %s5652_s4 = inlined_call_operand.vmem [shape: f32[1,32], index: 4, kind: input, shape index: {}]   ;;  %s5653_s7 = inlined_call_operand.vmem [shape: f32[32,8], index: 7, kind: input, shape index: {}]   ;;  %s5654_s6 = inlined_call_operand.vmem [shape: f32[1,32], index: 6, kind: input, shape index: {}]   ;;  %s5655_s8 = inlined_call_operand.vmem [shape: f32[1,8], index: 8, kind: input, shape index: {}]   ;;  %s5656_s9 = inlined_call_operand.vmem [shape: f32[64,8], index: 9, kind: output, shape index: {}]  }
   0x1   :  { %v40_v0 = vld [vmem:[%s5647_s1] sm:$0xff]  ;;  %v41_v1 = vld [vmem:[%s5647_s1 + $0x8] sm:$0xff]  ;;  %v34_v7 = vld [vmem:[%s5648_s0 + $0x10] sm:$0xff] }
   0x2   :  { %v32_v2 = vld [vmem:[%s5648_s0] sm:$0xff]  ;;  %v75_v3 = vand.u32 4294901760, %v40_v0  ;;  %v78_v4 = vand.u32 4294901760, %v41_v1  ;;  %v33_v6 = vld [vmem:[%s5648_s0 + $0x8] sm:$0xff]  ;;  %v35_v8 = vld [vmem:[%s5648_s0 + $0x18] sm:$0xff]  ;;  %v57_v11 = vsel %vm49_vm0, %v34_v7, 0 }
   0x3   :  { %v51_v5 = vsel %vm49_vm0, %v32_v2, 0  ;;  %v54_v10 = vsel %vm49_vm0, %v33_v6, 0  ;;  %v60_v12 = vsel %vm49_vm0, %v35_v8, 0  ;;  %v36_v13 = vld [vmem:[%s5648_s0 + $0x20] sm:$0xff]  ;;  %v37_v18 = vld [vmem:[%s5648_s0 + $0x28] sm:$0xff]  ;;  %v4906_v20 = vand.u32 4294901760, %v57_v11 }
   0x4   :  { %v4884_v9 = vand.u32 4294901760, %v51_v5  ;;  %v4892_v14 = vpack.c.bf16 %v78_v4, %v75_v3  ;;  %v4894_v15 = vand.u32 4294901760, %v54_v10  ;;  %v4896_v16 = vsub.f32 %v40_v0, %v75_v3  ;;  %v38_v39 = vld [vmem:[%s5648_s0 + $0x30] sm:$0xff]  ;;  %v39_v48 = vld [vmem:[%s5648_s0 + $0x38] sm:$0xff]  ;;  %v922_v8 = vld [vmem:[%s5649_s3] sm:$0xff] }
   0x5   :  { %v4898_v17 = vsub.f32 %v41_v1, %v78_v4  ;;  %v4908_v21 = vand.u32 4294901760, %v60_v12  ;;  %v63_v22 = vsel %vm49_vm0, %v36_v13, 0  ;;  %v4922_v28 = vsub.f32 %v57_v11, %v4906_v20  ;;  %v924_v13 = vld [vmem:[%s5649_s3 + $0x10] sm:$0xff] }
   0x6   :  { %v4904_v19 = vsub.f32 %v51_v5, %v4884_v9  ;;  %4312 = vmatprep.subr.bf16.mxu0 %v4892_v14  ;;  %v4913_v23 = vsub.f32 %v54_v10, %v4894_v15  ;;  %v224_v24 = vand.u32 4294901760, %v4896_v16  ;;  %v4917_v26 = vand.u32 4294901760, %v63_v22 }
   0x7   :  { %v231_v25 = vand.u32 4294901760, %v4898_v17  ;;  %4314 = vmatpush3.bf16.msra.mxu0 %v4892_v14  ;;  %v4925_v29 = vsub.f32 %v60_v12, %v4908_v21  ;;  %v66_v30 = vsel %vm49_vm0, %v37_v18, 0  ;;  %v163_v36 = vand.u32 4294901760, %v4922_v28 }
   0x8   :  { %v143_v27 = vand.u32 4294901760, %v4904_v19  ;;  %v153_v31 = vand.u32 4294901760, %v4913_v23  ;;  %v225_v32 = vsub.f32 %v4896_v16, %v224_v24  ;;  %v4936_v34 = vsub.f32 %v63_v22, %v4917_v26 }
   0x9   :  { %v232_v33 = vsub.f32 %v4898_v17, %v231_v25  ;;  %v173_v37 = vand.u32 4294901760, %v4925_v29  ;;  %v4943_v38 = vand.u32 4294901760, %v66_v30  ;;  %v164_v45 = vsub.f32 %v4922_v28, %v163_v36 }
   0xa   :  { %v144_v35 = vsub.f32 %v4904_v19, %v143_v27  ;;  %v154_v40 = vsub.f32 %v4913_v23, %v153_v31  ;;  %v226_v41 = vand.u32 4294901760, %v225_v32  ;;  %v183_v43 = vand.u32 4294901760, %v4936_v34 }
   0xb   :  { %v233_v42 = vand.u32 4294901760, %v232_v33  ;;  %v174_v46 = vsub.f32 %v4925_v29, %v173_v37  ;;  %v4959_v47 = vsub.f32 %v66_v30, %v4943_v38  ;;  %v69_v52 = vsel %vm49_vm0, %v38_v39, 0 }
   0xc   :  { %v145_v44 = vand.u32 4294901760, %v144_v35  ;;  %v155_v49 = vand.u32 4294901760, %v154_v40  ;;  %v184_v51 = vsub.f32 %v4936_v34, %v183_v43  ;;  %v165_v53 = vand.u32 4294901760, %v164_v45  ;;  %v3575_v40 = vld [vmem:[%s5650_s2] ss:$0 sm:$0xff] }
   0xd   :  { %v4315_v50 = vpack.c.bf16 %v233_v42, %v226_v41  ;;  %v193_v54 = vand.u32 4294901760, %v4959_v47  ;;  %v4969_v55 = vand.u32 4294901760, %v69_v52  ;;  %v175_v56 = vand.u32 4294901760, %v174_v46 }
   0xe   :  { %3859 = vmatprep.mubr.f32.mxu0 %v145_v44  ;;  %v72_v57 = vsel %vm49_vm0, %v39_v48, 0  ;;  %v4319_v58 = vpack.c.bf16 %v4898_v17, %v4896_v16  ;;  %v185_v59 = vand.u32 4294901760, %v184_v51  ;;  %v4327_v7 = vpack.c.bf16 %v231_v25, %v224_v24 }
   0xf   :  { %3860 = vmatmul.mubr.f32.vlgmr.msra.gmra.mrb[0].mxu0 %v155_v49  ;;  %4316 = vmatprep.subr.bf16.mxu0 %v4315_v50  ;;  %v194_v60 = vsub.f32 %v4959_v47, %v193_v54  ;;  %v202_v61 = vsub.f32 %v69_v52, %v4969_v55  ;;  %v211_v62 = vand.u32 4294901760, %v72_v57  ;;  %v959_v10 = vand.u32 4294901760, %v922_v8 }
  0x10   :  { %4318 = vmatpush3.bf16.msra.mxu0 %v4315_v50  ;;  %3862 = vmatprep.mubr.f32.mxu0 %v165_v53 }
  0x11   :  { %4320 = vmatprep.subr.bf16.mxu0 %v4319_v58  ;;  %v203_v63 = vand.u32 4294901760, %v202_v61  ;;  %v212_v0 = vsub.f32 %v72_v57, %v211_v62  ;;  %v195_v1 = vand.u32 4294901760, %v194_v60  ;;  %v1109_v18 = vsub.f32 %v922_v8, %v959_v10 }
  0x13   :  { %3863 = vmatmul.mubr.f32.gmra.mrb[2].mxu0 %v175_v56  ;;  %v204_v2 = vsub.f32 %v202_v61, %v203_v63  ;;  %v213_v3 = vand.u32 4294901760, %v212_v0 }
  0x14   :  { %3865 = vmatprep.mubr.f32.mxu0 %v185_v59 }
  0x15   :  { %v205_v4 = vand.u32 4294901760, %v204_v2  ;;  %v214_v5 = vsub.f32 %v212_v0, %v213_v3 }
  0x17   :  { %3866 = vmatmul.mubr.f32.gmra.mrb[4].mxu0 %v195_v1  ;;  %v215_v6 = vand.u32 4294901760, %v214_v5 }
  0x18   :  { %3868 = vmatprep.mubr.f32.mxu0 %v205_v4 }
  0x1b   :  { %3869 = vmatmul.mubr.f32.gmra.mrb[6].mxu0 %v215_v6 }
  0x1c   :  { %3875 = vmatprep.mubr.f32.mxu0 %v4884_v9 }
  0x1f   :  { %3876 = vmatmul.mubr.f32.vlgmr.msra.gmra.mrb[0].mxu0 %v4894_v15 }
  0x20   :  { %4322 = vmatpush3.bf16.msra.mxu0 %v4319_v58  ;;  %3878 = vmatprep.mubr.f32.mxu0 %v4906_v20 }
  0x21   :  { %4324 = vmatprep.subr.bf16.mxu0 %v4892_v14 }
  0x23   :  { %3879 = vmatmul.mubr.f32.gmra.mrb[2].mxu0 %v4908_v21 }
  0x24   :  { %3881 = vmatprep.mubr.f32.mxu0 %v4917_v26 }
  0x27   :  { %3882 = vmatmul.mubr.f32.gmra.mrb[4].mxu0 %v4943_v38 }
  0x28   :  { %3884 = vmatprep.mubr.f32.mxu0 %v4969_v55 }
  0x2b   :  { %3885 = vmatmul.mubr.f32.gmra.mrb[6].mxu0 %v211_v62 }
  0x2c   :  { %3891 = vmatprep.mubr.f32.mxu0 %v4904_v19 }
  0x2f   :  { %3892 = vmatmul.mubr.f32.vlgmr.msra.gmra.mrb[0].mxu0 %v4913_v23 }
  0x30   :  { %4326 = vmatpush3.bf16.msra.mxu0 %v4892_v14  ;;  %3894 = vmatprep.mubr.f32.mxu0 %v4922_v28 }
  0x31   :  { %4328 = vmatprep.subr.bf16.mxu0 %v4327_v7 }
  0x33   :  { %3895 = vmatmul.mubr.f32.gmra.mrb[2].mxu0 %v4925_v29 }
  0x34   :  { %3897 = vmatprep.mubr.f32.mxu0 %v4936_v34 }
  0x37   :  { %3898 = vmatmul.mubr.f32.gmra.mrb[4].mxu0 %v4959_v47 }
  0x38   :  { %3900 = vmatprep.mubr.f32.mxu0 %v202_v61 }
  0x3b   :  { %3901 = vmatmul.mubr.f32.gmra.mrb[6].mxu0 %v212_v0 }
  0x3c   :  { %3907 = vmatprep.mubr.f32.mxu0 %v143_v27 }
  0x3f   :  { %3908 = vmatmul.mubr.f32.vlgmr.msra.gmra.mrb[0].mxu0 %v153_v31 }
  0x40   :  { %4330 = vmatpush3.bf16.msra.mxu0 %v4327_v7  ;;  %3910 = vmatprep.mubr.f32.mxu0 %v163_v36 }
  0x41   :  { %4332 = vmatprep.subr.bf16.mxu0 %v4892_v14 }
  0x43   :  { %3911 = vmatmul.mubr.f32.gmra.mrb[2].mxu0 %v173_v37 }
  0x44   :  { %3913 = vmatprep.mubr.f32.mxu0 %v183_v43 }
  0x47   :  { %3914 = vmatmul.mubr.f32.gmra.mrb[4].mxu0 %v193_v54 }
  0x48   :  { %3916 = vmatprep.mubr.f32.mxu0 %v203_v63 }
  0x4b   :  { %3917 = vmatmul.mubr.f32.gmra.mrb[6].mxu0 %v213_v3 }
  0x4c   :  { %3923 = vmatprep.mubr.f32.mxu0 %v4884_v9 }
  0x4f   :  { %3924 = vmatmul.mubr.f32.vlgmr.msra.gmra.mrb[0].mxu0 %v4894_v15 }
  0x50   :  { %4334 = vmatpush3.bf16.msra.mxu0 %v4892_v14  ;;  %3926 = vmatprep.mubr.f32.mxu0 %v4906_v20  ;;  %v925_v14 = vld [vmem:[%s5649_s3 + $0x18] sm:$0xff] }
  0x51   :  { %v968_v16 = vand.u32 4294901760, %v925_v14 }
  0x53   :  { %3927 = vmatmul.mubr.f32.gmra.mrb[2].mxu0 %v4908_v21  ;;  %v1130_v25 = vsub.f32 %v925_v14, %v968_v16 }
  0x54   :  { %3929 = vmatprep.mubr.f32.mxu0 %v4917_v26 }
  0x55   :  { %v1131_v29 = vand.u32 4294901760, %v1130_v25 }
  0x57   :  { %3930 = vmatmul.mubr.f32.gmra.mrb[4].mxu0 %v4943_v38  ;;  %v1132_v32 = vsub.f32 %v1130_v25, %v1131_v29 }
  0x58   :  { %3932 = vmatprep.mubr.f32.mxu0 %v4969_v55 }
  0x59   :  { %v1133_v34 = vand.u32 4294901760, %v1132_v32 }
  0x5b   :  { %3933 = vmatmul.mubr.f32.gmra.mrb[6].mxu0 %v211_v62 }
  0x5c   :  { %3939 = vmatprep.mubr.f32.mxu0 %v4884_v9  ;;  %v923_v9 = vld [vmem:[%s5649_s3 + $0x8] sm:$0xff] }
  0x5d   :  { %v962_v11 = vand.u32 4294901760, %v923_v9 }
  0x5f   :  { %3940 = vmatmul.mubr.f32.vlgmr.msra.gmra.mrb[0].mxu0 %v4894_v15  ;;  %v5027_v12 = vpack.c.bf16 %v962_v11, %v959_v10  ;;  %v965_v15 = vand.u32 4294901760, %v924_v13  ;;  %v1116_v19 = vsub.f32 %v923_v9, %v962_v11 }
  0x60   :  { %3942 = vmatprep.mubr.f32.mxu0 %v4906_v20  ;;  %v1110_v20 = vand.u32 4294901760, %v1109_v18 }
  0x61   :  { %4336 = vmatprep.subr.bf16.mxu1 %v5027_v12  ;;  %v5037_v17 = vpack.c.bf16 %v968_v16, %v965_v15  ;;  %v1123_v24 = vsub.f32 %v924_v13, %v965_v15  ;;  %v5046_v36 = vpack.c.bf16 %v1116_v19, %v1109_v18 }
  0x62   :  { %4338 = vmatpush3.bf16.msra.mxu1 %v5027_v12  ;;  %v1111_v22 = vsub.f32 %v1109_v18, %v1110_v20 }
  0x63   :  { %3943 = vmatmul.mubr.f32.gmra.mrb[2].mxu0 %v4908_v21  ;;  %4340 = vmatprep.subr.bf16.mxu1 %v5037_v17  ;;  %v1117_v21 = vand.u32 4294901760, %v1116_v19  ;;  %v1124_v28 = vand.u32 4294901760, %v1123_v24  ;;  %v5048_v37 = vpack.c.bf16 %v1130_v25, %v1123_v24 }
  0x64   :  { %3945 = vmatprep.mubr.f32.mxu0 %v4917_v26  ;;  %v1112_v26 = vand.u32 4294901760, %v1111_v22 }
  0x65   :  { %v1118_v23 = vsub.f32 %v1116_v19, %v1117_v21  ;;  %v1125_v31 = vsub.f32 %v1123_v24, %v1124_v28  ;;  %v5052_v39 = vpack.c.bf16 %v1131_v29, %v1124_v28 }
  0x66   :  { %4342 = vmatpush3.bf16.msra.mxu1 %v5037_v17 }
  0x67   :  { %3946 = vmatmul.mubr.f32.gmra.mrb[4].mxu0 %v4943_v38  ;;  %v1119_v27 = vand.u32 4294901760, %v1118_v23  ;;  %v1126_v33 = vand.u32 4294901760, %v1125_v31  ;;  %v5050_v38 = vpack.c.bf16 %v1117_v21, %v1110_v20 }
  0x68   :  { %3948 = vmatprep.mubr.f32.mxu0 %v4969_v55 }
  0x69   :  { %v5041_v30 = vpack.c.bf16 %v1119_v27, %v1112_v26  ;;  %v5044_v35 = vpack.c.bf16 %v1133_v34, %v1126_v33 }
  0x6b   :  { %3949 = vmatmul.mubr.f32.gmra.mrb[6].mxu0 %v211_v62  ;;  %4344 = vmatprep.subr.bf16.mxu1 %v5041_v30 }
 0x132   :  { %v3941_v41 = vpop.f32.mrb[0].mxu0 }
 0x133   :  { %v5057_v42 = vadd.f32 %v3941_v41, %v3575_v40  ;;  %v788_v43 = vpop.f32.mrb[1].mxu0 }
 0x134   :  { %v5059_v44 = vadd.f32 %v3575_v40, %v788_v43 }
 0x135   :  { %v843_v45 = vand.u32 2147483647, %v5057_v42  ;;  %v835_v41 = vmax.f32 %v5057_v42, 0.0 }
 0x136   :  { %v842_v46 = vand.u32 2147483647, %v5059_v44  ;;  %v3944_v47 = vpop.f32.mrb[2].mxu0 }
 0x137   :  { %v851_v48 = vsub.f32 0.0, %v843_v45  ;;  %v5063_v49 = vadd.f32 %v3944_v47, %v3575_v40  ;;  %v800_v50 = vpop.f32.mrb[3].mxu0 }
 0x138   :  { %v850_v51 = vsub.f32 0.0, %v842_v46  ;;  %v5065_v52 = vadd.f32 %v3575_v40, %v800_v50  ;;  %v834_v46 = vmax.f32 %v5059_v44, 0.0 }
 0x139   :  { %v860_v53 = vmul.f32 1.442695, %v851_v48  ;;  %v845_v54 = vand.u32 2147483647, %v5063_v49 }
 0x13a   :  { %v858_v55 = vmul.f32 1.442695, %v850_v51  ;;  %v844_v56 = vand.u32 2147483647, %v5065_v52  ;;  %v3947_v57 = vpop.f32.mrb[4].mxu0 }
 0x13b   :  { %4671 = vpow2.f32 %v860_v53  ;;  %v853_v58 = vsub.f32 0.0, %v845_v54  ;;  %v5069_v59 = vadd.f32 %v3947_v57, %v3575_v40  ;;  %v812_v60 = vpop.f32.mrb[5].mxu0  ;;  %v836_v57 = vmax.f32 %v5065_v52, 0.0 }
 0x13c   :  { %4673 = vpow2.f32 %v858_v55  ;;  %v852_v61 = vsub.f32 0.0, %v844_v56  ;;  %v5071_v62 = vadd.f32 %v3575_v40, %v812_v60  ;;  %v837_v55 = vmax.f32 %v5063_v49, 0.0 }
 0x13d   :  { %v864_v63 = vmul.f32 1.442695, %v853_v58  ;;  %v847_v0 = vand.u32 2147483647, %v5069_v59 }
 0x13e   :  { %v862_v1 = vmul.f32 1.442695, %v852_v61  ;;  %v846_v2 = vand.u32 2147483647, %v5071_v62  ;;  %v3950_v3 = vpop.f32.mrb[6].mxu0 }
 0x13f   :  { %4675 = vpow2.f32 %v864_v63  ;;  %v855_v4 = vsub.f32 0.0, %v847_v0  ;;  %v5075_v5 = vadd.f32 %v3950_v3, %v3575_v40  ;;  %v824_v6 = vpop.f32.mrb[7].mxu0  ;;  %v838_v3 = vmax.f32 %v5071_v62, 0.0 }
 0x140   :  { %4677 = vpow2.f32 %v862_v1  ;;  %v854_v7 = vsub.f32 0.0, %v846_v2  ;;  %v5077_v8 = vadd.f32 %v3575_v40, %v824_v6  ;;  %v839_v1 = vmax.f32 %v5069_v59, 0.0 }
 0x141   :  { %v868_v9 = vmul.f32 1.442695, %v855_v4  ;;  %v849_v10 = vand.u32 2147483647, %v5075_v5 }
 0x142   :  { %v866_v11 = vmul.f32 1.442695, %v854_v7  ;;  %v848_v13 = vand.u32 2147483647, %v5077_v8 }
 0x143   :  { %4679 = vpow2.f32 %v868_v9  ;;  %v857_v14 = vsub.f32 0.0, %v849_v10  ;;  %v841_v10 = vmax.f32 %v5075_v5, 0.0 }
 0x144   :  { %4681 = vpow2.f32 %v866_v11  ;;  %v856_v15 = vsub.f32 0.0, %v848_v13 }
 0x145   :  { %v4672_v16 = vpop.eup %4671  ;;  %v872_v18 = vmul.f32 1.442695, %v857_v14 }
 0x146   :  { %v4674_v19 = vpop.eup %4673  ;;  %v875_v20 = vadd.f32 1.0, %v4672_v16  ;;  %v870_v21 = vmul.f32 1.442695, %v856_v15 }
 0x147   :  { %v874_v22 = vadd.f32 1.0, %v4674_v19  ;;  %4683 = vpow2.f32 %v872_v18 }
 0x148   :  { %4685 = vlog2.f32 %v875_v20 }
 0x149   :  { %v4676_v23 = vpop.eup %4675  ;;  %4687 = vlog2.f32 %v874_v22 }
 0x14a   :  { %v4678_v24 = vpop.eup %4677  ;;  %v877_v25 = vadd.f32 1.0, %v4676_v23  ;;  %4689 = vpow2.f32 %v870_v21  ;;  %v840_v21 = vmax.f32 %v5077_v8, 0.0 }
 0x14b   :  { %v876_v26 = vadd.f32 1.0, %v4678_v24 }
 0x14c   :  { %4691 = vlog2.f32 %v877_v25 }
 0x14d   :  { %v4680_v27 = vpop.eup %4679  ;;  %4693 = vlog2.f32 %v876_v26 }
 0x14e   :  { %v4682_v28 = vpop.eup %4681  ;;  %v879_v29 = vadd.f32 1.0, %v4680_v27 }
 0x14f   :  { %v878_v31 = vadd.f32 1.0, %v4682_v28 }
 0x150   :  { %4695 = vlog2.f32 %v879_v29 }
 0x151   :  { %v4684_v32 = vpop.eup %4683  ;;  %4697 = vlog2.f32 %v878_v31 }
 0x152   :  { %v4686_v33 = vpop.eup %4685  ;;  %v881_v34 = vadd.f32 1.0, %v4684_v32 }
 0x153   :  { %v4688_v40 = vpop.eup %4687  ;;  %v885_v43 = vmul.f32 0.6931472, %v4686_v33 }
 0x154   :  { %v4690_v45 = vpop.eup %4689  ;;  %v883_v47 = vmul.f32 0.6931472, %v4688_v40  ;;  %4699 = vlog2.f32 %v881_v34 }
 0x155   :  { %v899_v48 = vadd.f32 %v885_v43, %v835_v41  ;;  %v880_v50 = vadd.f32 1.0, %v4690_v45 }
 0x156   :  { %v4692_v51 = vpop.eup %4691  ;;  %v898_v53 = vadd.f32 %v883_v47, %v834_v46 }
 0x157   :  { %v4694_v54 = vpop.eup %4693  ;;  %4701 = vtanh.f32 %v899_v48  ;;  %v889_v56 = vmul.f32 0.6931472, %v4692_v51 }
 0x158   :  { %4703 = vtanh.f32 %v898_v53  ;;  %v887_v58 = vmul.f32 0.6931472, %v4694_v54 }
 0x159   :  { %v901_v60 = vadd.f32 %v889_v56, %v837_v55  ;;  %4705 = vlog2.f32 %v880_v50 }
 0x15a   :  { %v4696_v61 = vpop.eup %4695  ;;  %v900_v63 = vadd.f32 %v887_v58, %v836_v57 }
 0x15b   :  { %v4698_v0 = vpop.eup %4697  ;;  %4707 = vtanh.f32 %v901_v60  ;;  %v893_v2 = vmul.f32 0.6931472, %v4696_v61 }
 0x15c   :  { %4709 = vtanh.f32 %v900_v63  ;;  %v891_v4 = vmul.f32 0.6931472, %v4698_v0 }
 0x15d   :  { %v903_v6 = vadd.f32 %v893_v2, %v839_v1 }
 0x15e   :  { %v4700_v7 = vpop.eup %4699  ;;  %v902_v9 = vadd.f32 %v891_v4, %v838_v3 }
 0x15f   :  { %4711 = vtanh.f32 %v903_v6  ;;  %v897_v11 = vmul.f32 0.6931472, %v4700_v7 }
 0x160   :  { %4713 = vtanh.f32 %v902_v9 }
 0x161   :  { %v4702_v13 = vpop.eup %4701  ;;  %v905_v14 = vadd.f32 %v897_v11, %v841_v10 }
 0x162   :  { %v4704_v15 = vpop.eup %4703  ;;  %v915_v16 = vmul.f32 %v4702_v13, %v5057_v42 }
 0x163   :  { %v4706_v18 = vpop.eup %4705  ;;  %v914_v19 = vmul.f32 %v4704_v15, %v5059_v44  ;;  %4715 = vtanh.f32 %v905_v14 }
 0x164   :  { %v938_v20 = vsel %vm933_vm1, %v915_v16, 0  ;;  %v895_v22 = vmul.f32 0.6931472, %v4706_v18 }
 0x165   :  { %v4708_v23 = vpop.eup %4707  ;;  %v5092_v24 = vand.u32 4294901760, %v938_v20  ;;  %v935_v25 = vsel %vm933_vm1, %v914_v19, 0 }
 0x166   :  { %v4710_v26 = vpop.eup %4709  ;;  %v917_v27 = vmul.f32 %v4708_v23, %v5063_v49  ;;  %v904_v28 = vadd.f32 %v895_v22, %v840_v21  ;;  %v5096_v29 = vand.u32 4294901760, %v935_v25 }
 0x167   :  { %v5099_v42 = vsub.f32 %v938_v20, %v5092_v24  ;;  %v916_v44 = vmul.f32 %v4710_v26, %v5065_v52 }
 0x168   :  { %v944_v31 = vsel %vm933_vm1, %v917_v27, 0  ;;  %4717 = vtanh.f32 %v904_v28  ;;  %v5104_v32 = vsub.f32 %v935_v25, %v5096_v29 }
 0x169   :  { %v4712_v33 = vpop.eup %4711  ;;  %v5106_v34 = vand.u32 4294901760, %v944_v31  ;;  %v941_v40 = vsel %vm933_vm1, %v916_v44, 0  ;;  %v1039_v49 = vand.u32 4294901760, %v5099_v42 }
 0x16a   :  { %v4714_v41 = vpop.eup %4713  ;;  %v5110_v43 = vand.u32 4294901760, %v941_v40  ;;  %v919_v45 = vmul.f32 %v4712_v33, %v5069_v59  ;;  %v1029_v52 = vand.u32 4294901760, %v5104_v32 }
 0x16b   :  { %v5115_v46 = vsub.f32 %v944_v31, %v5106_v34  ;;  %v918_v47 = vmul.f32 %v4714_v41, %v5071_v62  ;;  %v1040_v48 = vsub.f32 %v5099_v42, %v1039_v49 }
 0x16c   :  { %v5122_v50 = vsub.f32 %v941_v40, %v5110_v43  ;;  %v950_v51 = vsel %vm933_vm1, %v919_v45, 0  ;;  %v1030_v59 = vsub.f32 %v5104_v32, %v1029_v52 }
 0x16d   :  { %v4716_v53 = vpop.eup %4715  ;;  %v5128_v54 = vand.u32 4294901760, %v950_v51  ;;  %v947_v55 = vsel %vm933_vm1, %v918_v47, 0  ;;  %v1059_v62 = vand.u32 4294901760, %v5115_v46  ;;  %v1041_v63 = vand.u32 4294901760, %v1040_v48 }
 0x16e   :  { %v5132_v56 = vand.u32 4294901760, %v947_v55  ;;  %v921_v57 = vmul.f32 %v4716_v53, %v5075_v5  ;;  %v1031_v58 = vand.u32 4294901760, %v1030_v59  ;;  %v1049_v60 = vand.u32 4294901760, %v5122_v50 }
 0x16f   :  { %v5137_v61 = vsub.f32 %v950_v51, %v5128_v54  ;;  %v1060_v0 = vsub.f32 %v5115_v46, %v1059_v62 }
 0x170   :  { %v5143_v1 = vsub.f32 %v947_v55, %v5132_v56  ;;  %v956_v2 = vsel %vm933_vm1, %v921_v57, 0  ;;  %3959 = vmatprep.mubr.f32.mxu1 %v1031_v58  ;;  %v1050_v5 = vsub.f32 %v5122_v50, %v1049_v60 }
 0x171   :  { %v5149_v3 = vand.u32 4294901760, %v956_v2  ;;  %3960 = vmatmul.mubr.f32.vlgmr.msra.gmra.mrb[0].mxu1 %v1041_v63  ;;  %v1079_v4 = vand.u32 4294901760, %v5137_v61  ;;  %v1061_v13 = vand.u32 4294901760, %v1060_v0 }
 0x172   :  { %v4718_v6 = vpop.eup %4717  ;;  %4346 = vmatpush3.bf16.msra.mxu1 %v5041_v30  ;;  %v1051_v7 = vand.u32 4294901760, %v1050_v5  ;;  %v1069_v9 = vand.u32 4294901760, %v5143_v1 }
 0x173   :  { %v1098_v10 = vsub.f32 %v956_v2, %v5149_v3  ;;  %v920_v11 = vmul.f32 %v4718_v6, %v5077_v8  ;;  %v1080_v14 = vsub.f32 %v5137_v61, %v1079_v4  ;;  %4348 = vmatprep.subr.bf16.mxu1 %v5044_v35 }
 0x174   :  { %3962 = vmatprep.mubr.f32.mxu1 %v1051_v7  ;;  %v1070_v15 = vsub.f32 %v5143_v1, %v1069_v9 }
 0x175   :  { %v953_v16 = vsel %vm933_vm1, %v920_v11, 0  ;;  %3963 = vmatmul.mubr.f32.gmra.mrb[2].mxu1 %v1061_v13  ;;  %v1081_v19 = vand.u32 4294901760, %v1080_v14  ;;  %v1099_v20 = vand.u32 4294901760, %v1098_v10 }
 0x176   :  { %v5160_v18 = vand.u32 4294901760, %v953_v16  ;;  %v1071_v30 = vand.u32 4294901760, %v1070_v15  ;;  %4350 = vmatpush3.bf16.msra.mxu1 %v5044_v35 }
 0x177   :  { %4352 = vmatprep.subr.bf16.mxu1 %v5046_v36  ;;  %v1100_v22 = vsub.f32 %v1098_v10, %v1099_v20 }
 0x178   :  { %v1088_v8 = vsub.f32 %v953_v16, %v5160_v18  ;;  %3965 = vmatprep.mubr.f32.mxu1 %v1071_v30 }
 0x179   :  { %3966 = vmatmul.mubr.f32.gmra.mrb[4].mxu1 %v1081_v19  ;;  %v1101_v26 = vand.u32 4294901760, %v1100_v22 }
 0x17a   :  { %v1089_v21 = vand.u32 4294901760, %v1088_v8 }
 0x17c   :  { %v1090_v23 = vsub.f32 %v1088_v8, %v1089_v21 }
 0x17e   :  { %v1091_v25 = vand.u32 4294901760, %v1090_v23 }
 0x180   :  { %3968 = vmatprep.mubr.f32.mxu1 %v1091_v25 }
 0x181   :  { %3969 = vmatmul.mubr.f32.gmra.mrb[6].mxu1 %v1101_v26 }
 0x182   :  { %3979 = vmatprep.mubr.f32.mxu1 %v5096_v29 }
 0x185   :  { %3980 = vmatmul.mubr.f32.vlgmr.msra.gmra.mrb[0].mxu1 %v5092_v24 }
 0x186   :  { %3982 = vmatprep.mubr.f32.mxu1 %v5110_v43  ;;  %4354 = vmatpush3.bf16.msra.mxu1 %v5046_v36 }
 0x187   :  { %4356 = vmatprep.subr.bf16.mxu1 %v5048_v37 }
 0x189   :  { %3983 = vmatmul.mubr.f32.gmra.mrb[2].mxu1 %v5106_v34 }
 0x18a   :  { %3985 = vmatprep.mubr.f32.mxu1 %v5132_v56  ;;  %4358 = vmatpush3.bf16.msra.mxu1 %v5048_v37 }
 0x18b   :  { %4360 = vmatprep.subr.bf16.mxu1 %v5027_v12 }
 0x18d   :  { %3986 = vmatmul.mubr.f32.gmra.mrb[4].mxu1 %v5128_v54 }
 0x18e   :  { %3988 = vmatprep.mubr.f32.mxu1 %v5160_v18 }
 0x191   :  { %3989 = vmatmul.mubr.f32.gmra.mrb[6].mxu1 %v5149_v3 }
 0x192   :  { %3999 = vmatprep.mubr.f32.mxu1 %v5104_v32 }
 0x195   :  { %4000 = vmatmul.mubr.f32.vlgmr.msra.gmra.mrb[0].mxu1 %v5099_v42 }
 0x196   :  { %4002 = vmatprep.mubr.f32.mxu1 %v5122_v50  ;;  %4362 = vmatpush3.bf16.msra.mxu1 %v5027_v12 }
 0x197   :  { %4364 = vmatprep.subr.bf16.mxu1 %v5037_v17 }
 0x199   :  { %4003 = vmatmul.mubr.f32.gmra.mrb[2].mxu1 %v5115_v46 }
 0x19a   :  { %4005 = vmatprep.mubr.f32.mxu1 %v5143_v1  ;;  %4366 = vmatpush3.bf16.msra.mxu1 %v5037_v17 }
 0x19b   :  { %4368 = vmatprep.subr.bf16.mxu1 %v5050_v38 }
 0x19d   :  { %4006 = vmatmul.mubr.f32.gmra.mrb[4].mxu1 %v5137_v61 }
 0x19e   :  { %4008 = vmatprep.mubr.f32.mxu1 %v1088_v8 }
 0x1a1   :  { %4009 = vmatmul.mubr.f32.gmra.mrb[6].mxu1 %v1098_v10 }
 0x1a2   :  { %4019 = vmatprep.mubr.f32.mxu1 %v1029_v52 }
 0x1a5   :  { %4020 = vmatmul.mubr.f32.vlgmr.msra.gmra.mrb[0].mxu1 %v1039_v49 }
 0x1a6   :  { %4022 = vmatprep.mubr.f32.mxu1 %v1049_v60  ;;  %4370 = vmatpush3.bf16.msra.mxu1 %v5050_v38  ;;  %v1834_v38 = vld [vmem:[%s5651_s5 + $0x10] sm:$0xff] }
 0x1a7   :  { %4372 = vmatprep.subr.bf16.mxu1 %v5052_v39 }
 0x1a9   :  { %4023 = vmatmul.mubr.f32.gmra.mrb[2].mxu1 %v1059_v62  ;;  %v3576_v62 = vld [vmem:[%s5652_s4] ss:$0 sm:$0xff] }
 0x1aa   :  { %4025 = vmatprep.mubr.f32.mxu1 %v1069_v9  ;;  %4374 = vmatpush3.bf16.msra.mxu1 %v5052_v39  ;;  %v1835_v39 = vld [vmem:[%s5651_s5 + $0x18] sm:$0xff] }
 0x1ab   :  { %4376 = vmatprep.subr.bf16.mxu1 %v5027_v12  ;;  %v1877_v27 = vand.u32 4294901760, %v1835_v39 }
 0x1ad   :  { %4026 = vmatmul.mubr.f32.gmra.mrb[4].mxu1 %v1079_v4  ;;  %v2039_v40 = vsub.f32 %v1835_v39, %v1877_v27 }
 0x1ae   :  { %4028 = vmatprep.mubr.f32.mxu1 %v1089_v21 }
 0x1af   :  { %v2040_v45 = vand.u32 4294901760, %v2039_v40 }
 0x1b1   :  { %4029 = vmatmul.mubr.f32.gmra.mrb[6].mxu1 %v1099_v20  ;;  %v2041_v47 = vsub.f32 %v2039_v40, %v2040_v45 }
 0x1b2   :  { %4039 = vmatprep.mubr.f32.mxu1 %v5096_v29 }
 0x1b3   :  { %v2042_v50 = vand.u32 4294901760, %v2041_v47 }
 0x1b5   :  { %4040 = vmatmul.mubr.f32.vlgmr.msra.gmra.mrb[0].mxu1 %v5092_v24 }
 0x1b6   :  { %4042 = vmatprep.mubr.f32.mxu1 %v5110_v43  ;;  %4378 = vmatpush3.bf16.msra.mxu1 %v5027_v12  ;;  %v1832_v12 = vld [vmem:[%s5651_s5] sm:$0xff] }
 0x1b7   :  { %4380 = vmatprep.subr.bf16.mxu1 %v5037_v17  ;;  %v1868_v35 = vand.u32 4294901760, %v1832_v12 }
 0x1b9   :  { %4043 = vmatmul.mubr.f32.gmra.mrb[2].mxu1 %v5106_v34 }
 0x1ba   :  { %4045 = vmatprep.mubr.f32.mxu1 %v5132_v56  ;;  %4382 = vmatpush3.bf16.msra.mxu1 %v5037_v17  ;;  %v1833_v17 = vld [vmem:[%s5651_s5 + $0x8] sm:$0xff] }
 0x1bb   :  { %v1871_v36 = vand.u32 4294901760, %v1833_v17 }
 0x1bd   :  { %4046 = vmatmul.mubr.f32.gmra.mrb[4].mxu1 %v5128_v54  ;;  %v5224_v37 = vpack.c.bf16 %v1871_v36, %v1868_v35  ;;  %v2025_v42 = vsub.f32 %v1833_v17, %v1871_v36 }
 0x1be   :  { %4048 = vmatprep.mubr.f32.mxu1 %v5160_v18 }
 0x1bf   :  { %4384 = vmatprep.subr.bf16.mxu0 %v5224_v37  ;;  %v2026_v31 = vand.u32 4294901760, %v2025_v42 }
 0x1c0   :  { %4386 = vmatpush3.bf16.msra.mxu0 %v5224_v37 }
 0x1c1   :  { %4049 = vmatmul.mubr.f32.gmra.mrb[6].mxu1 %v5149_v3  ;;  %v2027_v33 = vsub.f32 %v2025_v42, %v2026_v31 }
 0x1c2   :  { %4059 = vmatprep.mubr.f32.mxu1 %v5096_v29  ;;  %v2018_v29 = vsub.f32 %v1832_v12, %v1868_v35 }
 0x1c3   :  { %v2028_v41 = vand.u32 4294901760, %v2027_v33 }
 0x1c4   :  { %v2019_v44 = vand.u32 4294901760, %v2018_v29  ;;  %v5243_v59 = vpack.c.bf16 %v2025_v42, %v2018_v29 }
 0x1c5   :  { %4060 = vmatmul.mubr.f32.vlgmr.msra.gmra.mrb[0].mxu1 %v5092_v24  ;;  %v1874_v24 = vand.u32 4294901760, %v1834_v38 }
 0x1c6   :  { %4062 = vmatprep.mubr.f32.mxu1 %v5110_v43  ;;  %v2020_v32 = vsub.f32 %v2018_v29, %v2019_v44 }
 0x1c7   :  { %v5234_v28 = vpack.c.bf16 %v1877_v27, %v1874_v24 }
 0x1c8   :  { %v2021_v49 = vand.u32 4294901760, %v2020_v32 }
 0x1c9   :  { %4063 = vmatmul.mubr.f32.gmra.mrb[2].mxu1 %v5106_v34  ;;  %4388 = vmatprep.subr.bf16.mxu0 %v5234_v28  ;;  %v2032_v34 = vsub.f32 %v1834_v38, %v1874_v24 }
 0x1ca   :  { %4065 = vmatprep.mubr.f32.mxu1 %v5132_v56  ;;  %4390 = vmatpush3.bf16.msra.mxu0 %v5234_v28  ;;  %v5238_v52 = vpack.c.bf16 %v2028_v41, %v2021_v49 }
 0x1cb   :  { %v2033_v43 = vand.u32 4294901760, %v2032_v34  ;;  %v5245_v53 = vpack.c.bf16 %v2039_v40, %v2032_v34 }
 0x1cc   :  { %4392 = vmatprep.subr.bf16.mxu0 %v5238_v52 }
 0x1cd   :  { %4066 = vmatmul.mubr.f32.gmra.mrb[4].mxu1 %v5128_v54  ;;  %v2034_v46 = vsub.f32 %v2032_v34, %v2033_v43  ;;  %v5247_v54 = vpack.c.bf16 %v2026_v31, %v2019_v44  ;;  %v5249_v55 = vpack.c.bf16 %v2040_v45, %v2033_v43 }
 0x1ce   :  { %4068 = vmatprep.mubr.f32.mxu1 %v5160_v18 }
 0x1cf   :  { %v2035_v48 = vand.u32 4294901760, %v2034_v46 }
 0x1d1   :  { %4069 = vmatmul.mubr.f32.gmra.mrb[6].mxu1 %v5149_v3  ;;  %v5241_v51 = vpack.c.bf16 %v2042_v50, %v2035_v48 }
 0x298   :  { %v4061_v56 = vpop.f32.mrb[0].mxu1 }
 0x299   :  { %v5254_v57 = vadd.f32 %v4061_v56, %v3576_v62  ;;  %v1698_v58 = vpop.f32.mrb[1].mxu1 }
 0x29a   :  { %v5256_v60 = vadd.f32 %v3576_v62, %v1698_v58 }
 0x29b   :  { %v1753_v61 = vand.u32 2147483647, %v5254_v57  ;;  %v1745_v56 = vmax.f32 %v5254_v57, 0.0 }
 0x29c   :  { %v1752_v63 = vand.u32 2147483647, %v5256_v60  ;;  %v4064_v0 = vpop.f32.mrb[2].mxu1 }
 0x29d   :  { %v1761_v1 = vsub.f32 0.0, %v1753_v61  ;;  %v5260_v2 = vadd.f32 %v4064_v0, %v3576_v62  ;;  %v1710_v5 = vpop.f32.mrb[3].mxu1 }
 0x29e   :  { %v1760_v3 = vsub.f32 0.0, %v1752_v63  ;;  %v5262_v4 = vadd.f32 %v3576_v62, %v1710_v5  ;;  %v1744_v63 = vmax.f32 %v5256_v60, 0.0 }
 0x29f   :  { %v1770_v6 = vmul.f32 1.442695, %v1761_v1  ;;  %v1755_v7 = vand.u32 2147483647, %v5260_v2 }
 0x2a0   :  { %v1768_v9 = vmul.f32 1.442695, %v1760_v3  ;;  %v1754_v10 = vand.u32 2147483647, %v5262_v4  ;;  %v4067_v11 = vpop.f32.mrb[4].mxu1 }
 0x2a1   :  { %4719 = vpow2.f32 %v1770_v6  ;;  %v1763_v13 = vsub.f32 0.0, %v1755_v7  ;;  %v5266_v14 = vadd.f32 %v4067_v11, %v3576_v62  ;;  %v1722_v15 = vpop.f32.mrb[5].mxu1  ;;  %v1746_v11 = vmax.f32 %v5262_v4, 0.0 }
 0x2a2   :  { %4721 = vpow2.f32 %v1768_v9  ;;  %v1762_v16 = vsub.f32 0.0, %v1754_v10  ;;  %v5268_v18 = vadd.f32 %v3576_v62, %v1722_v15  ;;  %v1747_v9 = vmax.f32 %v5260_v2, 0.0 }
 0x2a3   :  { %v1774_v30 = vmul.f32 1.442695, %v1763_v13  ;;  %v1757_v19 = vand.u32 2147483647, %v5266_v14 }
 0x2a4   :  { %v1772_v20 = vmul.f32 1.442695, %v1762_v16  ;;  %v1756_v8 = vand.u32 2147483647, %v5268_v18  ;;  %v4070_v21 = vpop.f32.mrb[6].mxu1 }
 0x2a5   :  { %4723 = vpow2.f32 %v1774_v30  ;;  %v1765_v22 = vsub.f32 0.0, %v1757_v19  ;;  %v5272_v23 = vadd.f32 %v4070_v21, %v3576_v62  ;;  %v1734_v25 = vpop.f32.mrb[7].mxu1  ;;  %v1748_v21 = vmax.f32 %v5268_v18, 0.0 }
 0x2a6   :  { %4725 = vpow2.f32 %v1772_v20  ;;  %v1764_v26 = vsub.f32 0.0, %v1756_v8  ;;  %v5274_v12 = vadd.f32 %v3576_v62, %v1734_v25  ;;  %v1749_v20 = vmax.f32 %v5266_v14, 0.0 }
 0x2a7   :  { %v1778_v17 = vmul.f32 1.442695, %v1765_v22  ;;  %v1759_v35 = vand.u32 2147483647, %v5272_v23 }
 0x2a8   :  { %v1776_v36 = vmul.f32 1.442695, %v1764_v26  ;;  %v1758_v38 = vand.u32 2147483647, %v5274_v12 }
 0x2a9   :  { %4727 = vpow2.f32 %v1778_v17  ;;  %v1767_v39 = vsub.f32 0.0, %v1759_v35  ;;  %v1751_v35 = vmax.f32 %v5272_v23, 0.0 }
 0x2aa   :  { %4729 = vpow2.f32 %v1776_v36  ;;  %v1766_v24 = vsub.f32 0.0, %v1758_v38 }
 0x2ab   :  { %v4720_v27 = vpop.eup %4719  ;;  %v1782_v29 = vmul.f32 1.442695, %v1767_v39 }
 0x2ac   :  { %v4722_v42 = vpop.eup %4721  ;;  %v1785_v44 = vadd.f32 1.0, %v4720_v27  ;;  %v1780_v31 = vmul.f32 1.442695, %v1766_v24 }
 0x2ad   :  { %v1784_v32 = vadd.f32 1.0, %v4722_v42  ;;  %4731 = vpow2.f32 %v1782_v29 }
 0x2ae   :  { %4733 = vlog2.f32 %v1785_v44 }
 0x2af   :  { %v4724_v33 = vpop.eup %4723  ;;  %4735 = vlog2.f32 %v1784_v32 }
 0x2b0   :  { %v4726_v34 = vpop.eup %4725  ;;  %v1787_v40 = vadd.f32 1.0, %v4724_v33  ;;  %4737 = vpow2.f32 %v1780_v31  ;;  %v1750_v31 = vmax.f32 %v5274_v12, 0.0 }
 0x2b1   :  { %v1786_v49 = vadd.f32 1.0, %v4726_v34 }
 0x2b2   :  { %4739 = vlog2.f32 %v1787_v40 }
 0x2b3   :  { %v4728_v41 = vpop.eup %4727  ;;  %4741 = vlog2.f32 %v1786_v49 }
 0x2b4   :  { %v4730_v43 = vpop.eup %4729  ;;  %v1789_v45 = vadd.f32 1.0, %v4728_v41 }
 0x2b5   :  { %v1788_v46 = vadd.f32 1.0, %v4730_v43 }
 0x2b6   :  { %4743 = vlog2.f32 %v1789_v45 }
 0x2b7   :  { %v4732_v47 = vpop.eup %4731  ;;  %4745 = vlog2.f32 %v1788_v46 }
 0x2b8   :  { %v4734_v48 = vpop.eup %4733  ;;  %v1791_v50 = vadd.f32 1.0, %v4732_v47 }
 0x2b9   :  { %v4736_v62 = vpop.eup %4735  ;;  %v1795_v58 = vmul.f32 0.6931472, %v4734_v48 }
 0x2ba   :  { %v4738_v61 = vpop.eup %4737  ;;  %v1793_v0 = vmul.f32 0.6931472, %v4736_v62  ;;  %4747 = vlog2.f32 %v1791_v50 }
 0x2bb   :  { %v1809_v1 = vadd.f32 %v1795_v58, %v1745_v56  ;;  %v1790_v5 = vadd.f32 1.0, %v4738_v61 }
 0x2bc   :  { %v4740_v3 = vpop.eup %4739  ;;  %v1808_v6 = vadd.f32 %v1793_v0, %v1744_v63 }
 0x2bd   :  { %v4742_v7 = vpop.eup %4741  ;;  %4749 = vtanh.f32 %v1809_v1  ;;  %v1799_v10 = vmul.f32 0.6931472, %v4740_v3 }
 0x2be   :  { %4751 = vtanh.f32 %v1808_v6  ;;  %v1797_v13 = vmul.f32 0.6931472, %v4742_v7 }
 0x2bf   :  { %v1811_v15 = vadd.f32 %v1799_v10, %v1747_v9  ;;  %4753 = vlog2.f32 %v1790_v5 }
 0x2c0   :  { %v4744_v16 = vpop.eup %4743  ;;  %v1810_v30 = vadd.f32 %v1797_v13, %v1746_v11 }
 0x2c1   :  { %v4746_v19 = vpop.eup %4745  ;;  %4755 = vtanh.f32 %v1811_v15  ;;  %v1803_v8 = vmul.f32 0.6931472, %v4744_v16 }
 0x2c2   :  { %4757 = vtanh.f32 %v1810_v30  ;;  %v1801_v22 = vmul.f32 0.6931472, %v4746_v19 }
 0x2c3   :  { %v1813_v25 = vadd.f32 %v1803_v8, %v1749_v20 }
 0x2c4   :  { %v4748_v26 = vpop.eup %4747  ;;  %v1812_v17 = vadd.f32 %v1801_v22, %v1748_v21 }
 0x2c5   :  { %4759 = vtanh.f32 %v1813_v25  ;;  %v1807_v36 = vmul.f32 0.6931472, %v4748_v26 }
 0x2c6   :  { %4761 = vtanh.f32 %v1812_v17 }
 0x2c7   :  { %v4750_v38 = vpop.eup %4749  ;;  %v1815_v39 = vadd.f32 %v1807_v36, %v1751_v35 }
 0x2c8   :  { %v4752_v24 = vpop.eup %4751  ;;  %v1825_v27 = vmul.f32 %v4750_v38, %v5254_v57 }
 0x2c9   :  { %v4754_v29 = vpop.eup %4753  ;;  %v1824_v42 = vmul.f32 %v4752_v24, %v5256_v60  ;;  %4763 = vtanh.f32 %v1815_v39 }
 0x2ca   :  { %v1847_v44 = vsel %vm933_vm1, %v1825_v27, 0  ;;  %v1805_v32 = vmul.f32 0.6931472, %v4754_v29 }
 0x2cb   :  { %v4756_v33 = vpop.eup %4755  ;;  %v5289_v34 = vand.u32 4294901760, %v1847_v44  ;;  %v1844_v40 = vsel %vm933_vm1, %v1824_v42, 0 }
 0x2cc   :  { %v4758_v49 = vpop.eup %4757  ;;  %v5292_v41 = vand.u32 4294901760, %v1844_v40  ;;  %v1827_v43 = vmul.f32 %v4756_v33, %v5260_v2  ;;  %v1814_v57 = vadd.f32 %v1805_v32, %v1750_v31 }
 0x2cd   :  { %v5296_v45 = vsub.f32 %v1847_v44, %v5289_v34  ;;  %v1826_v60 = vmul.f32 %v4758_v49, %v5262_v4 }
 0x2ce   :  { %v5300_v46 = vsub.f32 %v1844_v40, %v5292_v41  ;;  %v1853_v47 = vsel %vm933_vm1, %v1827_v43, 0  ;;  %4765 = vtanh.f32 %v1814_v57 }
 0x2cf   :  { %v4760_v48 = vpop.eup %4759  ;;  %v1948_v50 = vand.u32 4294901760, %v5296_v45  ;;  %v5304_v62 = vand.u32 4294901760, %v1853_v47  ;;  %v1850_v56 = vsel %vm933_vm1, %v1826_v60, 0 }
 0x2d0   :  { %v4762_v2 = vpop.eup %4761  ;;  %v5307_v58 = vand.u32 4294901760, %v1850_v56  ;;  %v1829_v61 = vmul.f32 %v4760_v48, %v5266_v14  ;;  %v1938_v4 = vand.u32 4294901760, %v5300_v46 }
 0x2d1   :  { %v5312_v63 = vsub.f32 %v1853_v47, %v5304_v62  ;;  %v1828_v0 = vmul.f32 %v4762_v2, %v5268_v18  ;;  %v1949_v1 = vsub.f32 %v5296_v45, %v1948_v50 }
 0x2d2   :  { %v5319_v5 = vsub.f32 %v1850_v56, %v5307_v58  ;;  %v1859_v3 = vsel %vm933_vm1, %v1829_v61, 0  ;;  %v1939_v14 = vsub.f32 %v5300_v46, %v1938_v4 }
 0x2d3   :  { %v4764_v6 = vpop.eup %4763  ;;  %v5325_v7 = vand.u32 4294901760, %v1859_v3  ;;  %v1856_v9 = vsel %vm933_vm1, %v1828_v0, 0  ;;  %v1968_v18 = vand.u32 4294901760, %v5312_v63  ;;  %v1950_v30 = vand.u32 4294901760, %v1949_v1 }
 0x2d4   :  { %v5329_v10 = vand.u32 4294901760, %v1856_v9  ;;  %v1831_v11 = vmul.f32 %v4764_v6, %v5272_v23  ;;  %v1940_v13 = vand.u32 4294901760, %v1939_v14  ;;  %v1958_v15 = vand.u32 4294901760, %v5319_v5 }
 0x2d5   :  { %v5334_v16 = vsub.f32 %v1859_v3, %v5325_v7  ;;  %v1969_v19 = vsub.f32 %v5312_v63, %v1968_v18 }
 0x2d6   :  { %v5340_v20 = vsub.f32 %v1856_v9, %v5329_v10  ;;  %v1865_v8 = vsel %vm933_vm1, %v1831_v11, 0  ;;  %4079 = vmatprep.mubr.f32.mxu0 %v1940_v13  ;;  %v1959_v23 = vsub.f32 %v5319_v5, %v1958_v15 }
 0x2d7   :  { %v5346_v21 = vand.u32 4294901760, %v1865_v8  ;;  %4080 = vmatmul.mubr.f32.vlgmr.msra.gmra.mrb[8].mxu0 %v1950_v30  ;;  %v1988_v22 = vand.u32 4294901760, %v5334_v16  ;;  %v1970_v38 = vand.u32 4294901760, %v1969_v19 }
 0x2d8   :  { %v4766_v25 = vpop.eup %4765  ;;  %4394 = vmatpush3.bf16.msra.mxu0 %v5238_v52  ;;  %v1960_v26 = vand.u32 4294901760, %v1959_v23  ;;  %v1978_v17 = vand.u32 4294901760, %v5340_v20 }
 0x2d9   :  { %v2007_v35 = vsub.f32 %v1865_v8, %v5346_v21  ;;  %v1830_v36 = vmul.f32 %v4766_v25, %v5274_v12  ;;  %v1989_v39 = vsub.f32 %v5334_v16, %v1988_v22  ;;  %4396 = vmatprep.subr.bf16.mxu0 %v5241_v51 }
 0x2da   :  { %4082 = vmatprep.mubr.f32.mxu0 %v1960_v26  ;;  %v1979_v24 = vsub.f32 %v5340_v20, %v1978_v17 }
 0x2db   :  { %v1862_v27 = vsel %vm933_vm1, %v1830_v36, 0  ;;  %4083 = vmatmul.mubr.f32.gmra.mrb[10].mxu0 %v1970_v38  ;;  %v1990_v42 = vand.u32 4294901760, %v1989_v39  ;;  %v2008_v44 = vand.u32 4294901760, %v2007_v35 }
 0x2dc   :  { %v5357_v29 = vand.u32 4294901760, %v1862_v27  ;;  %v1980_v52 = vand.u32 4294901760, %v1979_v24  ;;  %4398 = vmatpush3.bf16.msra.mxu0 %v5241_v51 }
 0x2dd   :  { %4400 = vmatprep.subr.bf16.mxu0 %v5243_v59  ;;  %v2009_v32 = vsub.f32 %v2007_v35, %v2008_v44 }
 0x2de   :  { %v1997_v12 = vsub.f32 %v1862_v27, %v5357_v29  ;;  %4085 = vmatprep.mubr.f32.mxu0 %v1980_v52 }
 0x2df   :  { %4086 = vmatmul.mubr.f32.gmra.mrb[12].mxu0 %v1990_v42  ;;  %v2010_v49 = vand.u32 4294901760, %v2009_v32 }
 0x2e0   :  { %v1998_v31 = vand.u32 4294901760, %v1997_v12 }
 0x2e2   :  { %v1999_v33 = vsub.f32 %v1997_v12, %v1998_v31 }
 0x2e4   :  { %v2000_v40 = vand.u32 4294901760, %v1999_v33 }
 0x2e6   :  { %4088 = vmatprep.mubr.f32.mxu0 %v2000_v40 }
 0x2e7   :  { %4089 = vmatmul.mubr.f32.gmra.mrb[14].mxu0 %v2010_v49 }
 0x2e8   :  { %4099 = vmatprep.mubr.f32.mxu0 %v5292_v41 }
 0x2eb   :  { %4100 = vmatmul.mubr.f32.vlgmr.msra.gmra.mrb[8].mxu0 %v5289_v34 }
 0x2ec   :  { %4102 = vmatprep.mubr.f32.mxu0 %v5307_v58  ;;  %4402 = vmatpush3.bf16.msra.mxu0 %v5243_v59 }
 0x2ed   :  { %4404 = vmatprep.subr.bf16.mxu0 %v5245_v53 }
 0x2ef   :  { %4103 = vmatmul.mubr.f32.gmra.mrb[10].mxu0 %v5304_v62 }
 0x2f0   :  { %4105 = vmatprep.mubr.f32.mxu0 %v5329_v10  ;;  %4406 = vmatpush3.bf16.msra.mxu0 %v5245_v53 }
 0x2f1   :  { %4408 = vmatprep.subr.bf16.mxu0 %v5224_v37 }
 0x2f3   :  { %4106 = vmatmul.mubr.f32.gmra.mrb[12].mxu0 %v5325_v7 }
 0x2f4   :  { %4108 = vmatprep.mubr.f32.mxu0 %v5357_v29 }
 0x2f7   :  { %4109 = vmatmul.mubr.f32.gmra.mrb[14].mxu0 %v5346_v21 }
 0x2f8   :  { %4119 = vmatprep.mubr.f32.mxu0 %v5300_v46 }
 0x2fb   :  { %4120 = vmatmul.mubr.f32.vlgmr.msra.gmra.mrb[8].mxu0 %v5296_v45 }
 0x2fc   :  { %4122 = vmatprep.mubr.f32.mxu0 %v5319_v5  ;;  %4410 = vmatpush3.bf16.msra.mxu0 %v5224_v37 }
 0x2fd   :  { %4412 = vmatprep.subr.bf16.mxu0 %v5234_v28 }
 0x2ff   :  { %4123 = vmatmul.mubr.f32.gmra.mrb[10].mxu0 %v5312_v63 }
 0x300   :  { %4125 = vmatprep.mubr.f32.mxu0 %v5340_v20  ;;  %4414 = vmatpush3.bf16.msra.mxu0 %v5234_v28 }
 0x301   :  { %4416 = vmatprep.subr.bf16.mxu0 %v5247_v54 }
 0x303   :  { %4126 = vmatmul.mubr.f32.gmra.mrb[12].mxu0 %v5334_v16 }
 0x304   :  { %4128 = vmatprep.mubr.f32.mxu0 %v1997_v12 }
 0x307   :  { %4129 = vmatmul.mubr.f32.gmra.mrb[14].mxu0 %v2007_v35 }
 0x308   :  { %4139 = vmatprep.mubr.f32.mxu0 %v1938_v4 }
 0x30b   :  { %4140 = vmatmul.mubr.f32.vlgmr.msra.gmra.mrb[8].mxu0 %v1948_v50 }
 0x30c   :  { %4142 = vmatprep.mubr.f32.mxu0 %v1958_v15  ;;  %4418 = vmatpush3.bf16.msra.mxu0 %v5247_v54  ;;  %v2743_v54 = vld [vmem:[%s5653_s7 + $0x10] sm:$0xff] }
 0x30d   :  { %4420 = vmatprep.subr.bf16.mxu0 %v5249_v55 }
 0x30f   :  { %4143 = vmatmul.mubr.f32.gmra.mrb[10].mxu0 %v1968_v18  ;;  %v3577_v18 = vld [vmem:[%s5654_s6] ss:$0 sm:$0xff] }
 0x310   :  { %4145 = vmatprep.mubr.f32.mxu0 %v1978_v17  ;;  %4422 = vmatpush3.bf16.msra.mxu0 %v5249_v55  ;;  %v2744_v55 = vld [vmem:[%s5653_s7 + $0x18] sm:$0xff] }
 0x311   :  { %4424 = vmatprep.subr.bf16.mxu0 %v5224_v37 }
 0x313   :  { %4146 = vmatmul.mubr.f32.gmra.mrb[12].mxu0 %v1988_v22 }
 0x314   :  { %4148 = vmatprep.mubr.f32.mxu0 %v1998_v31 }
 0x317   :  { %4149 = vmatmul.mubr.f32.gmra.mrb[14].mxu0 %v2008_v44 }
 0x318   :  { %4159 = vmatprep.mubr.f32.mxu0 %v5292_v41 }
 0x31b   :  { %4160 = vmatmul.mubr.f32.vlgmr.msra.gmra.mrb[8].mxu0 %v5289_v34 }
 0x31c   :  { %4162 = vmatprep.mubr.f32.mxu0 %v5307_v58  ;;  %4426 = vmatpush3.bf16.msra.mxu0 %v5224_v37  ;;  %v2741_v37 = vld [vmem:[%s5653_s7] sm:$0xff] }
 0x31d   :  { %4428 = vmatprep.subr.bf16.mxu0 %v5234_v28  ;;  %v2777_v51 = vand.u32 4294901760, %v2741_v37 }
 0x31f   :  { %4163 = vmatmul.mubr.f32.gmra.mrb[10].mxu0 %v5304_v62  ;;  %v2927_v57 = vsub.f32 %v2741_v37, %v2777_v51 }
 0x320   :  { %4165 = vmatprep.mubr.f32.mxu0 %v5329_v10  ;;  %4430 = vmatpush3.bf16.msra.mxu0 %v5234_v28  ;;  %v2742_v28 = vld [vmem:[%s5653_s7 + $0x8] sm:$0xff] }
 0x321   :  { %v2780_v59 = vand.u32 4294901760, %v2742_v28  ;;  %v2928_v60 = vand.u32 4294901760, %v2927_v57 }
 0x323   :  { %4166 = vmatmul.mubr.f32.gmra.mrb[12].mxu0 %v5325_v7  ;;  %v5421_v53 = vpack.c.bf16 %v2780_v59, %v2777_v51  ;;  %v2934_v45 = vsub.f32 %v2742_v28, %v2780_v59  ;;  %v2929_v47 = vsub.f32 %v2927_v57, %v2928_v60 }
 0x324   :  { %4168 = vmatprep.mubr.f32.mxu0 %v5357_v29 }
 0x325   :  { %4432 = vmatprep.subr.bf16.mxu1 %v5421_v53  ;;  %v2935_v46 = vand.u32 4294901760, %v2934_v45  ;;  %v2930_v56 = vand.u32 4294901760, %v2929_v47  ;;  %v5440_v14 = vpack.c.bf16 %v2934_v45, %v2927_v57 }
 0x326   :  { %4434 = vmatpush3.bf16.msra.mxu1 %v5421_v53 }
 0x327   :  { %4169 = vmatmul.mubr.f32.gmra.mrb[14].mxu0 %v5346_v21  ;;  %v2936_v48 = vsub.f32 %v2934_v45, %v2935_v46 }
 0x328   :  { %4179 = vmatprep.mubr.f32.mxu0 %v5292_v41  ;;  %v2786_v41 = vand.u32 4294901760, %v2744_v55 }
 0x329   :  { %v2937_v2 = vand.u32 4294901760, %v2936_v48 }
 0x32b   :  { %4180 = vmatmul.mubr.f32.vlgmr.msra.gmra.mrb[8].mxu0 %v5289_v34  ;;  %v2783_v34 = vand.u32 4294901760, %v2743_v54  ;;  %v5435_v4 = vpack.c.bf16 %v2937_v2, %v2930_v56 }
 0x32c   :  { %4182 = vmatprep.mubr.f32.mxu0 %v5307_v58 }
 0x32d   :  { %v5431_v43 = vpack.c.bf16 %v2786_v41, %v2783_v34  ;;  %v2941_v50 = vsub.f32 %v2743_v54, %v2783_v34 }
 0x32f   :  { %4183 = vmatmul.mubr.f32.gmra.mrb[10].mxu0 %v5304_v62  ;;  %4436 = vmatprep.subr.bf16.mxu1 %v5431_v43  ;;  %v2948_v62 = vsub.f32 %v2744_v55, %v2786_v41  ;;  %v2942_v58 = vand.u32 4294901760, %v2941_v50 }
 0x330   :  { %4185 = vmatprep.mubr.f32.mxu0 %v5329_v10  ;;  %4438 = vmatpush3.bf16.msra.mxu1 %v5431_v43 }
 0x331   :  { %v2949_v61 = vand.u32 4294901760, %v2948_v62  ;;  %v2943_v63 = vsub.f32 %v2941_v50, %v2942_v58  ;;  %4440 = vmatprep.subr.bf16.mxu1 %v5435_v4  ;;  %v5442_v6 = vpack.c.bf16 %v2948_v62, %v2941_v50 }
 0x333   :  { %4186 = vmatmul.mubr.f32.gmra.mrb[12].mxu0 %v5325_v7  ;;  %v2950_v0 = vsub.f32 %v2948_v62, %v2949_v61  ;;  %v2944_v1 = vand.u32 4294901760, %v2943_v63  ;;  %v5444_v7 = vpack.c.bf16 %v2935_v46, %v2928_v60  ;;  %v5446_v9 = vpack.c.bf16 %v2949_v61, %v2942_v58 }
 0x334   :  { %4188 = vmatprep.mubr.f32.mxu0 %v5357_v29 }
 0x335   :  { %v2951_v5 = vand.u32 4294901760, %v2950_v0 }
 0x337   :  { %4189 = vmatmul.mubr.f32.gmra.mrb[14].mxu0 %v5346_v21  ;;  %v5438_v3 = vpack.c.bf16 %v2951_v5, %v2944_v1 }
 0x3fe   :  { %v4181_v10 = vpop.f32.mrb[8].mxu0 }
 0x3ff   :  { %v5451_v11 = vadd.f32 %v4181_v10, %v3577_v18  ;;  %v2607_v13 = vpop.f32.mrb[9].mxu0 }
 0x400   :  { %v5453_v15 = vadd.f32 %v3577_v18, %v2607_v13 }
 0x401   :  { %v2662_v16 = vand.u32 2147483647, %v5451_v11  ;;  %v2654_v10 = vmax.f32 %v5451_v11, 0.0 }
 0x402   :  { %v2661_v30 = vand.u32 2147483647, %v5453_v15  ;;  %v4184_v19 = vpop.f32.mrb[10].mxu0 }
 0x403   :  { %v2670_v20 = vsub.f32 0.0, %v2662_v16  ;;  %v5457_v8 = vadd.f32 %v4184_v19, %v3577_v18  ;;  %v2619_v23 = vpop.f32.mrb[11].mxu0 }
 0x404   :  { %v2669_v21 = vsub.f32 0.0, %v2661_v30  ;;  %v5459_v22 = vadd.f32 %v3577_v18, %v2619_v23  ;;  %v2653_v30 = vmax.f32 %v5453_v15, 0.0 }
 0x405   :  { %v2679_v25 = vmul.f32 1.442695, %v2670_v20  ;;  %v2664_v26 = vand.u32 2147483647, %v5457_v8 }
 0x406   :  { %v2677_v17 = vmul.f32 1.442695, %v2669_v21  ;;  %v2663_v35 = vand.u32 2147483647, %v5459_v22  ;;  %v4187_v36 = vpop.f32.mrb[12].mxu0 }
 0x407   :  { %4767 = vpow2.f32 %v2679_v25  ;;  %v2672_v38 = vsub.f32 0.0, %v2664_v26  ;;  %v5463_v39 = vadd.f32 %v4187_v36, %v3577_v18  ;;  %v2631_v24 = vpop.f32.mrb[13].mxu0  ;;  %v2655_v36 = vmax.f32 %v5459_v22, 0.0 }
 0x408   :  { %4769 = vpow2.f32 %v2677_v17  ;;  %v2671_v27 = vsub.f32 0.0, %v2663_v35  ;;  %v5465_v29 = vadd.f32 %v3577_v18, %v2631_v24  ;;  %v2656_v17 = vmax.f32 %v5457_v8, 0.0 }
 0x409   :  { %v2683_v52 = vmul.f32 1.442695, %v2672_v38  ;;  %v2666_v42 = vand.u32 2147483647, %v5463_v39 }
 0x40a   :  { %v2681_v44 = vmul.f32 1.442695, %v2671_v27  ;;  %v2665_v12 = vand.u32 2147483647, %v5465_v29  ;;  %v4190_v31 = vpop.f32.mrb[14].mxu0 }
 0x40b   :  { %4771 = vpow2.f32 %v2683_v52  ;;  %v2674_v32 = vsub.f32 0.0, %v2666_v42  ;;  %v5469_v33 = vadd.f32 %v4190_v31, %v3577_v18  ;;  %v2643_v40 = vpop.f32.mrb[15].mxu0  ;;  %v2657_v31 = vmax.f32 %v5465_v29, 0.0 }
 0x40c   :  { %4773 = vpow2.f32 %v2681_v44  ;;  %v2673_v49 = vsub.f32 0.0, %v2665_v12  ;;  %v5471_v37 = vadd.f32 %v3577_v18, %v2643_v40  ;;  %v2658_v44 = vmax.f32 %v5463_v39, 0.0 }
 0x40d   :  { %v2687_v28 = vmul.f32 1.442695, %v2674_v32  ;;  %v2668_v51 = vand.u32 2147483647, %v5469_v33 }
 0x40e   :  { %v2685_v59 = vmul.f32 1.442695, %v2673_v49  ;;  %v2667_v54 = vand.u32 2147483647, %v5471_v37 }
 0x40f   :  { %4775 = vpow2.f32 %v2687_v28  ;;  %v2676_v55 = vsub.f32 0.0, %v2668_v51  ;;  %v2660_v51 = vmax.f32 %v5469_v33, 0.0 }
 0x410   :  { %4777 = vpow2.f32 %v2685_v59  ;;  %v2675_v34 = vsub.f32 0.0, %v2667_v54 }
 0x411   :  { %v4768_v41 = vpop.eup %4767  ;;  %v2691_v57 = vmul.f32 1.442695, %v2676_v55 }
 0x412   :  { %v4770_v45 = vpop.eup %4769  ;;  %v2694_v60 = vadd.f32 1.0, %v4768_v41  ;;  %v2689_v46 = vmul.f32 1.442695, %v2675_v34 }
 0x413   :  { %v2693_v47 = vadd.f32 1.0, %v4770_v45  ;;  %4779 = vpow2.f32 %v2691_v57 }
 0x414   :  { %4781 = vlog2.f32 %v2694_v60 }
 0x415   :  { %v4772_v48 = vpop.eup %4771  ;;  %4783 = vlog2.f32 %v2693_v47 }
 0x416   :  { %v4774_v50 = vpop.eup %4773  ;;  %v2696_v62 = vadd.f32 1.0, %v4772_v48  ;;  %4785 = vpow2.f32 %v2689_v46  ;;  %v2659_v46 = vmax.f32 %v5471_v37, 0.0 }
 0x417   :  { %v2695_v56 = vadd.f32 1.0, %v4774_v50 }
 0x418   :  { %4787 = vlog2.f32 %v2696_v62 }
 0x419   :  { %v4776_v2 = vpop.eup %4775  ;;  %4789 = vlog2.f32 %v2695_v56 }
 0x41a   :  { %v4778_v58 = vpop.eup %4777  ;;  %v2698_v61 = vadd.f32 1.0, %v4776_v2 }
 0x41b   :  { %v2697_v63 = vadd.f32 1.0, %v4778_v58 }
 0x41c   :  { %4791 = vlog2.f32 %v2698_v61 }
 0x41d   :  { %v4780_v0 = vpop.eup %4779  ;;  %4793 = vlog2.f32 %v2697_v63 }
 0x41e   :  { %v4782_v1 = vpop.eup %4781  ;;  %v2700_v5 = vadd.f32 1.0, %v4780_v0 }
 0x41f   :  { %v4784_v18 = vpop.eup %4783  ;;  %v2704_v13 = vmul.f32 0.6931472, %v4782_v1 }
 0x420   :  { %v4786_v16 = vpop.eup %4785  ;;  %v2702_v19 = vmul.f32 0.6931472, %v4784_v18  ;;  %4795 = vlog2.f32 %v2700_v5 }
 0x421   :  { %v2718_v20 = vadd.f32 %v2704_v13, %v2654_v10  ;;  %v2699_v23 = vadd.f32 1.0, %v4786_v16 }
 0x422   :  { %v4788_v21 = vpop.eup %4787  ;;  %v2717_v25 = vadd.f32 %v2702_v19, %v2653_v30 }
 0x423   :  { %v4790_v26 = vpop.eup %4789  ;;  %4797 = vtanh.f32 %v2718_v20  ;;  %v2708_v35 = vmul.f32 0.6931472, %v4788_v21 }
 0x424   :  { %4799 = vtanh.f32 %v2717_v25  ;;  %v2706_v38 = vmul.f32 0.6931472, %v4790_v26 }
 0x425   :  { %v2720_v24 = vadd.f32 %v2708_v35, %v2656_v17  ;;  %4801 = vlog2.f32 %v2699_v23 }
 0x426   :  { %v4792_v27 = vpop.eup %4791  ;;  %v2719_v52 = vadd.f32 %v2706_v38, %v2655_v36 }
 0x427   :  { %v4794_v42 = vpop.eup %4793  ;;  %4803 = vtanh.f32 %v2720_v24  ;;  %v2712_v12 = vmul.f32 0.6931472, %v4792_v27 }
 0x428   :  { %4805 = vtanh.f32 %v2719_v52  ;;  %v2710_v32 = vmul.f32 0.6931472, %v4794_v42 }
 0x429   :  { %v2722_v40 = vadd.f32 %v2712_v12, %v2658_v44 }
 0x42a   :  { %v4796_v49 = vpop.eup %4795  ;;  %v2721_v28 = vadd.f32 %v2710_v32, %v2657_v31 }
 0x42b   :  { %4807 = vtanh.f32 %v2722_v40  ;;  %v2716_v59 = vmul.f32 0.6931472, %v4796_v49 }
 0x42c   :  { %4809 = vtanh.f32 %v2721_v28 }
 0x42d   :  { %v4798_v54 = vpop.eup %4797  ;;  %v2724_v55 = vadd.f32 %v2716_v59, %v2660_v51 }
 0x42e   :  { %v4800_v34 = vpop.eup %4799  ;;  %v2734_v41 = vmul.f32 %v4798_v54, %v5451_v11 }
 0x42f   :  { %v4802_v57 = vpop.eup %4801  ;;  %v2733_v45 = vmul.f32 %v4800_v34, %v5453_v15  ;;  %4811 = vtanh.f32 %v2724_v55 }
 0x430   :  { %v2756_v60 = vsel %vm933_vm1, %v2734_v41, 0  ;;  %v2714_v47 = vmul.f32 0.6931472, %v4802_v57 }
 0x431   :  { %v4804_v48 = vpop.eup %4803  ;;  %v5486_v50 = vand.u32 4294901760, %v2756_v60  ;;  %v2753_v62 = vsel %vm933_vm1, %v2733_v45, 0 }
 0x432   :  { %v4806_v56 = vpop.eup %4805  ;;  %v5489_v2 = vand.u32 4294901760, %v2753_v62  ;;  %v2736_v58 = vmul.f32 %v4804_v48, %v5457_v8  ;;  %v2723_v11 = vadd.f32 %v2714_v47, %v2659_v46 }
 0x433   :  { %v5493_v61 = vsub.f32 %v2756_v60, %v5486_v50  ;;  %v2735_v15 = vmul.f32 %v4806_v56, %v5459_v22 }
 0x434   :  { %v5497_v63 = vsub.f32 %v2753_v62, %v5489_v2  ;;  %v2762_v0 = vsel %vm933_vm1, %v2736_v58, 0  ;;  %4813 = vtanh.f32 %v2723_v11 }
 0x435   :  { %v4808_v1 = vpop.eup %4807  ;;  %v2857_v5 = vand.u32 4294901760, %v5493_v61  ;;  %v5501_v18 = vand.u32 4294901760, %v2762_v0  ;;  %v2759_v10 = vsel %vm933_vm1, %v2735_v15, 0 }
 0x436   :  { %v4810_v8 = vpop.eup %4809  ;;  %v5504_v13 = vand.u32 4294901760, %v2759_v10  ;;  %v2738_v16 = vmul.f32 %v4808_v1, %v5463_v39  ;;  %v2847_v22 = vand.u32 4294901760, %v5497_v63 }
 0x437   :  { %v5509_v30 = vsub.f32 %v2762_v0, %v5501_v18  ;;  %v2737_v19 = vmul.f32 %v4810_v8, %v5465_v29  ;;  %v2858_v20 = vsub.f32 %v5493_v61, %v2857_v5 }
 0x438   :  { %v5516_v23 = vsub.f32 %v2759_v10, %v5504_v13  ;;  %v2768_v21 = vsel %vm933_vm1, %v2738_v16, 0  ;;  %v2848_v39 = vsub.f32 %v5497_v63, %v2847_v22 }
 0x439   :  { %v4812_v25 = vpop.eup %4811  ;;  %v5522_v26 = vand.u32 4294901760, %v2768_v21  ;;  %v2765_v17 = vsel %vm933_vm1, %v2737_v19, 0  ;;  %v2877_v29 = vand.u32 4294901760, %v5509_v30  ;;  %v2859_v52 = vand.u32 4294901760, %v2858_v20 }
 0x43a   :  { %v5526_v35 = vand.u32 4294901760, %v2765_v17  ;;  %v2740_v36 = vmul.f32 %v4812_v25, %v5469_v33  ;;  %v2849_v38 = vand.u32 4294901760, %v2848_v39  ;;  %v2867_v24 = vand.u32 4294901760, %v5516_v23 }
 0x43b   :  { %v5531_v27 = vsub.f32 %v2768_v21, %v5522_v26  ;;  %v2878_v42 = vsub.f32 %v5509_v30, %v2877_v29 }
 0x43c   :  { %v5537_v44 = vsub.f32 %v2765_v17, %v5526_v35  ;;  %v2774_v12 = vsel %vm933_vm1, %v2740_v36, 0  ;;  %4199 = vmatprep.mubr.f32.mxu1 %v2849_v38  ;;  %v2868_v33 = vsub.f32 %v5516_v23, %v2867_v24 }
 0x43d   :  { %v5543_v31 = vand.u32 4294901760, %v2774_v12  ;;  %4200 = vmatmul.mubr.f32.vlgmr.msra.gmra.mrb[8].mxu1 %v2859_v52  ;;  %v2897_v32 = vand.u32 4294901760, %v5531_v27  ;;  %v2879_v54 = vand.u32 4294901760, %v2878_v42 }
 0x43e   :  { %v4814_v40 = vpop.eup %4813  ;;  %4442 = vmatpush3.bf16.msra.mxu1 %v5435_v4  ;;  %v2869_v49 = vand.u32 4294901760, %v2868_v33  ;;  %v2887_v28 = vand.u32 4294901760, %v5537_v44 }
 0x43f   :  { %v2916_v51 = vsub.f32 %v2774_v12, %v5543_v31  ;;  %v2739_v59 = vmul.f32 %v4814_v40, %v5471_v37  ;;  %v2898_v55 = vsub.f32 %v5531_v27, %v2897_v32  ;;  %4444 = vmatprep.subr.bf16.mxu1 %v5438_v3 }
 0x440   :  { %4202 = vmatprep.mubr.f32.mxu1 %v2869_v49  ;;  %v2888_v34 = vsub.f32 %v5537_v44, %v2887_v28 }
 0x441   :  { %v2771_v41 = vsel %vm933_vm1, %v2739_v59, 0  ;;  %4203 = vmatmul.mubr.f32.gmra.mrb[10].mxu1 %v2879_v54  ;;  %v2899_v45 = vand.u32 4294901760, %v2898_v55  ;;  %v2917_v60 = vand.u32 4294901760, %v2916_v51 }
 0x442   :  { %v5554_v57 = vand.u32 4294901760, %v2771_v41  ;;  %v2889_v4 = vand.u32 4294901760, %v2888_v34  ;;  %4446 = vmatpush3.bf16.msra.mxu1 %v5438_v3 }
 0x443   :  { %4448 = vmatprep.subr.bf16.mxu1 %v5440_v14  ;;  %v2918_v47 = vsub.f32 %v2916_v51, %v2917_v60 }
 0x444   :  { %v2906_v37 = vsub.f32 %v2771_v41, %v5554_v57  ;;  %4205 = vmatprep.mubr.f32.mxu1 %v2889_v4 }
 0x445   :  { %4206 = vmatmul.mubr.f32.gmra.mrb[12].mxu1 %v2899_v45  ;;  %v2919_v56 = vand.u32 4294901760, %v2918_v47 }
 0x446   :  { %v2907_v46 = vand.u32 4294901760, %v2906_v37 }
 0x448   :  { %v2908_v48 = vsub.f32 %v2906_v37, %v2907_v46 }
 0x44a   :  { %v2909_v62 = vand.u32 4294901760, %v2908_v48 }
 0x44c   :  { %4208 = vmatprep.mubr.f32.mxu1 %v2909_v62 }
 0x44d   :  { %4209 = vmatmul.mubr.f32.gmra.mrb[14].mxu1 %v2919_v56 }
 0x44e   :  { %4219 = vmatprep.mubr.f32.mxu1 %v5489_v2 }
 0x451   :  { %4220 = vmatmul.mubr.f32.vlgmr.msra.gmra.mrb[8].mxu1 %v5486_v50 }
 0x452   :  { %4222 = vmatprep.mubr.f32.mxu1 %v5504_v13  ;;  %4450 = vmatpush3.bf16.msra.mxu1 %v5440_v14 }
 0x453   :  { %4452 = vmatprep.subr.bf16.mxu1 %v5442_v6 }
 0x455   :  { %4223 = vmatmul.mubr.f32.gmra.mrb[10].mxu1 %v5501_v18 }
 0x456   :  { %4225 = vmatprep.mubr.f32.mxu1 %v5526_v35  ;;  %4454 = vmatpush3.bf16.msra.mxu1 %v5442_v6 }
 0x457   :  { %4456 = vmatprep.subr.bf16.mxu1 %v5421_v53 }
 0x459   :  { %4226 = vmatmul.mubr.f32.gmra.mrb[12].mxu1 %v5522_v26 }
 0x45a   :  { %4228 = vmatprep.mubr.f32.mxu1 %v5554_v57 }
 0x45d   :  { %4229 = vmatmul.mubr.f32.gmra.mrb[14].mxu1 %v5543_v31 }
 0x45e   :  { %4239 = vmatprep.mubr.f32.mxu1 %v5497_v63 }
 0x461   :  { %4240 = vmatmul.mubr.f32.vlgmr.msra.gmra.mrb[8].mxu1 %v5493_v61 }
 0x462   :  { %4242 = vmatprep.mubr.f32.mxu1 %v5516_v23  ;;  %4458 = vmatpush3.bf16.msra.mxu1 %v5421_v53 }
 0x463   :  { %4460 = vmatprep.subr.bf16.mxu1 %v5431_v43 }
 0x465   :  { %4243 = vmatmul.mubr.f32.gmra.mrb[10].mxu1 %v5509_v30 }
 0x466   :  { %4245 = vmatprep.mubr.f32.mxu1 %v5537_v44  ;;  %4462 = vmatpush3.bf16.msra.mxu1 %v5431_v43 }
 0x467   :  { %4464 = vmatprep.subr.bf16.mxu1 %v5444_v7 }
 0x469   :  { %4246 = vmatmul.mubr.f32.gmra.mrb[12].mxu1 %v5531_v27 }
 0x46a   :  { %4248 = vmatprep.mubr.f32.mxu1 %v2906_v37 }
 0x46d   :  { %4249 = vmatmul.mubr.f32.gmra.mrb[14].mxu1 %v2916_v51 }
 0x46e   :  { %4259 = vmatprep.mubr.f32.mxu1 %v2847_v22 }
 0x471   :  { %4260 = vmatmul.mubr.f32.vlgmr.msra.gmra.mrb[8].mxu1 %v2857_v5 }
 0x472   :  { %4262 = vmatprep.mubr.f32.mxu1 %v2867_v24  ;;  %4466 = vmatpush3.bf16.msra.mxu1 %v5444_v7 }
 0x473   :  { %4468 = vmatprep.subr.bf16.mxu1 %v5446_v9 }
 0x475   :  { %4263 = vmatmul.mubr.f32.gmra.mrb[10].mxu1 %v2877_v29 }
 0x476   :  { %4265 = vmatprep.mubr.f32.mxu1 %v2887_v28  ;;  %4470 = vmatpush3.bf16.msra.mxu1 %v5446_v9 }
 0x477   :  { %4472 = vmatprep.subr.bf16.mxu1 %v5421_v53 }
 0x479   :  { %4266 = vmatmul.mubr.f32.gmra.mrb[12].mxu1 %v2897_v32 }
 0x47a   :  { %4268 = vmatprep.mubr.f32.mxu1 %v2907_v46 }
 0x47d   :  { %4269 = vmatmul.mubr.f32.gmra.mrb[14].mxu1 %v2917_v60 }
 0x47e   :  { %4279 = vmatprep.mubr.f32.mxu1 %v5489_v2 }
 0x481   :  { %4280 = vmatmul.mubr.f32.vlgmr.msra.gmra.mrb[8].mxu1 %v5486_v50 }
 0x482   :  { %4282 = vmatprep.mubr.f32.mxu1 %v5504_v13  ;;  %4474 = vmatpush3.bf16.msra.mxu1 %v5421_v53  ;;  %v3578_v53 = vld [vmem:[%s5655_s8] ss:$0 sm:$0xff] }
 0x483   :  { %4476 = vmatprep.subr.bf16.mxu1 %v5431_v43 }
 0x485   :  { %4283 = vmatmul.mubr.f32.gmra.mrb[10].mxu1 %v5501_v18 }
 0x486   :  { %4285 = vmatprep.mubr.f32.mxu1 %v5526_v35  ;;  %4478 = vmatpush3.bf16.msra.mxu1 %v5431_v43 }
 0x489   :  { %4286 = vmatmul.mubr.f32.gmra.mrb[12].mxu1 %v5522_v26 }
 0x48a   :  { %4288 = vmatprep.mubr.f32.mxu1 %v5554_v57 }
 0x48d   :  { %4289 = vmatmul.mubr.f32.gmra.mrb[14].mxu1 %v5543_v31 }
 0x48e   :  { %4299 = vmatprep.mubr.f32.mxu1 %v5489_v2 }
 0x491   :  { %4300 = vmatmul.mubr.f32.vlgmr.msra.gmra.mrb[8].mxu1 %v5486_v50 }
 0x492   :  { %4302 = vmatprep.mubr.f32.mxu1 %v5504_v13 }
 0x495   :  { %4303 = vmatmul.mubr.f32.gmra.mrb[10].mxu1 %v5501_v18 }
 0x496   :  { %4305 = vmatprep.mubr.f32.mxu1 %v5526_v35 }
 0x499   :  { %4306 = vmatmul.mubr.f32.gmra.mrb[12].mxu1 %v5522_v26 }
 0x49a   :  { %4308 = vmatprep.mubr.f32.mxu1 %v5554_v57 }
 0x49d   :  { %4309 = vmatmul.mubr.f32.gmra.mrb[14].mxu1 %v5543_v31 }
 0x564   :  { %v4301_v43 = vpop.f32.mrb[8].mxu1 }
 0x565   :  { %v4503_v3 = vadd.f32 %v4301_v43, %v3578_v53  ;;  %v3516_v14 = vpop.f32.mrb[9].mxu1 }
 0x566   :  { %v4504_v6 = vadd.f32 %v3578_v53, %v3516_v14 }
 0x567   :  { %3564 = vst.msk [vmem:[%s5656_s9 + $0x8] sm:$0xff] %vm3562_vm2, %v4503_v3 }
 0x568   :  { %3563 = vst.msk [vmem:[%s5656_s9] sm:$0xff] %vm3562_vm2, %v4504_v6  ;;  %v4304_v7 = vpop.f32.mrb[10].mxu1 }
 0x569   :  { %v4505_v9 = vadd.f32 %v4304_v7, %v3578_v53  ;;  %v3528_v50 = vpop.f32.mrb[11].mxu1 }
 0x56a   :  { %v4506_v2 = vadd.f32 %v3578_v53, %v3528_v50 }
 0x56b   :  { %3566 = vst.msk [vmem:[%s5656_s9 + $0x18] sm:$0xff] %vm3562_vm2, %v4505_v9 }
 0x56c   :  { %3565 = vst.msk [vmem:[%s5656_s9 + $0x10] sm:$0xff] %vm3562_vm2, %v4506_v2  ;;  %v4307_v58 = vpop.f32.mrb[12].mxu1 }
 0x56d   :  { %v4507_v11 = vadd.f32 %v4307_v58, %v3578_v53  ;;  %v3540_v61 = vpop.f32.mrb[13].mxu1 }
 0x56e   :  { %v4508_v15 = vadd.f32 %v3578_v53, %v3540_v61 }
 0x56f   :  { %3568 = vst.msk [vmem:[%s5656_s9 + $0x28] sm:$0xff] %vm3562_vm2, %v4507_v11 }
 0x570   :  { %3567 = vst.msk [vmem:[%s5656_s9 + $0x20] sm:$0xff] %vm3562_vm2, %v4508_v15  ;;  %v4310_v63 = vpop.f32.mrb[14].mxu1 }
 0x571   :  { %v4509_v0 = vadd.f32 %v4310_v63, %v3578_v53  ;;  %v3552_v1 = vpop.f32.mrb[15].mxu1 }
 0x572   :  { %v4510_v5 = vadd.f32 %v3578_v53, %v3552_v1 }
 0x573   :  { %3570 = vst.msk [vmem:[%s5656_s9 + $0x38] sm:$0xff] %vm3562_vm2, %v4509_v0 }
 0x574   :  { %3569 = vst.msk [vmem:[%s5656_s9 + $0x30] sm:$0xff] %vm3562_vm2, %v4510_v5 }

</bundles_post_ra>
